<compile_context>
chip_gen: v7x
topology: tpu7x:2x2x1
jax: 0.10.0
libtpu: 0.0.40
codegen_flags: <defaults>
</compile_context>

<pallas_src>
import functools

import jax
import jax.numpy as jnp
from jax import lax
from jax.experimental import pallas as pl
from jax.experimental.pallas import tpu as pltpu

_LANE = 128


def _round_up(x, m):
    return (x + m - 1) // m * m


def _vmem_limit_bytes():
    """~half of this generation's per-core VMEM (32 MiB on v7x, 64 MiB on v5e/v6e)."""
    cap = 64 * 1024 * 1024
    try:
        cap = int(pltpu.get_tpu_info().vmem_capacity_bytes)
    except Exception:
        pass
    return int(min(max(cap // 2, 16 * 1024 * 1024), 64 * 1024 * 1024))


# --------------------------------------------------------------------------- #
# Pass 1: conv1 as a single depth-(K*K*C_in) GEMM + per-sample BN1 moments
# --------------------------------------------------------------------------- #
def _conv1_stats_kernel(p_ref, w_ref, y_ref, s_ref, q_ref, *, Wo, Wp, cnt):
    rows = p_ref.shape[1]
    acc = jnp.dot(p_ref[0], w_ref[...],
                  preferred_element_type=jnp.float32)            # (rows, Cp) f32
    y_ref[0] = acc.astype(y_ref.dtype)

    # Expanded-row layout: rows with (index % Wp) >= Wo are junk -> mask from stats.
    ridx = lax.broadcasted_iota(jnp.int32, (rows, 1), 0)
    valid = (ridx % Wp) < Wo
    s = jnp.sum(jnp.where(valid, acc, 0.0), axis=0, keepdims=True)   # (1, Cp)
    mu = s * (1.0 / cnt)
    d = jnp.where(valid, acc - mu, 0.0)
    s_ref[0] = s
    q_ref[0] = jnp.sum(d * d, axis=0, keepdims=True)                 # centered sumsq


# --------------------------------------------------------------------------- #
# Pass 2: BN1 affine + ReLU + sigmoid gate fused with conv2 + BN2 moments.
#         The gated feature map g never touches HBM.
# --------------------------------------------------------------------------- #
def _silu_conv2_stats_kernel(y1_ref, sc_ref, sh_ref, w_ref,
                             y2_ref, s_ref, q_ref, pad_scr,
                             *, K, Wo, Wp, off, cnt):
    rows = y1_ref.shape[1]
    cp = y1_ref.shape[2]
    lpad = pad_scr.shape[0]
    pad = (K - 1) // 2
    base = off - pad * (Wp + 1)                 # flat window start of tap (0, 0)

    f = jnp.maximum(y1_ref[0].astype(jnp.float32) * sc_ref[...] + sh_ref[...], 0.0)
    g = f * jax.nn.sigmoid(f)                   # EUP sigmoid

    ridx = lax.broadcasted_iota(jnp.int32, (rows, 1), 0)
    valid = (ridx % Wp) < Wo
    g = jnp.where(valid, g, 0.0)                # junk cols = horizontal zero padding

    # Zero only the top/bottom halo (vertical padding) each step; the interior
    # (incl. horizontal padding) is fully overwritten below.  Cheap (~2*Wp rows)
    # and megacore-safe (no cross-grid-step scratch reuse assumptions).
    if off > 0:
        pad_scr[pl.ds(0, off), :] = jnp.zeros((off, cp), pad_scr.dtype)
    bot = lpad - off - rows
    if bot > 0:
        pad_scr[pl.ds(off + rows, bot), :] = jnp.zeros((bot, cp), pad_scr.dtype)
    pad_scr[pl.ds(off, rows), :] = g            # one aligned contiguous store

    # 3x3 conv as K*K contiguous sublane-offset windows of the flat f32 scratch;
    # operands are cast to the compute dtype (bf16 by default) right at the MXU.
    acc = jnp.zeros((rows, cp), jnp.float32)
    for kh in range(K):
        for kw in range(K):
            win = pad_scr[pl.ds(base + kh * Wp + kw, rows), :]
            acc = acc + jnp.dot(win.astype(w_ref.dtype), w_ref[kh * K + kw],
                                preferred_element_type=jnp.float32)

    y2_ref[0] = acc.astype(y2_ref.dtype)
    s = jnp.sum(jnp.where(valid, acc, 0.0), axis=0, keepdims=True)
    mu = s * (1.0 / cnt)
    d = jnp.where(valid, acc - mu, 0.0)
    s_ref[0] = s
    q_ref[0] = jnp.sum(d * d, axis=0, keepdims=True)


# --------------------------------------------------------------------------- #
# Wrapper
# --------------------------------------------------------------------------- #
@functools.partial(jax.jit, static_argnames=("eps", "compute_dtype"))
def conv2d_with_sigmoid(x, w1, b1, gamma1, beta1, w2, b2, gamma2, beta2,
                        *, eps=1e-5, compute_dtype=jnp.bfloat16):
    """Conv2dwithSigmoid forward.  x: (N, C_in, H, W) NCHW, returns NCHW f32."""
    N, C_in, H, W = x.shape
    C_out, _, K, Kw = w1.shape
    assert K == Kw and K % 2 == 1, "module hard-codes odd 'same' 3x3 kernels"
    pad = (K - 1) // 2
    Ho, Wo = H, W                               # stride 1, 'same' padding
    Wp = Wo + 2 * pad                           # expanded row width (junk cols >= Wo)
    rows = Ho * Wp                              # expanded rows per sample
    cnt = float(Ho * Wo)                        # valid pixels per sample
    Cp = _round_up(C_out, _LANE)                # lane-dense output channels
    Kc = K * K * C_in                           # conv1 contraction depth

    # Flat conv2 scratch: interior stored at a 16-aligned offset, top/bottom halo
    # provides the vertical zero padding.
    off = _round_up(pad * (Wp + 1), 16)
    lpad = _round_up(off + pad * (Wp + 1) + rows, 16)

    f32 = jnp.float32
    x_nhwc = jnp.transpose(x.astype(f32), (0, 2, 3, 1))           # (N, H, W, C_in)

    # ---- XLA prologue: expanded im2col for conv1 (only Kc columns, cheap) ---- #
    # patches[n, i*Wp + j, (kh*K + kw)*C_in + c] = x_padded[n, i+kh, j+kw, c]
    xpad = jnp.pad(x_nhwc, ((0, 0), (pad, pad), (pad, 3 * pad), (0, 0)))
    taps = [xpad[:, kh:kh + Ho, kw:kw + Wp, :]
            for kh in range(K) for kw in range(K)]
    patches = jnp.concatenate(taps, axis=-1).reshape(N, rows, Kc)
    patches = patches.astype(compute_dtype)

    # ---- weights: tap-major, lane-dense, cast to the MXU operand dtype ---- #
    w1r = jnp.pad(
        jnp.transpose(w1.astype(f32), (2, 3, 1, 0)).reshape(Kc, C_out),
        ((0, 0), (0, Cp - C_out))).astype(compute_dtype)          # (Kc, Cp)
    w2r = jnp.pad(
        jnp.transpose(w2.astype(f32), (2, 3, 1, 0)).reshape(K * K, C_out, C_out),
        ((0, 0), (0, Cp - C_out), (0, Cp - C_out))).astype(compute_dtype)

    # Conv bias is added before BatchNorm and cancels exactly in (y - mean).
    del b1, b2

    def pad_c(v):
        return jnp.pad(v.astype(f32), (0, Cp - C_out)).reshape(1, Cp)

    g1p, be1p = pad_c(gamma1), pad_c(beta1)
    g2p, be2p = pad_c(gamma2), pad_c(beta2)

    cparams = pltpu.CompilerParams(
        dimension_semantics=("parallel",),       # per-sample partial stats -> no serialization
        vmem_limit_bytes=_vmem_limit_bytes(),    # generation-aware (v7x: ~32 MiB)
    )

    grid = (N,)
    stats_shape = jax.ShapeDtypeStruct((N, 1, Cp), f32)
    stats_spec = pl.BlockSpec((1, 1, Cp), lambda n: (n, 0, 0))
    row_spec = pl.BlockSpec((1, rows, Cp), lambda n: (n, 0, 0))
    cvec_spec = pl.BlockSpec((1, Cp), lambda n: (0, 0))

    # ---------------- pass 1: conv1 (single GEMM) + BN1 moments ---------------- #
    y1, s1, q1 = pl.pallas_call(
        functools.partial(_conv1_stats_kernel, Wo=Wo, Wp=Wp, cnt=cnt),
        out_shape=(jax.ShapeDtypeStruct((N, rows, Cp), compute_dtype),
                   stats_shape, stats_shape),
        grid_spec=pltpu.PrefetchScalarGridSpec(
            num_scalar_prefetch=0,
            grid=grid,
            in_specs=[
                pl.BlockSpec((1, rows, Kc), lambda n: (n, 0, 0)),
                pl.BlockSpec((Kc, Cp), lambda n: (0, 0)),
            ],
            out_specs=[row_spec, stats_spec, stats_spec],
        ),
        compiler_params=cparams,
    )(patches, w1r)

    # Fold BN (batch mean / biased variance) into per-channel scale + shift, f32.
    def fold_bn(s, q, gamma_p, beta_p):
        # s, q: (N, 1, Cp) per-sample sum and *centered* sum of squares.
        total = N * cnt
        mean_n = s / cnt                                      # (N, 1, Cp)
        mean = jnp.sum(s, axis=0) / total                     # (1, Cp)
        var = (jnp.sum(q, axis=0)
               + cnt * jnp.sum(jnp.square(mean_n - mean[None]), axis=0)) / total
        scale = gamma_p * lax.rsqrt(var + eps)                # (1, Cp)
        shift = beta_p - mean * scale
        return scale, shift

    scale1, shift1 = fold_bn(s1, q1, g1p, be1p)

    # ------- pass 2: bn1 + relu + sigmoid gate fused with conv2 + BN2 moments ------- #
    y2, s2, q2 = pl.pallas_call(
        functools.partial(_silu_conv2_stats_kernel,
                          K=K, Wo=Wo, Wp=Wp, off=off, cnt=cnt),
        out_shape=(jax.ShapeDtypeStruct((N, rows, Cp), compute_dtype),
                   stats_shape, stats_shape),
        grid_spec=pltpu.PrefetchScalarGridSpec(
            num_scalar_prefetch=0,
            grid=grid,
            in_specs=[
                row_spec,                                     # y1 (pre-BN conv1, expanded)
                cvec_spec, cvec_spec,                         # scale1, shift1
                pl.BlockSpec((K * K, Cp, Cp), lambda n: (0, 0, 0)),
            ],
            out_specs=[row_spec, stats_spec, stats_spec],
            scratch_shapes=[pltpu.VMEM((lpad, Cp), jnp.float32)],
        ),
        compiler_params=cparams,
    )(y1, scale1, shift1, w2r)

    scale2, shift2 = fold_bn(s2, q2, g2p, be2p)

    # ---- XLA epilogue (replaces pass 3): BN2 affine + ReLU fused into the
    #      unavoidable junk-column / channel slice and NCHW transpose. ---- #
    y2f = y2.astype(f32).reshape(N, Ho, Wp, Cp)
    out = jnp.maximum(y2f * scale2.reshape(1, 1, 1, Cp)
                      + shift2.reshape(1, 1, 1, Cp), 0.0)
    out = out[:, :, :Wo, :C_out]
    return jnp.transpose(out, (0, 3, 1, 2))


# --------------------------------------------------------------------------- #
# Pure-JAX reference (matches PyTorch: Conv2d(+bias) -> BN(train) -> ReLU, x2)
# --------------------------------------------------------------------------- #
def _conv_bn_relu_ref(x, w, b, gamma, beta, eps):
    y = lax.conv_general_dilated(
        x, w, window_strides=(1, 1), padding=[(1, 1), (1, 1)],
        dimension_numbers=("NCHW", "OIHW", "NCHW"))
    y = y + b.reshape(1, -1, 1, 1)
    mean = y.mean(axis=(0, 2, 3), keepdims=True)
    var = y.var(axis=(0, 2, 3), keepdims=True)          # biased, ddof=0
    yn = (y - mean) * lax.rsqrt(var + eps)
    yn = yn * gamma.reshape(1, -1, 1, 1) + beta.reshape(1, -1, 1, 1)
    return jnp.maximum(yn, 0.0)


def _reference(x, w1, b1, g1, be1, w2, b2, g2, be2, eps=1e-5):
    f = _conv_bn_relu_ref(x, w1, b1, g1, be1, eps)
    atten = jax.nn.sigmoid(f)
    return _conv_bn_relu_ref(f * atten, w2, b2, g2, be2, eps)


if __name__ == "__main__":
    key = jax.random.PRNGKey(0)
    N, C_in, H, W = 2, 4, 16, 16
    C_out, K = 8, 3

    ks = jax.random.split(key, 5)
    x = jax.random.normal(ks[0], (N, C_in, H, W), jnp.float32)

    # Conv2d default init: U(-1/sqrt(fan_in), 1/sqrt(fan_in)); BN default: gamma=1, beta=0.
    fan1 = C_in * K * K
    bnd1 = 1.0 / (fan1 ** 0.5)
    w1 = jax.random.uniform(ks[1], (C_out, C_in, K, K), jnp.float32, -bnd1, bnd1)
    b1 = jax.random.uniform(ks[2], (C_out,), jnp.float32, -bnd1, bnd1)
    fan2 = C_out * K * K
    bnd2 = 1.0 / (fan2 ** 0.5)
    w2 = jax.random.uniform(ks[3], (C_out, C_out, K, K), jnp.float32, -bnd2, bnd2)
    b2 = jax.random.uniform(ks[4], (C_out,), jnp.float32, -bnd2, bnd2)
    gamma1 = jnp.ones((C_out,), jnp.float32)
    beta1 = jnp.zeros((C_out,), jnp.float32)
    gamma2 = jnp.ones((C_out,), jnp.float32)
    beta2 = jnp.zeros((C_out,), jnp.float32)

    ref = _reference(x, w1, b1, gamma1, beta1, w2, b2, gamma2, beta2, 1e-5)

    # f32 compute path: validates the kernel structure / BN math exactly.
    out_f32 = jax.block_until_ready(conv2d_with_sigmoid(
        x, w1, b1, gamma1, beta1, w2, b2, gamma2, beta2,
        compute_dtype=jnp.float32))
    assert out_f32.shape == ref.shape == (N, C_out, H, W)
    err32 = float(jnp.max(jnp.abs(out_f32 - ref)))
    assert err32 < 5e-3, f"f32 mismatch vs reference: max abs err = {err32}"

    # Default bf16 path (bf16 MXU operands + bf16 HBM intermediates, f32
    # accumulation/statistics): error scales with ~2^-9 x the dynamic range through
    # two convs and two BN normalizations, so allow a few e-2 vs the f32 reference.
    out = jax.block_until_ready(conv2d_with_sigmoid(
        x, w1, b1, gamma1, beta1, w2, b2, gamma2, beta2))
    assert out.shape == ref.shape
    err16 = float(jnp.max(jnp.abs(out - ref)))
    assert err16 < 8e-2, f"bf16 mismatch vs reference: max abs err = {err16}"

    print("KERNEL_OK")
</pallas_src>

<mosaic_0001>
module attributes {stable_mosaic.version = 11 : i64} {
  func.func @_conv1_stats_kernel(%arg0: i32, %arg1: memref<1x288x36xf32, #tpu.memory_space<vmem>>, %arg2: memref<36x128xf32, #tpu.memory_space<vmem>>, %arg3: memref<1x288x128xf32, #tpu.memory_space<vmem>>, %arg4: memref<1x1x128xf32, #tpu.memory_space<vmem>>, %arg5: memref<1x1x128xf32, #tpu.memory_space<vmem>>) attributes {dimension_semantics = [#tpu.dimension_semantics<parallel>], iteration_bounds = array<i64: 2>, scalar_prefetch = 0 : i64, scratch_operands = 0 : i64, tpu.core_type = #tpu.core_type<tc>, window_params = [{transform_indices = @transform_0, window_bounds = array<i64: 1, 288, 36>}, {pipeline_mode = #tpu.pipeline_mode<synchronous>, transform_indices = @transform_1, window_bounds = array<i64: 36, 128>}, {transform_indices = @transform_2, window_bounds = array<i64: 1, 288, 128>}, {transform_indices = @transform_3, window_bounds = array<i64: 1, 1, 128>}, {transform_indices = @transform_4, window_bounds = array<i64: 1, 1, 128>}]} {
    %c0 = arith.constant 0 : index
    %c0_0 = arith.constant 0 : index
    %c0_1 = arith.constant 0 : index
    %0 = vector.load %arg1[%c0, %c0_0, %c0_1] : memref<1x288x36xf32, #tpu.memory_space<vmem>>, vector<1x288x36xf32>
    %1 = vector.shape_cast %0 : vector<1x288x36xf32> to vector<288x36xf32>
    %c0_2 = arith.constant 0 : index
    %c0_3 = arith.constant 0 : index
    %2 = vector.load %arg2[%c0_2, %c0_3] : memref<36x128xf32, #tpu.memory_space<vmem>>, vector<36x128xf32>
    %cst = arith.constant dense<0.000000e+00> : vector<288x128xf32>
    %3 = tpu.matmul %1, %2, %cst {dimension_numbers = #tpu.dot_dimension_numbers<[1], [0], [0], [1], [0, 0, 1, 1], [], []>} : vector<288x36xf32>, vector<36x128xf32>, vector<288x128xf32> -> vector<288x128xf32>
    %c0_4 = arith.constant 0 : index
    %c0_5 = arith.constant 0 : index
    %c0_6 = arith.constant 0 : index
    %4 = vector.load %arg3[%c0_4, %c0_5, %c0_6] : memref<1x288x128xf32, #tpu.memory_space<vmem>>, vector<1x288x128xf32>
    %5 = vector.shape_cast %4 : vector<1x288x128xf32> to vector<288x128xf32>
    %6 = vector.shape_cast %3 : vector<288x128xf32> to vector<1x288x128xf32>
    tpu.vector_store %arg3[%c0_4, %c0_5, %c0_6], %6 {strides = array<i32>} : memref<1x288x128xf32, #tpu.memory_space<vmem>>, vector<1x288x128xf32>,
    %7 = tpu.iota {dimensions = array<i32: 0>} : vector<288x1xi32>
    %c18_i32 = arith.constant 18 : i32
    %c0_i32 = arith.constant 0 : i32
    %8 = arith.cmpi eq, %c18_i32, %c0_i32 : i32
    %c1_i32 = arith.constant 1 : i32
    %9 = arith.select %8, %c1_i32, %c18_i32 : i32
    %10 = vector.broadcast %9 : i32 to vector<288x1xi32>
    %11 = arith.remsi %7, %10 : vector<288x1xi32>
    %c0_i32_7 = arith.constant 0 : i32
    %12 = vector.broadcast %c0_i32_7 : i32 to vector<288x1xi32>
    %13 = arith.cmpi ne, %11, %12 : vector<288x1xi32>
    %c0_i32_8 = arith.constant 0 : i32
    %14 = vector.broadcast %c0_i32_8 : i32 to vector<288x1xi32>
    %15 = arith.cmpi slt, %11, %14 : vector<288x1xi32>
    %c0_i32_9 = arith.constant 0 : i32
    %16 = arith.cmpi slt, %9, %c0_i32_9 : i32
    %17 = vector.broadcast %16 : i1 to vector<288x1xi1>
    %18 = vector.broadcast %17 : vector<288x1xi1> to vector<288x1xi1>
    %19 = arith.xori %15, %18 : vector<288x1xi1>
    %20 = arith.andi %19, %13 : vector<288x1xi1>
    %21 = vector.broadcast %9 : i32 to vector<288x1xi32>
    %22 = arith.addi %11, %21 : vector<288x1xi32>
    %23 = arith.select %20, %22, %11 : vector<288x1xi1>, vector<288x1xi32>
    %c16_i32 = arith.constant 16 : i32
    %24 = vector.broadcast %c16_i32 : i32 to vector<288x1xi32>
    %25 = arith.cmpi slt, %23, %24 : vector<288x1xi32>
    %cst_10 = arith.constant 0.000000e+00 : f32
    %26 = vector.shape_cast %25 : vector<288x1xi1> to vector<288x1xi1>
    %27 = vector.broadcast %26 : vector<288x1xi1> to vector<288x128xi1>
    %28 = vector.broadcast %cst_10 : f32 to vector<288x128xf32>
    %29 = arith.select %27, %3, %28 : vector<288x128xi1>, vector<288x128xf32>
    %cst_11 = arith.constant dense<0.000000e+00> : vector<128xf32>
    %30 = vector.multi_reduction <add>, %29, %cst_11 [0] : vector<288x128xf32> to vector<128xf32>
    %31 = vector.shape_cast %30 : vector<128xf32> to vector<1x128xf32>
    %cst_12 = arith.constant 3.906250e-03 : f32
    %32 = vector.broadcast %cst_12 : f32 to vector<1x128xf32>
    %33 = arith.mulf %31, %32 : vector<1x128xf32>
    %34 = vector.broadcast %33 : vector<1x128xf32> to vector<288x128xf32>
    %35 = arith.subf %3, %34 : vector<288x128xf32>
    %cst_13 = arith.constant 0.000000e+00 : f32
    %36 = vector.shape_cast %25 : vector<288x1xi1> to vector<288x1xi1>
    %37 = vector.broadcast %36 : vector<288x1xi1> to vector<288x128xi1>
    %38 = vector.broadcast %cst_13 : f32 to vector<288x128xf32>
    %39 = arith.select %37, %35, %38 : vector<288x128xi1>, vector<288x128xf32>
    %c0_14 = arith.constant 0 : index
    %c0_15 = arith.constant 0 : index
    %c0_16 = arith.constant 0 : index
    %40 = vector.load %arg4[%c0_14, %c0_15, %c0_16] : memref<1x1x128xf32, #tpu.memory_space<vmem>>, vector<1x1x128xf32>
    %41 = vector.shape_cast %40 : vector<1x1x128xf32> to vector<1x128xf32>
    %42 = vector.shape_cast %31 : vector<1x128xf32> to vector<1x1x128xf32>
    tpu.vector_store %arg4[%c0_14, %c0_15, %c0_16], %42 {strides = array<i32>} : memref<1x1x128xf32, #tpu.memory_space<vmem>>, vector<1x1x128xf32>,
    %43 = arith.mulf %39, %39 : vector<288x128xf32>
    %cst_17 = arith.constant dense<0.000000e+00> : vector<128xf32>
    %44 = vector.multi_reduction <add>, %43, %cst_17 [0] : vector<288x128xf32> to vector<128xf32>
    %45 = vector.shape_cast %44 : vector<128xf32> to vector<1x128xf32>
    %c0_18 = arith.constant 0 : index
    %c0_19 = arith.constant 0 : index
    %c0_20 = arith.constant 0 : index
    %46 = vector.load %arg5[%c0_18, %c0_19, %c0_20] : memref<1x1x128xf32, #tpu.memory_space<vmem>>, vector<1x1x128xf32>
    %47 = vector.shape_cast %46 : vector<1x1x128xf32> to vector<1x128xf32>
    %48 = vector.shape_cast %45 : vector<1x128xf32> to vector<1x1x128xf32>
    tpu.vector_store %arg5[%c0_18, %c0_19, %c0_20], %48 {strides = array<i32>} : memref<1x1x128xf32, #tpu.memory_space<vmem>>, vector<1x1x128xf32>,
    return
  }
  func.func @transform_0(%arg0: i32) -> (i32, i32, i32) {
    %c0_i32 = arith.constant 0 : i32
    %c0_i32_0 = arith.constant 0 : i32
    %c0_i32_1 = arith.constant 0 : i32
    return %arg0, %c0_i32, %c0_i32_0 : i32, i32, i32
  }
  func.func @transform_1(%arg0: i32) -> (i32, i32) {
    %c0_i32 = arith.constant 0 : i32
    %c0_i32_0 = arith.constant 0 : i32
    %c0_i32_1 = arith.constant 0 : i32
    return %c0_i32, %c0_i32_0 : i32, i32
  }
  func.func @transform_2(%arg0: i32) -> (i32, i32, i32) {
    %c0_i32 = arith.constant 0 : i32
    %c0_i32_0 = arith.constant 0 : i32
    %c0_i32_1 = arith.constant 0 : i32
    return %arg0, %c0_i32, %c0_i32_0 : i32, i32, i32
  }
  func.func @transform_3(%arg0: i32) -> (i32, i32, i32) {
    %c0_i32 = arith.constant 0 : i32
    %c0_i32_0 = arith.constant 0 : i32
    %c0_i32_1 = arith.constant 0 : i32
    return %arg0, %c0_i32, %c0_i32_0 : i32, i32, i32
  }
  func.func @transform_4(%arg0: i32) -> (i32, i32, i32) {
    %c0_i32 = arith.constant 0 : i32
    %c0_i32_0 = arith.constant 0 : i32
    %c0_i32_1 = arith.constant 0 : i32
    return %arg0, %c0_i32, %c0_i32_0 : i32, i32, i32
  }
}

module attributes {stable_mosaic.version = 11 : i64} {
  func.func @_silu_conv2_stats_kernel(%arg0: i32, %arg1: memref<1x288x128xf32, #tpu.memory_space<vmem>>, %arg2: memref<1x128xf32, #tpu.memory_space<vmem>>, %arg3: memref<1x128xf32, #tpu.memory_space<vmem>>, %arg4: memref<9x128x128xf32, #tpu.memory_space<vmem>>, %arg5: memref<1x288x128xf32, #tpu.memory_space<vmem>>, %arg6: memref<1x1x128xf32, #tpu.memory_space<vmem>>, %arg7: memref<1x1x128xf32, #tpu.memory_space<vmem>>, %arg8: memref<352x128xf32, #tpu.memory_space<vmem>>) attributes {dimension_semantics = [#tpu.dimension_semantics<parallel>], iteration_bounds = array<i64: 2>, scalar_prefetch = 0 : i64, scratch_operands = 1 : i64, tpu.core_type = #tpu.core_type<tc>, window_params = [{transform_indices = @transform_0, window_bounds = array<i64: 1, 288, 128>}, {pipeline_mode = #tpu.pipeline_mode<synchronous>, transform_indices = @transform_1, window_bounds = array<i64: 1, 128>}, {pipeline_mode = #tpu.pipeline_mode<synchronous>, transform_indices = @transform_2, window_bounds = array<i64: 1, 128>}, {pipeline_mode = #tpu.pipeline_mode<synchronous>, transform_indices = @transform_3, window_bounds = array<i64: 9, 128, 128>}, {transform_indices = @transform_4, window_bounds = array<i64: 1, 288, 128>}, {transform_indices = @transform_5, window_bounds = array<i64: 1, 1, 128>}, {transform_indices = @transform_6, window_bounds = array<i64: 1, 1, 128>}]} {
    %c0 = arith.constant 0 : index
    %c0_0 = arith.constant 0 : index
    %c0_1 = arith.constant 0 : index
    %0 = vector.load %arg1[%c0, %c0_0, %c0_1] : memref<1x288x128xf32, #tpu.memory_space<vmem>>, vector<1x288x128xf32>
    %1 = vector.shape_cast %0 : vector<1x288x128xf32> to vector<288x128xf32>
    %c0_2 = arith.constant 0 : index
    %c0_3 = arith.constant 0 : index
    %2 = vector.load %arg2[%c0_2, %c0_3] : memref<1x128xf32, #tpu.memory_space<vmem>>, vector<1x128xf32>
    %3 = vector.broadcast %2 : vector<1x128xf32> to vector<288x128xf32>
    %4 = arith.mulf %1, %3 : vector<288x128xf32>
    %c0_4 = arith.constant 0 : index
    %c0_5 = arith.constant 0 : index
    %5 = vector.load %arg3[%c0_4, %c0_5] : memref<1x128xf32, #tpu.memory_space<vmem>>, vector<1x128xf32>
    %6 = vector.broadcast %5 : vector<1x128xf32> to vector<288x128xf32>
    %7 = arith.addf %4, %6 : vector<288x128xf32>
    %cst = arith.constant 0.000000e+00 : f32
    %8 = vector.broadcast %cst : f32 to vector<288x128xf32>
    %9 = arith.maximumf %7, %8 : vector<288x128xf32>
    %10 = arith.negf %9 : vector<288x128xf32>
    %11 = math.exp %10 : vector<288x128xf32>
    %cst_6 = arith.constant 1.000000e+00 : f32
    %12 = vector.broadcast %cst_6 : f32 to vector<288x128xf32>
    %13 = arith.addf %12, %11 : vector<288x128xf32>
    %14 = arith.divf %12, %13 : vector<288x128xf32>
    %15 = arith.mulf %9, %14 : vector<288x128xf32>
    %16 = tpu.iota {dimensions = array<i32: 0>} : vector<288x1xi32>
    %c18_i32 = arith.constant 18 : i32
    %c0_i32 = arith.constant 0 : i32
    %17 = arith.cmpi eq, %c18_i32, %c0_i32 : i32
    %c1_i32 = arith.constant 1 : i32
    %18 = arith.select %17, %c1_i32, %c18_i32 : i32
    %19 = vector.broadcast %18 : i32 to vector<288x1xi32>
    %20 = arith.remsi %16, %19 : vector<288x1xi32>
    %c0_i32_7 = arith.constant 0 : i32
    %21 = vector.broadcast %c0_i32_7 : i32 to vector<288x1xi32>
    %22 = arith.cmpi ne, %20, %21 : vector<288x1xi32>
    %c0_i32_8 = arith.constant 0 : i32
    %23 = vector.broadcast %c0_i32_8 : i32 to vector<288x1xi32>
    %24 = arith.cmpi slt, %20, %23 : vector<288x1xi32>
    %c0_i32_9 = arith.constant 0 : i32
    %25 = arith.cmpi slt, %18, %c0_i32_9 : i32
    %26 = vector.broadcast %25 : i1 to vector<288x1xi1>
    %27 = vector.broadcast %26 : vector<288x1xi1> to vector<288x1xi1>
    %28 = arith.xori %24, %27 : vector<288x1xi1>
    %29 = arith.andi %28, %22 : vector<288x1xi1>
    %30 = vector.broadcast %18 : i32 to vector<288x1xi32>
    %31 = arith.addi %20, %30 : vector<288x1xi32>
    %32 = arith.select %29, %31, %20 : vector<288x1xi1>, vector<288x1xi32>
    %c16_i32 = arith.constant 16 : i32
    %33 = vector.broadcast %c16_i32 : i32 to vector<288x1xi32>
    %34 = arith.cmpi slt, %32, %33 : vector<288x1xi32>
    %cst_10 = arith.constant 0.000000e+00 : f32
    %35 = vector.shape_cast %34 : vector<288x1xi1> to vector<288x1xi1>
    %36 = vector.broadcast %35 : vector<288x1xi1> to vector<288x128xi1>
    %37 = vector.broadcast %cst_10 : f32 to vector<288x128xf32>
    %38 = arith.select %36, %15, %37 : vector<288x128xi1>, vector<288x128xf32>
    %cst_11 = arith.constant 0.000000e+00 : f32
    %39 = vector.broadcast %cst_11 : f32 to vector<32x128xf32>
    %c0_12 = arith.constant 0 : index
    %c0_13 = arith.constant 0 : index
    %40 = vector.load %arg8[%c0_12, %c0_13] : memref<352x128xf32, #tpu.memory_space<vmem>>, vector<32x128xf32>
    tpu.vector_store %arg8[%c0_12, %c0_13], %39 {strides = array<i32>} : memref<352x128xf32, #tpu.memory_space<vmem>>, vector<32x128xf32>,
    %cst_14 = arith.constant 0.000000e+00 : f32
    %41 = vector.broadcast %cst_14 : f32 to vector<32x128xf32>
    %c320 = arith.constant 320 : index
    %c0_15 = arith.constant 0 : index
    %42 = vector.load %arg8[%c320, %c0_15] : memref<352x128xf32, #tpu.memory_space<vmem>>, vector<32x128xf32>
    tpu.vector_store %arg8[%c320, %c0_15], %41 {strides = array<i32>} : memref<352x128xf32, #tpu.memory_space<vmem>>, vector<32x128xf32>,
    %c32 = arith.constant 32 : index
    %c0_16 = arith.constant 0 : index
    %43 = vector.load %arg8[%c32, %c0_16] : memref<352x128xf32, #tpu.memory_space<vmem>>, vector<288x128xf32>
    tpu.vector_store %arg8[%c32, %c0_16], %38 {strides = array<i32>} : memref<352x128xf32, #tpu.memory_space<vmem>>, vector<288x128xf32>,
    %cst_17 = arith.constant 0.000000e+00 : f32
    %44 = vector.broadcast %cst_17 : f32 to vector<288x128xf32>
    %c13 = arith.constant 13 : index
    %c0_18 = arith.constant 0 : index
    %45 = vector.load %arg8[%c13, %c0_18] : memref<352x128xf32, #tpu.memory_space<vmem>>, vector<288x128xf32>
    %c0_19 = arith.constant 0 : index
    %c0_20 = arith.constant 0 : index
    %c0_21 = arith.constant 0 : index
    %46 = vector.load %arg4[%c0_19, %c0_20, %c0_21] : memref<9x128x128xf32, #tpu.memory_space<vmem>>, vector<1x128x128xf32>
    %47 = vector.shape_cast %46 : vector<1x128x128xf32> to vector<128x128xf32>
    %cst_22 = arith.constant dense<0.000000e+00> : vector<288x128xf32>
    %48 = tpu.matmul %45, %47, %cst_22 {dimension_numbers = #tpu.dot_dimension_numbers<[1], [0], [0], [1], [0, 0, 1, 1], [], []>} : vector<288x128xf32>, vector<128x128xf32>, vector<288x128xf32> -> vector<288x128xf32>
    %49 = arith.addf %44, %48 : vector<288x128xf32>
    %c14 = arith.constant 14 : index
    %c0_23 = arith.constant 0 : index
    %50 = vector.load %arg8[%c14, %c0_23] : memref<352x128xf32, #tpu.memory_space<vmem>>, vector<288x128xf32>
    %c1 = arith.constant 1 : index
    %c0_24 = arith.constant 0 : index
    %c0_25 = arith.constant 0 : index
    %51 = vector.load %arg4[%c1, %c0_24, %c0_25] : memref<9x128x128xf32, #tpu.memory_space<vmem>>, vector<1x128x128xf32>
    %52 = vector.shape_cast %51 : vector<1x128x128xf32> to vector<128x128xf32>
    %cst_26 = arith.constant dense<0.000000e+00> : vector<288x128xf32>
    %53 = tpu.matmul %50, %52, %cst_26 {dimension_numbers = #tpu.dot_dimension_numbers<[1], [0], [0], [1], [0, 0, 1, 1], [], []>} : vector<288x128xf32>, vector<128x128xf32>, vector<288x128xf32> -> vector<288x128xf32>
    %54 = arith.addf %49, %53 : vector<288x128xf32>
    %c15 = arith.constant 15 : index
    %c0_27 = arith.constant 0 : index
    %55 = vector.load %arg8[%c15, %c0_27] : memref<352x128xf32, #tpu.memory_space<vmem>>, vector<288x128xf32>
    %c2 = arith.constant 2 : index
    %c0_28 = arith.constant 0 : index
    %c0_29 = arith.constant 0 : index
    %56 = vector.load %arg4[%c2, %c0_28, %c0_29] : memref<9x128x128xf32, #tpu.memory_space<vmem>>, vector<1x128x128xf32>
    %57 = vector.shape_cast %56 : vector<1x128x128xf32> to vector<128x128xf32>
    %cst_30 = arith.constant dense<0.000000e+00> : vector<288x128xf32>
    %58 = tpu.matmul %55, %57, %cst_30 {dimension_numbers = #tpu.dot_dimension_numbers<[1], [0], [0], [1], [0, 0, 1, 1], [], []>} : vector<288x128xf32>, vector<128x128xf32>, vector<288x128xf32> -> vector<288x128xf32>
    %59 = arith.addf %54, %58 : vector<288x128xf32>
    %c31 = arith.constant 31 : index
    %c0_31 = arith.constant 0 : index
    %60 = vector.load %arg8[%c31, %c0_31] : memref<352x128xf32, #tpu.memory_space<vmem>>, vector<288x128xf32>
    %c3 = arith.constant 3 : index
    %c0_32 = arith.constant 0 : index
    %c0_33 = arith.constant 0 : index
    %61 = vector.load %arg4[%c3, %c0_32, %c0_33] : memref<9x128x128xf32, #tpu.memory_space<vmem>>, vector<1x128x128xf32>
    %62 = vector.shape_cast %61 : vector<1x128x128xf32> to vector<128x128xf32>
    %cst_34 = arith.constant dense<0.000000e+00> : vector<288x128xf32>
    %63 = tpu.matmul %60, %62, %cst_34 {dimension_numbers = #tpu.dot_dimension_numbers<[1], [0], [0], [1], [0, 0, 1, 1], [], []>} : vector<288x128xf32>, vector<128x128xf32>, vector<288x128xf32> -> vector<288x128xf32>
    %64 = arith.addf %59, %63 : vector<288x128xf32>
    %c32_35 = arith.constant 32 : index
    %c0_36 = arith.constant 0 : index
    %65 = vector.load %arg8[%c32_35, %c0_36] : memref<352x128xf32, #tpu.memory_space<vmem>>, vector<288x128xf32>
    %c4 = arith.constant 4 : index
    %c0_37 = arith.constant 0 : index
    %c0_38 = arith.constant 0 : index
    %66 = vector.load %arg4[%c4, %c0_37, %c0_38] : memref<9x128x128xf32, #tpu.memory_space<vmem>>, vector<1x128x128xf32>
    %67 = vector.shape_cast %66 : vector<1x128x128xf32> to vector<128x128xf32>
    %cst_39 = arith.constant dense<0.000000e+00> : vector<288x128xf32>
    %68 = tpu.matmul %65, %67, %cst_39 {dimension_numbers = #tpu.dot_dimension_numbers<[1], [0], [0], [1], [0, 0, 1, 1], [], []>} : vector<288x128xf32>, vector<128x128xf32>, vector<288x128xf32> -> vector<288x128xf32>
    %69 = arith.addf %64, %68 : vector<288x128xf32>
    %c33 = arith.constant 33 : index
    %c0_40 = arith.constant 0 : index
    %70 = vector.load %arg8[%c33, %c0_40] : memref<352x128xf32, #tpu.memory_space<vmem>>, vector<288x128xf32>
    %c5 = arith.constant 5 : index
    %c0_41 = arith.constant 0 : index
    %c0_42 = arith.constant 0 : index
    %71 = vector.load %arg4[%c5, %c0_41, %c0_42] : memref<9x128x128xf32, #tpu.memory_space<vmem>>, vector<1x128x128xf32>
    %72 = vector.shape_cast %71 : vector<1x128x128xf32> to vector<128x128xf32>
    %cst_43 = arith.constant dense<0.000000e+00> : vector<288x128xf32>
    %73 = tpu.matmul %70, %72, %cst_43 {dimension_numbers = #tpu.dot_dimension_numbers<[1], [0], [0], [1], [0, 0, 1, 1], [], []>} : vector<288x128xf32>, vector<128x128xf32>, vector<288x128xf32> -> vector<288x128xf32>
    %74 = arith.addf %69, %73 : vector<288x128xf32>
    %c49 = arith.constant 49 : index
    %c0_44 = arith.constant 0 : index
    %75 = vector.load %arg8[%c49, %c0_44] : memref<352x128xf32, #tpu.memory_space<vmem>>, vector<288x128xf32>
    %c6 = arith.constant 6 : index
    %c0_45 = arith.constant 0 : index
    %c0_46 = arith.constant 0 : index
    %76 = vector.load %arg4[%c6, %c0_45, %c0_46] : memref<9x128x128xf32, #tpu.memory_space<vmem>>, vector<1x128x128xf32>
    %77 = vector.shape_cast %76 : vector<1x128x128xf32> to vector<128x128xf32>
    %cst_47 = arith.constant dense<0.000000e+00> : vector<288x128xf32>
    %78 = tpu.matmul %75, %77, %cst_47 {dimension_numbers = #tpu.dot_dimension_numbers<[1], [0], [0], [1], [0, 0, 1, 1], [], []>} : vector<288x128xf32>, vector<128x128xf32>, vector<288x128xf32> -> vector<288x128xf32>
    %79 = arith.addf %74, %78 : vector<288x128xf32>
    %c50 = arith.constant 50 : index
    %c0_48 = arith.constant 0 : index
    %80 = vector.load %arg8[%c50, %c0_48] : memref<352x128xf32, #tpu.memory_space<vmem>>, vector<288x128xf32>
    %c7 = arith.constant 7 : index
    %c0_49 = arith.constant 0 : index
    %c0_50 = arith.constant 0 : index
    %81 = vector.load %arg4[%c7, %c0_49, %c0_50] : memref<9x128x128xf32, #tpu.memory_space<vmem>>, vector<1x128x128xf32>
    %82 = vector.shape_cast %81 : vector<1x128x128xf32> to vector<128x128xf32>
    %cst_51 = arith.constant dense<0.000000e+00> : vector<288x128xf32>
    %83 = tpu.matmul %80, %82, %cst_51 {dimension_numbers = #tpu.dot_dimension_numbers<[1], [0], [0], [1], [0, 0, 1, 1], [], []>} : vector<288x128xf32>, vector<128x128xf32>, vector<288x128xf32> -> vector<288x128xf32>
    %84 = arith.addf %79, %83 : vector<288x128xf32>
    %c51 = arith.constant 51 : index
    %c0_52 = arith.constant 0 : index
    %85 = vector.load %arg8[%c51, %c0_52] : memref<352x128xf32, #tpu.memory_space<vmem>>, vector<288x128xf32>
    %c8 = arith.constant 8 : index
    %c0_53 = arith.constant 0 : index
    %c0_54 = arith.constant 0 : index
    %86 = vector.load %arg4[%c8, %c0_53, %c0_54] : memref<9x128x128xf32, #tpu.memory_space<vmem>>, vector<1x128x128xf32>
    %87 = vector.shape_cast %86 : vector<1x128x128xf32> to vector<128x128xf32>
    %cst_55 = arith.constant dense<0.000000e+00> : vector<288x128xf32>
    %88 = tpu.matmul %85, %87, %cst_55 {dimension_numbers = #tpu.dot_dimension_numbers<[1], [0], [0], [1], [0, 0, 1, 1], [], []>} : vector<288x128xf32>, vector<128x128xf32>, vector<288x128xf32> -> vector<288x128xf32>
    %89 = arith.addf %84, %88 : vector<288x128xf32>
    %c0_56 = arith.constant 0 : index
    %c0_57 = arith.constant 0 : index
    %c0_58 = arith.constant 0 : index
    %90 = vector.load %arg5[%c0_56, %c0_57, %c0_58] : memref<1x288x128xf32, #tpu.memory_space<vmem>>, vector<1x288x128xf32>
    %91 = vector.shape_cast %90 : vector<1x288x128xf32> to vector<288x128xf32>
    %92 = vector.shape_cast %89 : vector<288x128xf32> to vector<1x288x128xf32>
    tpu.vector_store %arg5[%c0_56, %c0_57, %c0_58], %92 {strides = array<i32>} : memref<1x288x128xf32, #tpu.memory_space<vmem>>, vector<1x288x128xf32>,
    %cst_59 = arith.constant 0.000000e+00 : f32
    %93 = vector.shape_cast %34 : vector<288x1xi1> to vector<288x1xi1>
    %94 = vector.broadcast %93 : vector<288x1xi1> to vector<288x128xi1>
    %95 = vector.broadcast %cst_59 : f32 to vector<288x128xf32>
    %96 = arith.select %94, %89, %95 : vector<288x128xi1>, vector<288x128xf32>
    %cst_60 = arith.constant dense<0.000000e+00> : vector<128xf32>
    %97 = vector.multi_reduction <add>, %96, %cst_60 [0] : vector<288x128xf32> to vector<128xf32>
    %98 = vector.shape_cast %97 : vector<128xf32> to vector<1x128xf32>
    %cst_61 = arith.constant 3.906250e-03 : f32
    %99 = vector.broadcast %cst_61 : f32 to vector<1x128xf32>
    %100 = arith.mulf %98, %99 : vector<1x128xf32>
    %101 = vector.broadcast %100 : vector<1x128xf32> to vector<288x128xf32>
    %102 = arith.subf %89, %101 : vector<288x128xf32>
    %cst_62 = arith.constant 0.000000e+00 : f32
    %103 = vector.shape_cast %34 : vector<288x1xi1> to vector<288x1xi1>
    %104 = vector.broadcast %103 : vector<288x1xi1> to vector<288x128xi1>
    %105 = vector.broadcast %cst_62 : f32 to vector<288x128xf32>
    %106 = arith.select %104, %102, %105 : vector<288x128xi1>, vector<288x128xf32>
    %c0_63 = arith.constant 0 : index
    %c0_64 = arith.constant 0 : index
    %c0_65 = arith.constant 0 : index
    %107 = vector.load %arg6[%c0_63, %c0_64, %c0_65] : memref<1x1x128xf32, #tpu.memory_space<vmem>>, vector<1x1x128xf32>
    %108 = vector.shape_cast %107 : vector<1x1x128xf32> to vector<1x128xf32>
    %109 = vector.shape_cast %98 : vector<1x128xf32> to vector<1x1x128xf32>
    tpu.vector_store %arg6[%c0_63, %c0_64, %c0_65], %109 {strides = array<i32>} : memref<1x1x128xf32, #tpu.memory_space<vmem>>, vector<1x1x128xf32>,
    %110 = arith.mulf %106, %106 : vector<288x128xf32>
    %cst_66 = arith.constant dense<0.000000e+00> : vector<128xf32>
    %111 = vector.multi_reduction <add>, %110, %cst_66 [0] : vector<288x128xf32> to vector<128xf32>
    %112 = vector.shape_cast %111 : vector<128xf32> to vector<1x128xf32>
    %c0_67 = arith.constant 0 : index
    %c0_68 = arith.constant 0 : index
    %c0_69 = arith.constant 0 : index
    %113 = vector.load %arg7[%c0_67, %c0_68, %c0_69] : memref<1x1x128xf32, #tpu.memory_space<vmem>>, vector<1x1x128xf32>
    %114 = vector.shape_cast %113 : vector<1x1x128xf32> to vector<1x128xf32>
    %115 = vector.shape_cast %112 : vector<1x128xf32> to vector<1x1x128xf32>
    tpu.vector_store %arg7[%c0_67, %c0_68, %c0_69], %115 {strides = array<i32>} : memref<1x1x128xf32, #tpu.memory_space<vmem>>, vector<1x1x128xf32>,
    return
  }
  func.func @transform_0(%arg0: i32) -> (i32, i32, i32) {
    %c0_i32 = arith.constant 0 : i32
    %c0_i32_0 = arith.constant 0 : i32
    %c0_i32_1 = arith.constant 0 : i32
    return %arg0, %c0_i32, %c0_i32_0 : i32, i32, i32
  }
  func.func @transform_1(%arg0: i32) -> (i32, i32) {
    %c0_i32 = arith.constant 0 : i32
    %c0_i32_0 = arith.constant 0 : i32
    %c0_i32_1 = arith.constant 0 : i32
    return %c0_i32, %c0_i32_0 : i32, i32
  }
  func.func @transform_2(%arg0: i32) -> (i32, i32) {
    %c0_i32 = arith.constant 0 : i32
    %c0_i32_0 = arith.constant 0 : i32
    %c0_i32_1 = arith.constant 0 : i32
    return %c0_i32, %c0_i32_0 : i32, i32
  }
  func.func @transform_3(%arg0: i32) -> (i32, i32, i32) {
    %c0_i32 = arith.constant 0 : i32
    %c0_i32_0 = arith.constant 0 : i32
    %c0_i32_1 = arith.constant 0 : i32
    %c0_i32_2 = arith.constant 0 : i32
    return %c0_i32, %c0_i32_0, %c0_i32_1 : i32, i32, i32
  }
  func.func @transform_4(%arg0: i32) -> (i32, i32, i32) {
    %c0_i32 = arith.constant 0 : i32
    %c0_i32_0 = arith.constant 0 : i32
    %c0_i32_1 = arith.constant 0 : i32
    return %arg0, %c0_i32, %c0_i32_0 : i32, i32, i32
  }
  func.func @transform_5(%arg0: i32) -> (i32, i32, i32) {
    %c0_i32 = arith.constant 0 : i32
    %c0_i32_0 = arith.constant 0 : i32
    %c0_i32_1 = arith.constant 0 : i32
    return %arg0, %c0_i32, %c0_i32_0 : i32, i32, i32
  }
  func.func @transform_6(%arg0: i32) -> (i32, i32, i32) {
    %c0_i32 = arith.constant 0 : i32
    %c0_i32_0 = arith.constant 0 : i32
    %c0_i32_1 = arith.constant 0 : i32
    return %arg0, %c0_i32, %c0_i32_0 : i32, i32, i32
  }
}

</mosaic_0001>

<bundles_post_ra>
// kernel: conv2d_with_sigmoid.2
= control target key start
LH: loop header
LB: loop body
LE: loop exit
PB: predicated region body
PF: predicated region fallthrough
CT: control target
= control target key end

     0   :  { %s1984_s15 = smov 0   ;;  %s3671_s0 = inlined_call_operand.vmem [shape: f32[2,288,36], index: 0, kind: input, shape index: {}]   ;;  %s3672_s1 = inlined_call_operand.vmem [shape: f32[36,128], index: 1, kind: input, shape index: {}]   ;;  %s3673_s2 = inlined_call_operand.vmem [shape: f32[2,288,128], index: 2, kind: output, shape index: {0}]   ;;  %s3674_s3 = inlined_call_operand.vmem [shape: f32[2,1,128], index: 3, kind: output, shape index: {1}]   ;;  %s3675_s4 = inlined_call_operand.vmem [shape: f32[2,1,128], index: 4, kind: output, shape index: {2}]  }
   0x1 LB: > { %s1705_s16 = sadd.s32 4294967295, %s1957_s15   ;;  %p1709_p0 = scmp.ge.s32.totalorder %s1957_s15, 1  ;;  %s1957_s15 = sphi %s1984_s15, %s15_s15  }
   0x2   : > { %p167_p1 = scmp.lt.s32.totalorder %s1957_s15, 3 }
   0x4   : > { %p168_p2 = pnand %p1709_p0, %p167_p1 }
   0x6   : > { %171 = sbr.rel (%p168_p2) target bundleno = 428 (0x1ac), region = 28 }
   0xd   : > { %v251_v0 = vld [vmem:[%s3672_s1] sm:$0xff]  ;;  %v252_v1 = vld [vmem:[%s3672_s1 + $0x8] sm:$0xff]  ;;  %v253_v2 = vld [vmem:[%s3672_s1 + $0x10] sm:$0xff]  ;;  %p199_p3 = scmp.lt.s32.totalorder %s1705_s16, 1  ;;  %vm256_vm0 = vcmask 293888   ;;  %vm365_vm1 = vcmask 1043456   ;;  %v650_v43 = vlaneseq }
   0xe   : > { %v1856_v3 = vpack.c.bf16 %v252_v1, %v251_v0  ;;  %v254_v4 = vld [vmem:[%s3672_s1 + $0x18] sm:$0xff]  ;;  %v255_v6 = vld [vmem:[%s3672_s1 + $0x20] sm:$0xf] }
   0xf   : > { %v1860_v5 = vpack.c.bf16 %v254_v4, %v253_v2  ;;  %s4042_s16 = smov (!%p199_p3, %s1705_s16), 1  ;;  %v2089_v44 = vshrl.u32 %v650_v43, 7 }
  0x10   : > { %1857 = vmatprep.subr.bf16.mxu0 %v1856_v3  ;;  %1864 = vmatprep.subr.bf16.mxu1 %v1856_v3  ;;  %s1870_s25 = smul.u32 288, %s4042_s16  ;;  %s211_s10 = scalar_lea.vmem %s3674_s3, %s4042_s16 }
  0x11   : > { %1859 = vmatpush3.bf16.msra.mxu0 %v1856_v3  ;;  %1867 = vmatpush3.bf16.msra.mxu1 %v1856_v3  ;;  %v652_v45 = vadd.s32 8, %v2089_v44  ;;  %v2096_v48 = vmul.u32.u64.low 3817748708, %v2089_v44  ;;  %v2097_v49 = vmul.u32.u64.high 3817748708, %v2089_v44, %v2096_v48  ;;  %v654_v50 = vadd.s32 24, %v2089_v44  ;;  %s214_s13 = scalar_lea.vmem %s3675_s4, %s4042_s16 }
  0x12   : > { %1861 = vmatprep.subr.bf16.mxu0 %v1860_v5  ;;  %1865 = vmatprep.subr.bf16.mxu1 %v1860_v5  ;;  %s2015_s30 = scalar_lea.vmem %s3671_s0, %s1870_s25  ;;  %v653_v51 = vadd.s32 16, %v2089_v44  ;;  %v656_v58 = vadd.s32 40, %v2089_v44  ;;  %v2111_v60 = vadd.s32 32, %v2089_v44  ;;  %v2114_v62 = vadd.s32 56, %v2089_v44  ;;  %s2522_s7 = scalar_lea.vmem %s3673_s2, %s1870_s25 }
  0x13   : > { %v215_v7 = vld [vmem:[%s2015_s30] sm:$0xff]  ;;  %v216_v8 = vld [vmem:[%s2015_s30 + $0x8] sm:$0xff]  ;;  %v217_v9 = vld [vmem:[%s2015_s30 + $0x10] sm:$0xff]  ;;  %v2092_v46 = vmul.u32.u64.low 3817748708, %v652_v45  ;;  %v2093_v47 = vmul.u32.u64.high 3817748708, %v652_v45, %v2092_v46  ;;  %v693_v55 = vshrl.u32 %v2097_v49, 4 }
  0x14   : > { %1802 = vmatprep.mubr.msk.f32.mxu0 %vm256_vm0, %v215_v7  ;;  %v233_v10 = vld [vmem:[%s2015_s30 + $0x90] sm:$0xff]  ;;  %v234_v11 = vld [vmem:[%s2015_s30 + $0x98] sm:$0xff]  ;;  %v235_v12 = vld [vmem:[%s2015_s30 + $0xa0] sm:$0xff]  ;;  %v2102_v53 = vmul.u32.u64.low 3817748708, %v654_v50  ;;  %v2103_v54 = vmul.u32.u64.high 3817748708, %v654_v50, %v2102_v53  ;;  %v2120_v1 = vadd.s32 48, %v2089_v44 }
  0x15   : > { %1863 = vmatpush3.bf16.msra.mxu0 %v1860_v5  ;;  %1868 = vmatpush3.bf16.msra.mxu1 %v1860_v5  ;;  %v218_v13 = vld [vmem:[%s2015_s30 + $0x18] sm:$0xff]  ;;  %v219_v14 = vld [vmem:[%s2015_s30 + $0x20] sm:$0xff]  ;;  %v236_v15 = vld [vmem:[%s2015_s30 + $0xa8] sm:$0xff]  ;;  %v704_v52 = vshrl.u32 %v2093_v47, 4  ;;  %v2106_v56 = vmul.u32.u64.low 3817748708, %v653_v51  ;;  %v2107_v57 = vmul.u32.u64.high 3817748708, %v653_v51, %v2106_v56 }
  0x16   : > { %1800 = vmatprep.subr.msk.mxu0 %vm365_vm1, %v255_v6  ;;  %1866 = vmatprep.subr.msk.mxu1 %vm365_vm1, %v255_v6  ;;  %v237_v16 = vld [vmem:[%s2015_s30 + $0xb0] sm:$0xff]  ;;  %v220_v17 = vld [vmem:[%s2015_s30 + $0x28] sm:$0xff]  ;;  %v238_v19 = vld [vmem:[%s2015_s30 + $0xb8] sm:$0xff]  ;;  %v694_v61 = vmul.u32 18, %v693_v55  ;;  %v2116_v63 = vmul.u32.u64.low 3817748708, %v656_v58  ;;  %v2117_v0 = vmul.u32.u64.high 3817748708, %v656_v58, %v2116_v63 }
  0x17   : > { %1829 = vmatprep.mubr.msk.f32.mxu1 %vm256_vm0, %v233_v10  ;;  %v221_v18 = vld [vmem:[%s2015_s30 + $0x30] sm:$0xff]  ;;  %v239_v20 = vld [vmem:[%s2015_s30 + $0xc0] sm:$0xff]  ;;  %v222_v21 = vld [vmem:[%s2015_s30 + $0x38] sm:$0xff]  ;;  %v705_v59 = vmul.u32 18, %v704_v52  ;;  %v2125_v3 = vmul.u32.u64.low 3817748708, %v2111_v60  ;;  %v2126_v4 = vmul.u32.u64.high 3817748708, %v2111_v60, %v2125_v3 }
  0x18   : > { %v223_v22 = vld [vmem:[%s2015_s30 + $0x40] sm:$0xff]  ;;  %v240_v23 = vld [vmem:[%s2015_s30 + $0xc8] sm:$0xff]  ;;  %v241_v24 = vld [vmem:[%s2015_s30 + $0xd0] sm:$0xff]  ;;  %v726_v5 = vshrl.u32 %v2103_v54, 4  ;;  %v2133_v7 = vsub.s32 %v2089_v44, %v694_v61  ;;  %v2250_v63 = vadd.s32 112, %v2089_v44 }
  0x19   : > { %1801 = vmatpush3.msk.msra.mxu0 %vm365_vm1, %v255_v6  ;;  %1869 = vmatpush3.msk.msra.mxu1 %vm365_vm1, %v255_v6  ;;  %v224_v25 = vld [vmem:[%s2015_s30 + $0x48] sm:$0xff]  ;;  %v225_v26 = vld [vmem:[%s2015_s30 + $0x50] sm:$0xff]  ;;  %v242_v27 = vld [vmem:[%s2015_s30 + $0xd8] sm:$0xff]  ;;  %v2122_v2 = vsub.s32 %v652_v45, %v705_v59  ;;  %v2130_v6 = vadd.s32 72, %v2089_v44  ;;  %v2215_v45 = vadd.s32 120, %v2089_v44 }
  0x1a   : > { %1803 = vmatmul.mubr.msk.f32.vlgmr.msra.gmra.mrb[0].mxu0 %vm256_vm0, %v216_v8  ;;  %1830 = vmatmul.mubr.msk.f32.vlgmr.msra.gmra.mrb[0].mxu1 %vm256_vm0, %v234_v11  ;;  %v243_v28 = vld [vmem:[%s2015_s30 + $0xe0] sm:$0xff]  ;;  %v226_v29 = vld [vmem:[%s2015_s30 + $0x58] sm:$0xff]  ;;  %v244_v31 = vld [vmem:[%s2015_s30 + $0xe8] sm:$0xff]  ;;  %v715_v8 = vshrl.u32 %v2107_v57, 4  ;;  %vm1083_vm4 = vcmp.ne.s32.totalorder %v2133_v7, 0  ;;  %vm1119_vm5 = vcmp.lt.s32.totalorder %v2133_v7, 0 }
  0x1b   : > { %1805 = vmatprep.mubr.msk.f32.mxu0 %vm256_vm0, %v217_v9  ;;  %1832 = vmatprep.mubr.msk.f32.mxu1 %vm256_vm0, %v235_v12  ;;  %v227_v30 = vld [vmem:[%s2015_s30 + $0x60] sm:$0xff]  ;;  %v245_v32 = vld [vmem:[%s2015_s30 + $0xf0] sm:$0xff]  ;;  %v228_v33 = vld [vmem:[%s2015_s30 + $0x68] sm:$0xff]  ;;  %v2137_v9 = vmul.u32.u64.low 3817748708, %v2114_v62  ;;  %v2138_v10 = vmul.u32.u64.high 3817748708, %v2114_v62, %v2137_v9  ;;  %vm1084_vm2 = vcmp.ne.s32.totalorder %v2122_v2, 0 }
  0x1c   : > { %v229_v34 = vld [vmem:[%s2015_s30 + $0x70] sm:$0xff]  ;;  %v246_v35 = vld [vmem:[%s2015_s30 + $0xf8] sm:$0xff]  ;;  %v247_v36 = vld [vmem:[%s2015_s30 + $0x100] sm:$0xff]  ;;  %v2141_v11 = vmul.u32.u64.low 3817748708, %v2120_v1  ;;  %v2142_v12 = vmul.u32.u64.high 3817748708, %v2120_v1, %v2141_v11  ;;  %vm1120_vm3 = vcmp.lt.s32.totalorder %v2122_v2, 0 }
  0x1d   : > { %v230_v37 = vld [vmem:[%s2015_s30 + $0x78] sm:$0xff]  ;;  %v231_v38 = vld [vmem:[%s2015_s30 + $0x80] sm:$0xff]  ;;  %v248_v39 = vld [vmem:[%s2015_s30 + $0x108] sm:$0xff] }
  0x1e   : > { %1806 = vmatmul.mubr.msk.f32.gmra.mrb[2].mxu0 %vm256_vm0, %v218_v13  ;;  %1833 = vmatmul.mubr.msk.f32.gmra.mrb[2].mxu1 %vm256_vm0, %v236_v15  ;;  %v249_v40 = vld [vmem:[%s2015_s30 + $0x110] sm:$0xff]  ;;  %v232_v41 = vld [vmem:[%s2015_s30 + $0x88] sm:$0xff]  ;;  %v250_v42 = vld [vmem:[%s2015_s30 + $0x118] sm:$0xff]  ;;  %v2147_v13 = vadd.s32 64, %v2089_v44 }
  0x1f   : > { %1808 = vmatprep.mubr.msk.f32.mxu0 %vm256_vm0, %v219_v14  ;;  %1835 = vmatprep.mubr.msk.f32.mxu1 %vm256_vm0, %v237_v16  ;;  %v727_v14 = vmul.u32 18, %v726_v5  ;;  %v2150_v15 = vmul.u32.u64.low 3817748708, %v2130_v6  ;;  %v2151_v16 = vmul.u32.u64.high 3817748708, %v2130_v6, %v2150_v15  ;;  %vm2162_vm6 = vmand %vm1120_vm3, %vm1084_vm2  ;;  %v2266_v5 = vadd.s32 136, %v2089_v44 }
  0x20   : > { %vm2174_vm7 = vmand %vm1119_vm5, %vm1083_vm4 }
  0x22   : > { %1809 = vmatmul.mubr.msk.f32.gmra.mrb[4].mxu0 %vm256_vm0, %v220_v17  ;;  %1836 = vmatmul.mubr.msk.f32.gmra.mrb[4].mxu1 %vm256_vm0, %v238_v19  ;;  %v2154_v17 = vadd.s32 88, %v2089_v44  ;;  %v2159_v19 = vadd.s32 18, %v2122_v2 }
  0x23   : > { %1811 = vmatprep.mubr.msk.f32.mxu0 %vm256_vm0, %v221_v18  ;;  %1838 = vmatprep.mubr.msk.f32.mxu1 %vm256_vm0, %v239_v20  ;;  %v716_v18 = vmul.u32 18, %v715_v8  ;;  %v748_v20 = vshrl.u32 %v2117_v0, 4 }
  0x26   : > { %1812 = vmatmul.mubr.msk.f32.gmra.mrb[6].mxu0 %vm256_vm0, %v222_v21  ;;  %1839 = vmatmul.mubr.msk.f32.gmra.mrb[6].mxu1 %vm256_vm0, %v240_v23  ;;  %v737_v23 = vshrl.u32 %v2126_v4, 4 }
  0x27   : > { %1814 = vmatprep.mubr.msk.f32.mxu0 %vm256_vm0, %v223_v22  ;;  %1841 = vmatprep.mubr.msk.f32.mxu1 %vm256_vm0, %v241_v24  ;;  %v2167_v22 = vadd.s32 18, %v2133_v7 }
  0x2a   : > { %1815 = vmatmul.mubr.msk.f32.gmra.mrb[8].mxu0 %vm256_vm0, %v224_v25  ;;  %1842 = vmatmul.mubr.msk.f32.gmra.mrb[8].mxu1 %vm256_vm0, %v242_v27  ;;  %v2171_v24 = vmul.u32.u64.low 3817748708, %v2147_v13  ;;  %v2172_v25 = vmul.u32.u64.high 3817748708, %v2147_v13, %v2171_v24  ;;  %v2178_v27 = vsub.s32 %v654_v50, %v727_v14  ;;  %v2287_v14 = vadd.s32 128, %v2089_v44 }
  0x2b   : > { %1817 = vmatprep.mubr.msk.f32.mxu0 %vm256_vm0, %v225_v26  ;;  %1844 = vmatprep.mubr.msk.f32.mxu1 %vm256_vm0, %v243_v28 }
  0x2c   : > { %vm1086_vm8 = vcmp.ne.s32.totalorder %v2178_v27, 0  ;;  %vm1122_vm9 = vcmp.lt.s32.totalorder %v2178_v27, 0  ;;  %v781_v52 = vshrl.u32 %v2172_v25, 4 }
  0x2d   : > { %vm2225_vm12 = vmand %vm1122_vm9, %vm1086_vm8 }
  0x2e   : > { %1818 = vmatmul.mubr.msk.f32.gmra.mrb[10].mxu0 %vm256_vm0, %v226_v29  ;;  %1845 = vmatmul.mubr.msk.f32.gmra.mrb[10].mxu1 %vm256_vm0, %v244_v31  ;;  %v2181_v28 = vmul.u32.u64.low 3817748708, %v2154_v17  ;;  %v2182_v29 = vmul.u32.u64.high 3817748708, %v2154_v17, %v2181_v28  ;;  %v770_v31 = vshrl.u32 %v2138_v10, 4  ;;  %v782_v4 = vmul.u32 18, %v781_v52 }
  0x2f   : > { %1820 = vmatprep.mubr.msk.f32.mxu0 %vm256_vm0, %v227_v30  ;;  %1847 = vmatprep.mubr.msk.f32.mxu1 %vm256_vm0, %v245_v32  ;;  %v2184_v30 = vsub.s32 %v653_v51, %v716_v18  ;;  %v749_v32 = vmul.u32 18, %v748_v20 }
  0x30   : > { %v771_v43 = vmul.u32 18, %v770_v31  ;;  %v814_v56 = vshrl.u32 %v2182_v29, 4 }
  0x31   : > { %vm1085_vm10 = vcmp.ne.s32.totalorder %v2184_v30, 0  ;;  %vm1121_vm11 = vcmp.lt.s32.totalorder %v2184_v30, 0  ;;  %v2219_v46 = vsub.s32 %v656_v58, %v749_v32 }
  0x32   : > { %1821 = vmatmul.mubr.msk.f32.gmra.mrb[12].mxu0 %vm256_vm0, %v228_v33  ;;  %1848 = vmatmul.mubr.msk.f32.gmra.mrb[12].mxu1 %vm256_vm0, %v246_v35  ;;  %v759_v33 = vshrl.u32 %v2142_v12, 4  ;;  %v1228_v35 = vsel %vm2162_vm6, %v2159_v19, %v2122_v2  ;;  %v2243_v59 = vsub.s32 %v2114_v62, %v771_v43  ;;  %v815_v10 = vmul.u32 18, %v814_v56  ;;  %vm2309_vm8 = vmand %vm1121_vm11, %vm1085_vm10 }
  0x33   : > { %1823 = vmatprep.mubr.msk.f32.mxu0 %vm256_vm0, %v229_v34  ;;  %1850 = vmatprep.mubr.msk.f32.mxu1 %vm256_vm0, %v247_v36  ;;  %v2189_v34 = vadd.s32 80, %v2089_v44  ;;  %v1227_v36 = vsel %vm2174_vm7, %v2167_v22, %v2133_v7  ;;  %vm1088_vm13 = vcmp.ne.s32.totalorder %v2219_v46, 0  ;;  %vm1124_vm14 = vcmp.lt.s32.totalorder %v2219_v46, 0 }
  0x34   : > { %v760_v47 = vmul.u32 18, %v759_v33  ;;  %v2262_v62 = vadd.s32 18, %v2219_v46  ;;  %vm1090_vm1 = vcmp.ne.s32.totalorder %v2243_v59, 0  ;;  %vm1126_vm2 = vcmp.lt.s32.totalorder %v2243_v59, 0  ;;  %vm2323_vm5 = vmand %vm1124_vm14, %vm1088_vm13 }
  0x35   : > { %v2222_v48 = vmul.u32.u64.low 3817748708, %v2189_v34  ;;  %v2223_v49 = vmul.u32.u64.high 3817748708, %v2189_v34, %v2222_v48  ;;  %v2282_v12 = vadd.s32 18, %v2243_v59  ;;  %v2332_v33 = vadd.s32 152, %v2089_v44  ;;  %vm2354_vm14 = vmand %vm1126_vm2, %vm1090_vm1 }
  0x36   : > { %1824 = vmatmul.mubr.msk.f32.gmra.mrb[14].mxu0 %vm256_vm0, %v230_v37  ;;  %1851 = vmatmul.mubr.msk.f32.gmra.mrb[14].mxu1 %vm256_vm0, %v248_v39  ;;  %v738_v37 = vmul.u32 18, %v737_v23  ;;  %v792_v39 = vshrl.u32 %v2151_v16, 4  ;;  %v2259_v3 = vsub.s32 %v2120_v1, %v760_v47  ;;  %v2302_v23 = vsub.s32 %v2154_v17, %v815_v10 }
  0x37   : > { %1826 = vmatprep.mubr.msk.f32.mxu0 %vm256_vm0, %v231_v38  ;;  %1853 = vmatprep.mubr.msk.f32.mxu1 %vm256_vm0, %v249_v40  ;;  %v2200_v38 = vadd.s32 104, %v2089_v44  ;;  %v2206_v40 = vadd.s32 96, %v2089_v44  ;;  %v2278_v1 = vmul.u32.u64.low 3817748708, %v2250_v63  ;;  %v2279_v11 = vmul.u32.u64.high 3817748708, %v2250_v63, %v2278_v1 }
  0x38   : > { %v2230_v51 = vsub.s32 %v2111_v60, %v738_v37  ;;  %v793_v55 = vmul.u32 18, %v792_v39  ;;  %v2246_v61 = vmul.u32.u64.low 3817748708, %v2215_v45  ;;  %v2247_v60 = vmul.u32.u64.high 3817748708, %v2215_v45, %v2246_v61 }
  0x39   : > { %v2234_v53 = vmul.u32.u64.low 3817748708, %v2200_v38  ;;  %v2235_v54 = vmul.u32.u64.high 3817748708, %v2200_v38, %v2234_v53  ;;  %v2239_v57 = vmul.u32.u64.low 3817748708, %v2206_v40  ;;  %v2240_v58 = vmul.u32.u64.high 3817748708, %v2206_v40, %v2239_v57 }
  0x3a   : > { %1827 = vmatmul.mubr.msk.f32.gmra.mrb[16].mxu0 %vm256_vm0, %v232_v41  ;;  %1854 = vmatmul.mubr.msk.f32.gmra.mrb[16].mxu1 %vm256_vm0, %v250_v42  ;;  %v2209_v41 = vadd.s32 18, %v2178_v27  ;;  %v2212_v42 = vadd.s32 18, %v2184_v30  ;;  %vm1087_vm15 = vcmp.ne.s32.totalorder %v2230_v51, 0  ;;  %vm1123_vm0 = vcmp.lt.s32.totalorder %v2230_v51, 0 }
  0x3b   : > { %v2270_v8 = vadd.s32 18, %v2230_v51  ;;  %v2273_v9 = vsub.s32 %v2130_v6, %v793_v55  ;;  %vm1089_vm3 = vcmp.ne.s32.totalorder %v2259_v3, 0  ;;  %vm1125_vm4 = vcmp.lt.s32.totalorder %v2259_v3, 0  ;;  %vm2341_vm10 = vmand %vm1123_vm0, %vm1087_vm15 }
  0x3c   : > { %v1230_v0 = vsel %vm2225_vm12, %v2209_v41, %v2178_v27  ;;  %v2290_v6 = vsub.s32 %v2147_v13, %v782_v4  ;;  %v803_v15 = vshrl.u32 %v2223_v49, 4  ;;  %v2298_v20 = vadd.s32 18, %v2259_v3  ;;  %vm2367_vm13 = vmand %vm1125_vm4, %vm1089_vm3 }
  0x3d   : > { %v2294_v16 = vmul.u32.u64.low 3817748708, %v2266_v5  ;;  %v2295_v18 = vmul.u32.u64.high 3817748708, %v2266_v5, %v2294_v16  ;;  %v836_v24 = vshrl.u32 %v2235_v54, 4  ;;  %vm1128_vm9 = vcmp.lt.s32.totalorder %v2273_v9, 0 }
  0x3e   : > { %v2315_v25 = vadd.s32 18, %v2273_v9  ;;  %v825_v28 = vshrl.u32 %v2240_v58, 4  ;;  %v858_v17 = vshrl.u32 %v2247_v60, 4  ;;  %v2335_v37 = vadd.s32 144, %v2089_v44 }
  0x3f   : > { %v2328_v31 = vmul.u32.u64.low 3817748708, %v2287_v14  ;;  %v2329_v32 = vmul.u32.u64.high 3817748708, %v2287_v14, %v2328_v31  ;;  %vm1091_vm11 = vcmp.ne.s32.totalorder %v2290_v6, 0  ;;  %v804_v43 = vmul.u32 18, %v803_v15 }
  0x40   : > { %v2348_v47 = vadd.s32 168, %v2089_v44  ;;  %v2359_v49 = vadd.s32 18, %v2290_v6  ;;  %vm1094_vm15 = vcmp.ne.s32.totalorder %v2302_v23, 0  ;;  %vm1130_vm0 = vcmp.lt.s32.totalorder %v2302_v23, 0 }
  0x41   : > { %v837_v52 = vmul.u32 18, %v836_v24  ;;  %v2372_v54 = vadd.s32 18, %v2302_v23  ;;  %v826_v55 = vmul.u32 18, %v825_v28  ;;  %v847_v57 = vshrl.u32 %v2279_v11, 4  ;;  %vm2432_vm6 = vmand %vm1130_vm0, %vm1094_vm15 }
  0x42   : > { %v859_v56 = vmul.u32 18, %v858_v17  ;;  %vm3755_vm1 = vcmp.ne.s32.totalorder %v2273_v9, 0  ;;  %v2384_v61 = vmul.u32.u64.low 3817748708, %v2332_v33  ;;  %v2385_v60 = vmul.u32.u64.high 3817748708, %v2332_v33, %v2384_v61 }
  0x43   : > { %vm2379_vm2 = vmand %vm1128_vm9, %vm3755_vm1  ;;  %v2388_v4 = vmul.u32.u64.low 3817748708, %v2335_v37  ;;  %v2389_v10 = vmul.u32.u64.high 3817748708, %v2335_v37, %v2388_v4  ;;  %vm3758_vm3 = vcmp.lt.s32.totalorder %v2290_v6, 0  ;;  %v2400_v11 = vsub.s32 %v2189_v34, %v804_v43 }
  0x44   : > { %vm2395_vm4 = vmand %vm3758_vm3, %vm1091_vm11  ;;  %v880_v15 = vshrl.u32 %v2295_v18, 4  ;;  %v2404_v16 = vmul.u32.u64.low 3817748708, %v2348_v47  ;;  %v2405_v24 = vmul.u32.u64.high 3817748708, %v2348_v47, %v2404_v16  ;;  %vm2412_vm9 = vcmp.lt.s32.totalorder %v1228_v35, 16 }
  0x45   : > { %v3761_v28 = vmov 0  ;;  %v1229_v34 = vsel %vm2309_vm8, %v2212_v42, %v2184_v30  ;;  %v1232_v18 = vsel %vm2323_vm5, %v2262_v62, %v2219_v46  ;;  %v1231_v21 = vsel %vm2341_vm10, %v2270_v8, %v2230_v51 }
  0x46   : > { %v3762_v28 = vsel %vm2412_vm9, 4294967295, %v3761_v28  ;;  %v3764_v2 = vmov 0  ;;  %v2437_v19 = vsub.s32 %v2200_v38, %v837_v52  ;;  %vm2444_vm5 = vcmp.lt.s32.totalorder %v1227_v36, 16 }
  0x47   : > { %3763 = vst [vmem:[#allocation2_spill] sm:$0xff] %v3762_v28  ;;  %v3765_v2 = vsel %vm2432_vm6, 4294967295, %v3764_v2  ;;  %v3766_v30 = vmov 0  ;;  %v1234_v35 = vsel %vm2354_vm14, %v2282_v12, %v2243_v59  ;;  %v1233_v38 = vsel %vm2367_vm13, %v2298_v20, %v2259_v3 }
  0x48   : > { %v3767_v30 = vsel %vm2444_vm5, 4294967295, %v3766_v30  ;;  %v2457_v42 = vsub.s32 %v2206_v40, %v826_v55  ;;  %v848_v26 = vmul.u32 18, %v847_v57  ;;  %v1236_v7 = vsel %vm2379_vm2, %v2315_v25, %v2273_v9 }
  0x49   : > { %3768 = vst [vmem:[#allocation3_spill] sm:$0xff] %v3767_v30  ;;  %v1235_v22 = vsel %vm2395_vm4, %v2359_v49, %v2290_v6  ;;  %v2468_v36 = vsub.s32 %v2215_v45, %v859_v56  ;;  %v869_v46 = vshrl.u32 %v2329_v32, 4  ;;  %vm1093_vm7 = vcmp.ne.s32.totalorder %v2400_v11, 0 }
  0x4a   : > { %vm1129_vm8 = vcmp.lt.s32.totalorder %v2400_v11, 0  ;;  %v881_v51 = vmul.u32 18, %v880_v15  ;;  %v2478_v62 = vadd.s32 18, %v2400_v11  ;;  %vm1096_vm10 = vcmp.ne.s32.totalorder %v2437_v19, 0 }
  0x4b   : > { %v2482_v45 = vadd.s32 160, %v2089_v44  ;;  %v2485_v8 = vadd.s32 184, %v2089_v44  ;;  %vm2487_vm11 = vcmp.lt.s32.totalorder %v1229_v34, 16  ;;  %v3769_v13 = vmov 0  ;;  %vm2528_vm12 = vmand %vm1129_vm8, %vm1093_vm7 }
  0x4c   : > { %v3770_v13 = vsel %vm2487_vm11, 4294967295, %v3769_v13  ;;  %v2493_v17 = vadd.s32 18, %v2437_v19  ;;  %v2497_v29 = vsub.s32 %v2250_v63, %v848_v26  ;;  %v870_v31 = vmul.u32 18, %v869_v46 }
  0x4d   : > { %3771 = vst [vmem:[#allocation4_spill] sm:$0xff] %v3770_v13  ;;  %v902_v32 = vshrl.u32 %v2385_v60, 4  ;;  %vm2507_vm15 = vcmp.lt.s32.totalorder %v1230_v0, 16  ;;  %v3772_v39 = vmov 0  ;;  %v2513_v63 = vsub.s32 %v2266_v5, %v881_v51 }
  0x4e   : > { %v3773_v39 = vsel %vm2507_vm15, 4294967295, %v3772_v39  ;;  %v891_v43 = vshrl.u32 %v2389_v10, 4  ;;  %v924_v52 = vshrl.u32 %v2405_v24, 4  ;;  %vm2540_vm0 = vcmp.lt.s32.totalorder %v1231_v21, 16 }
  0x4f   : > { %3774 = vst [vmem:[#allocation5_spill] sm:$0xff] %v3773_v39  ;;  %v2533_v41 = vmul.u32.u64.low 3817748708, %v2482_v45  ;;  %v2534_v50 = vmul.u32.u64.high 3817748708, %v2482_v45, %v2533_v41  ;;  %v2537_v0 = vmul.u32.u64.low 3817748708, %v2485_v8  ;;  %v2538_v5 = vmul.u32.u64.high 3817748708, %v2485_v8, %v2537_v0 }
  0x50   : > { %v3777_v55 = vmov 0  ;;  %vm3780_vm3 = vcmp.lt.s32.totalorder %v2437_v19, 0  ;;  %v2553_v57 = vadd.s32 18, %v2457_v42  ;;  %v2558_v61 = vadd.s32 176, %v2089_v44 }
  0x51   : > { %v3778_v55 = vsel %vm2540_vm0, 4294967295, %v3777_v55  ;;  %vm2548_vm7 = vmand %vm3780_vm3, %vm1096_vm10  ;;  %vm3783_vm6 = vcmp.ne.s32.totalorder %v2457_v42, 0  ;;  %vm3784_vm10 = vcmp.lt.s32.totalorder %v2457_v42, 0  ;;  %v2571_v10 = vadd.s32 18, %v2468_v36 }
  0x52   : > { %3779 = vst [vmem:[#allocation6_spill] sm:$0xff] %v3778_v55  ;;  %vm2566_vm3 = vmand %vm3784_vm10, %vm3783_vm6  ;;  %v2574_v15 = vadd.s32 18, %v2497_v29  ;;  %v2577_v16 = vsub.s32 %v2287_v14, %v870_v31  ;;  %v903_v24 = vmul.u32 18, %v902_v32  ;;  %vm2586_vm6 = vcmp.lt.s32.totalorder %v1232_v18, 16 }
  0x53   : > { %v3787_v26 = vmov 0  ;;  %vm3790_vm10 = vcmp.ne.s32.totalorder %v2468_v36, 0  ;;  %vm3791_vm1 = vcmp.lt.s32.totalorder %v2468_v36, 0  ;;  %vm1100_vm0 = vcmp.ne.s32.totalorder %v2513_v63, 0 }
  0x54   : > { %v3788_v26 = vsel %vm2586_vm6, 4294967295, %v3787_v26  ;;  %vm2594_vm8 = vmand %vm3791_vm1, %vm3790_vm10  ;;  %v892_v46 = vmul.u32 18, %v891_v43  ;;  %v1237_v51 = vsel %vm2528_vm12, %v2478_v62, %v2400_v11  ;;  %vm3794_vm1 = vcmp.ne.s32.totalorder %v2497_v29, 0 }
  0x55   : > { %3789 = vst [vmem:[#allocation7_spill] sm:$0xff] %v3788_v26  ;;  %vm3795_vm10 = vcmp.lt.s32.totalorder %v2497_v29, 0  ;;  %v925_v41 = vmul.u32 18, %v924_v52  ;;  %vm2628_vm12 = vcmp.lt.s32.totalorder %v1233_v38, 16  ;;  %v3798_v11 = vmov 0 }
  0x56   : > { %vm2617_vm2 = vmand %vm3795_vm10, %vm3794_vm1  ;;  %v3799_v11 = vsel %vm2628_vm12, 4294967295, %v3798_v11  ;;  %v2633_v62 = vadd.s32 18, %v2513_v63  ;;  %vm3801_vm13 = vcmp.lt.s32.totalorder %v2513_v63, 0  ;;  %v3802_v38 = vmov 0 }
  0x57   : > { %3800 = vst [vmem:[#allocation8_spill] sm:$0xff] %v3799_v11  ;;  %vm2657_vm1 = vmand %vm3801_vm13, %vm1100_vm0  ;;  %vm2678_vm0 = vcmp.lt.s32.totalorder %v1234_v35, 16  ;;  %v3804_v20 = vmov 0  ;;  %v2699_v48 = vsub.s32 %v2348_v47, %v925_v41  ;;  %v913_v35 = vshrl.u32 %v2534_v50, 4 }
  0x58   : > { %v3803_v38 = vsel %vm2657_vm1, 4294967295, %v3802_v38  ;;  %v3805_v20 = vsel %vm2678_vm0, 4294967295, %v3804_v20  ;;  %vm2708_vm14 = vcmp.lt.s32.totalorder %v1235_v22, 16  ;;  %v2724_v1 = vadd.s32 192, %v2089_v44 }
  0x59   : > { %3806 = vst [vmem:[#allocation9_spill] sm:$0xff] %v3805_v20  ;;  %vm2747_vm10 = vcmp.lt.s32.totalorder %v1236_v7, 16  ;;  %v914_v58 = vmul.u32 18, %v913_v35  ;;  %vm2762_vm13 = vcmp.lt.s32.totalorder %v1237_v51, 16  ;;  %v2781_v51 = vadd.s32 216, %v2089_v44 }
  0x5a   : > { %v2805_v26 = vadd.s32 208, %v2089_v44  ;;  %v3830_v28 = vmov 0  ;;  %v2924_v30 = vadd.s32 224, %v2089_v44  ;;  %v3851_v56 = vsel %vm2617_vm2, %v2574_v15, %v2497_v29 }
  0x5b   : > { %v2946_v32 = vadd.s32 232, %v2089_v44  ;;  %v3121_v47 = vadd.s32 264, %v2089_v44 }
  0xed   : > { %v2560_v60 = vpop.f32.mrb[0].mxu0  ;;  %v2621_v43 = vpop.f32.mrb[0].mxu1 }
  0xee   : > { %615 = vst [vmem:[%s2522_s7 + $0x8] sm:$0xff] %v2560_v60  ;;  %v1372_v34 = vsel %vm2412_vm9, %v2560_v60, 0.0  ;;  %v2584_v21 = vpop.f32.mrb[1].mxu0  ;;  %633 = vst [vmem:[%s2522_s7 + $0x98] sm:$0xff] %v2621_v43  ;;  %v2637_v0 = vpop.f32.mrb[1].mxu1  ;;  %vm3815_vm9 = vnez %v3778_v55 }
  0xef   : > { %614 = vst [vmem:[%s2522_s7] sm:$0xff] %v2584_v21  ;;  %v1371_v18 = vsel %vm2444_vm5, %v2584_v21, 0.0  ;;  %632 = vst [vmem:[%s2522_s7 + $0x90] sm:$0xff] %v2637_v0 }
  0xf0   : > { %v1407_v27 = vadd.f32 %v1372_v34, %v1371_v18  ;;  %v2640_v52 = vmul.u32.u64.low 3817748708, %v2558_v61  ;;  %v2641_v34 = vmul.u32.u64.high 3817748708, %v2558_v61, %v2640_v52  ;;  %v2662_v18 = vsub.s32 %v2332_v33, %v903_v24 }
  0xf1   : > { %v2643_v53 = vpop.f32.mrb[2].mxu0  ;;  %v2667_v52 = vadd.s32 200, %v2089_v44  ;;  %v2689_v24 = vsub.s32 %v2335_v37, %v892_v46  ;;  %v2696_v12 = vpop.f32.mrb[2].mxu1  ;;  %v946_v33 = vshrl.u32 %v2538_v5, 4  ;;  %v3807_v37 = vmov 0 }
  0xf2   : > { %617 = vst [vmem:[%s2522_s7 + $0x18] sm:$0xff] %v2643_v53  ;;  %v2671_v31 = vpop.f32.mrb[3].mxu0  ;;  %v3808_v37 = vsel %vm2708_vm14, 4294967295, %v3807_v37  ;;  %v2717_v46 = vadd.s32 18, %v2577_v16  ;;  %635 = vst [vmem:[%s2522_s7 + $0xa8] sm:$0xff] %v2696_v12  ;;  %v2721_v50 = vpop.f32.mrb[3].mxu1 }
  0xf3   : > { %616 = vst [vmem:[%s2522_s7 + $0x10] sm:$0xff] %v2671_v31  ;;  %v1373_v59 = vsel %vm2487_vm11, %v2671_v31, 0.0  ;;  %3809 = vst [vmem:[#allocation10_spill] sm:$0xff] %v3808_v37  ;;  %v1374_v6 = vsel %vm2507_vm15, %v2643_v53, 0.0  ;;  %v2735_v22 = vmul.u32.u64.low 3817748708, %v2667_v52  ;;  %v2736_v5 = vmul.u32.u64.high 3817748708, %v2667_v52, %v2735_v22 }
  0xf4   : > { %v1408_v3 = vadd.f32 %v1407_v27, %v1373_v59  ;;  %634 = vst [vmem:[%s2522_s7 + $0xa0] sm:$0xff] %v2721_v50  ;;  %v3812_v59 = vmov 0  ;;  %v947_v25 = vmul.u32 18, %v946_v33  ;;  %vm3819_vm11 = vcmp.ne.s32.totalorder %v2577_v16, 0 }
  0xf5   : > { %v2729_v49 = vpop.f32.mrb[4].mxu0  ;;  %v3813_v59 = vsel %vm2747_vm10, 4294967295, %v3812_v59  ;;  %v2760_v9 = vpop.f32.mrb[4].mxu1  ;;  %vm3820_vm15 = vcmp.lt.s32.totalorder %v2577_v16, 0  ;;  %v935_v33 = vshrl.u32 %v2641_v34, 4  ;;  %v2797_v34 = vadd.s32 18, %v2662_v18 }
  0xf6   : > { %3810 = vst [vmem:[#allocation11_spill] sm:$0xff] %v2729_v49  ;;  %619 = vst [vmem:[%s2522_s7 + $0x28] sm:$0xff] %v2729_v49  ;;  %v2740_v41 = vpop.f32.mrb[5].mxu0  ;;  %v1409_v27 = vadd.f32 %v1408_v3, %v1374_v6  ;;  %v3816_v6 = vmov 0  ;;  %v2777_v35 = vpop.f32.mrb[5].mxu1  ;;  %v2800_v40 = vadd.s32 18, %v2689_v24 }
  0xf7   : > { %3814 = vst [vmem:[#allocation12_spill] sm:$0xff] %v3813_v59  ;;  %618 = vst [vmem:[%s2522_s7 + $0x20] sm:$0xff] %v2740_v41  ;;  %v1375_v3 = vsel %vm3815_vm9, %v2740_v41, 0.0  ;;  %v3817_v6 = vsel %vm2762_vm13, 4294967295, %v3816_v6  ;;  %vm3834_vm9 = vcmp.lt.s32.totalorder %v2689_v24, 0  ;;  %v936_v22 = vmul.u32 18, %v935_v33 }
  0xf8   : > { %v1410_v7 = vadd.f32 %v1409_v27, %v1375_v3  ;;  %3818 = vst [vmem:[#allocation13_spill] sm:$0xff] %v3817_v6  ;;  %vm2770_vm4 = vmand %vm3820_vm15, %vm3819_vm11  ;;  %v1376_v27 = vsel %vm2586_vm6, %v2729_v49, 0.0  ;;  %vm3823_vm11 = vcmp.ne.s32.totalorder %v2662_v18, 0  ;;  %vm3824_vm15 = vcmp.lt.s32.totalorder %v2662_v18, 0 }
  0xf9   : > { %637 = vst [vmem:[%s2522_s7 + $0xb8] sm:$0xff] %v2760_v9  ;;  %v2786_v3 = vpop.f32.mrb[6].mxu0  ;;  %vm2792_vm5 = vmand %vm3824_vm15, %vm3823_vm11  ;;  %vm3828_vm11 = vnez %v3765_v2  ;;  %vm3833_vm6 = vcmp.ne.s32.totalorder %v2689_v24, 0  ;;  %v2829_v49 = vadd.s32 18, %v2699_v48  ;;  %v2858_v11 = vpop.f32.mrb[6].mxu1  ;;  %v2997_v59 = vadd.s32 240, %v2089_v44 }
  0xfa   : > { %636 = vst [vmem:[%s2522_s7 + $0xb0] sm:$0xff] %v2777_v35  ;;  %621 = vst [vmem:[%s2522_s7 + $0x38] sm:$0xff] %v2786_v3  ;;  %v2809_v55 = vpop.f32.mrb[7].mxu0  ;;  %v1411_v39 = vadd.f32 %v1410_v7, %v1376_v27  ;;  %v3829_v13 = vsel %vm3828_vm11, %v2372_v54, %v2302_v23  ;;  %v2832_v2 = vmul.u32.u64.low 3817748708, %v2724_v1  ;;  %v2833_v7 = vmul.u32.u64.high 3817748708, %v2724_v1, %v2832_v2 }
  0xfb   : > { %3827 = vst [vmem:[#allocation14_spill] sm:$0xff] %v2809_v55  ;;  %vm2816_vm15 = vcmp.lt.s32.totalorder %v3829_v13, 16  ;;  %vm2824_vm1 = vmand %vm3834_vm9, %vm3833_vm6  ;;  %v1377_v23 = vsel %vm2628_vm12, %v2809_v55, 0.0  ;;  %v1243_v54 = vsel %vm2770_vm4, %v2717_v46, %v2577_v16  ;;  %vm3837_vm9 = vcmp.ne.s32.totalorder %v2699_v48, 0 }
  0xfc   : > { %v3831_v28 = vsel %vm2816_vm15, 4294967295, %v3830_v28  ;;  %620 = vst [vmem:[%s2522_s7 + $0x30] sm:$0xff] %v2809_v55  ;;  %vm3838_vm6 = vcmp.lt.s32.totalorder %v2699_v48, 0  ;;  %v2853_v27 = vsub.s32 %v2482_v45, %v914_v58  ;;  %v2856_v2 = vsub.s32 %v2485_v8, %v947_v25  ;;  %639 = vst [vmem:[%s2522_s7 + $0xc8] sm:$0xff] %v2858_v11  ;;  %v2871_v45 = vpop.f32.mrb[7].mxu1 }
  0xfd   : > { %3832 = vst [vmem:[#allocation15_spill] sm:$0xff] %v3831_v28  ;;  %vm2848_vm11 = vmand %vm3838_vm6, %vm3837_vm9  ;;  %v1412_v55 = vadd.f32 %v1411_v39, %v1377_v23  ;;  %v3841_v16 = vsel %vm2566_vm3, %v2553_v57, %v2457_v42  ;;  %v3842_v46 = vmov 0  ;;  %v1378_v39 = vsel %vm2678_vm0, %v2786_v3, 0.0  ;;  %v2880_v4 = vpop.f32.mrb[8].mxu0 }
  0xfe   : > { %vm2865_vm4 = vcmp.lt.s32.totalorder %v3841_v16, 16  ;;  %v2874_v8 = vmul.u32.u64.low 3817748708, %v2781_v51  ;;  %v2875_v58 = vmul.u32.u64.high 3817748708, %v2781_v51, %v2874_v8  ;;  %3845 = vst [vmem:[#allocation17_spill] sm:$0xff] %v2880_v4  ;;  %v968_v42 = vshrl.u32 %v2736_v5, 4  ;;  %638 = vst [vmem:[%s2522_s7 + $0xc0] sm:$0xff] %v2871_v45 }
  0xff   : > { %v3843_v46 = vsel %vm2865_vm4, 4294967295, %v3842_v46  ;;  %v2886_v57 = vmul.u32.u64.low 3817748708, %v2805_v26  ;;  %v2887_v25 = vmul.u32.u64.high 3817748708, %v2805_v26, %v2886_v57  ;;  %623 = vst [vmem:[%s2522_s7 + $0x48] sm:$0xff] %v2880_v4  ;;  %v2891_v33 = vpop.f32.mrb[9].mxu0  ;;  %v1413_v23 = vadd.f32 %v1412_v55, %v1378_v39 }
 0x100   : > { %3844 = vst [vmem:[#allocation16_spill] sm:$0xff] %v3843_v46  ;;  %3846 = vst [vmem:[#allocation18_spill] sm:$0xff] %v2891_v33  ;;  %v3847_v16 = vsel %vm2548_vm7, %v2493_v17, %v2437_v19  ;;  %v3848_v8 = vmov 0  ;;  %v1245_v57 = vsel %vm2824_vm1, %v2800_v40, %v2689_v24  ;;  %v1379_v19 = vsel %vm2708_vm14, %v2891_v33, 0.0  ;;  %v2921_v17 = vpop.f32.mrb[8].mxu1 }
 0x101   : > { %vm2898_vm3 = vcmp.lt.s32.totalorder %v3847_v16, 16  ;;  %622 = vst [vmem:[%s2522_s7 + $0x40] sm:$0xff] %v2891_v33  ;;  %vm1103_vm7 = vcmp.ne.s32.totalorder %v2853_v27, 0  ;;  %v1414_v40 = vadd.f32 %v1413_v23, %v1379_v19  ;;  %vm2931_vm1 = vcmp.lt.s32.totalorder %v3851_v56, 16  ;;  %641 = vst [vmem:[%s2522_s7 + $0xd8] sm:$0xff] %v2921_v17  ;;  %v2943_v55 = vpop.f32.mrb[9].mxu1 }
 0x102   : > { %v3849_v8 = vsel %vm2898_vm3, 4294967295, %v3848_v8  ;;  %v3852_v24 = vmov 0  ;;  %v2936_v39 = vadd.s32 18, %v2853_v27  ;;  %v2939_v16 = vsub.s32 %v2558_v61, %v936_v22  ;;  %v2951_v15 = vpop.f32.mrb[10].mxu0  ;;  %640 = vst [vmem:[%s2522_s7 + $0xd0] sm:$0xff] %v2943_v55 }
 0x103   : > { %3850 = vst [vmem:[#allocation19_spill] sm:$0xff] %v3849_v8  ;;  %v3853_v24 = vsel %vm2931_vm1, 4294967295, %v3852_v24  ;;  %v1380_v29 = vsel %vm2747_vm10, %v2880_v4, 0.0  ;;  %3855 = vst [vmem:[#allocation21_spill] sm:$0xff] %v2951_v15  ;;  %v969_v61 = vmul.u32 18, %v968_v42  ;;  %v2959_v22 = vpop.f32.mrb[11].mxu0  ;;  %v3857_v19 = vsel %vm2594_vm8, %v2571_v10, %v2468_v36 }
 0x104   : > { %3854 = vst [vmem:[#allocation20_spill] sm:$0xff] %v3853_v24  ;;  %625 = vst [vmem:[%s2522_s7 + $0x58] sm:$0xff] %v2951_v15  ;;  %v1415_v23 = vadd.f32 %v1414_v40, %v1380_v29  ;;  %vm2966_vm9 = vcmp.lt.s32.totalorder %v3857_v19, 16  ;;  %v3858_v56 = vmov 0  ;;  %vm3861_vm6 = vcmp.lt.s32.totalorder %v2853_v27, 0  ;;  %v2990_v29 = vpop.f32.mrb[10].mxu1 }
 0x105   : > { %3856 = vst [vmem:[#allocation22_spill] sm:$0xff] %v2959_v22  ;;  %v3859_v56 = vsel %vm2966_vm9, 4294967295, %v3858_v56  ;;  %vm2974_vm2 = vmand %vm3861_vm6, %vm1103_vm7  ;;  %v2979_v40 = vadd.s32 18, %v2856_v2  ;;  %v957_v14 = vshrl.u32 %v2833_v7, 4  ;;  %v2983_v36 = vadd.s32 248, %v2089_v44 }
 0x106   : > { %3860 = vst [vmem:[#allocation23_spill] sm:$0xff] %v3859_v56  ;;  %624 = vst [vmem:[%s2522_s7 + $0x50] sm:$0xff] %v2959_v22  ;;  %v1381_v10 = vsel %vm2762_vm13, %v2959_v22, 0.0  ;;  %v2993_v19 = vmul.u32.u64.low 3817748708, %v2924_v30  ;;  %v2994_v5 = vmul.u32.u64.high 3817748708, %v2924_v30, %v2993_v19  ;;  %vm2999_vm8 = vcmp.lt.s32.totalorder %v1243_v54, 16 }
 0x107   : > { %v1416_v7 = vadd.f32 %v1415_v23, %v1381_v10  ;;  %v3864_v37 = vmov 0  ;;  %vm3866_vm7 = vcmp.ne.s32.totalorder %v2856_v2, 0  ;;  %vm3867_vm6 = vcmp.lt.s32.totalorder %v2856_v2, 0  ;;  %643 = vst [vmem:[%s2522_s7 + $0xe8] sm:$0xff] %v2990_v29  ;;  %v3016_v54 = vpop.f32.mrb[11].mxu1  ;;  %v3021_v10 = vpop.f32.mrb[12].mxu0 }
 0x108   : > { %v3865_v37 = vsel %vm2999_vm8, 4294967295, %v3864_v37  ;;  %vm3007_vm13 = vmand %vm3867_vm6, %vm3866_vm7  ;;  %vm1105_vm10 = vcmp.ne.s32.totalorder %v2939_v16, 0  ;;  %vm1141_vm14 = vcmp.lt.s32.totalorder %v2939_v16, 0  ;;  %v990_v19 = vshrl.u32 %v2875_v58, 4  ;;  %642 = vst [vmem:[%s2522_s7 + $0xe0] sm:$0xff] %v3016_v54  ;;  %v3035_v4 = vpop.f32.mrb[13].mxu0 }
 0x109   : > { %v1382_v23 = vsel %vm2816_vm15, %v2951_v15, 0.0  ;;  %v1247_v20 = vsel %vm2974_vm2, %v2936_v39, %v2853_v27  ;;  %v3028_v22 = vsub.s32 %v2667_v52, %v969_v61  ;;  %v979_v58 = vshrl.u32 %v2887_v25, 4  ;;  %627 = vst [vmem:[%s2522_s7 + $0x68] sm:$0xff] %v3021_v10  ;;  %3870 = vst [vmem:[#allocation24_spill] sm:$0xff] %v3035_v4  ;;  %v3090_v33 = vpop.f32.mrb[14].mxu0 }
 0x10a   : > { %v1417_v28 = vadd.f32 %v1416_v7, %v1382_v23  ;;  %vm3871_vm7 = vnez %v3803_v38  ;;  %v3873_v27 = vmov 0  ;;  %vm3046_vm2 = vcmp.lt.s32.totalorder %v1245_v57, 16  ;;  %626 = vst [vmem:[%s2522_s7 + $0x60] sm:$0xff] %v3035_v4  ;;  %v3074_v57 = vpop.f32.mrb[12].mxu1  ;;  %3881 = vst [vmem:[#allocation27_spill] sm:$0xff] %v3090_v33 }
 0x10b   : > { %v3872_v15 = vsel %vm3871_vm7, %v2633_v62, %v2513_v63  ;;  %v3876_v52 = vmov 0  ;;  %v3051_v25 = vadd.s32 18, %v2939_v16  ;;  %v1383_v63 = vsel %vm2865_vm4, %v3035_v4, 0.0  ;;  %vm3070_vm7 = vmand %vm1141_vm14, %vm1105_vm10  ;;  %645 = vst [vmem:[%s2522_s7 + $0xf8] sm:$0xff] %v3074_v57  ;;  %v3082_v62 = vpop.f32.mrb[13].mxu1 }
 0x10c   : > { %vm3042_vm6 = vcmp.lt.s32.totalorder %v3872_v15, 16  ;;  %v3877_v52 = vsel %vm3046_vm2, 4294967295, %v3876_v52  ;;  %v3054_v39 = vmul.u32.u64.low 3817748708, %v2946_v32  ;;  %v3055_v61 = vmul.u32.u64.high 3817748708, %v2946_v32, %v3054_v39  ;;  %644 = vst [vmem:[%s2522_s7 + $0xf0] sm:$0xff] %v3082_v62  ;;  %629 = vst [vmem:[%s2522_s7 + $0x78] sm:$0xff] %v3090_v33 }
 0x10d   : > { %v3874_v27 = vsel %vm3042_vm6, 4294967295, %v3873_v27  ;;  %3878 = vst [vmem:[#allocation26_spill] sm:$0xff] %v3877_v52  ;;  %v3077_v15 = vmul.u32.u64.low 3817748708, %v2997_v59  ;;  %v3078_v42 = vmul.u32.u64.high 3817748708, %v2997_v59, %v3077_v15  ;;  %v1418_v7 = vadd.f32 %v1417_v28, %v1383_v63 }
 0x10e   : > { %3875 = vst [vmem:[#allocation25_spill] sm:$0xff] %v3874_v27  ;;  %v958_v23 = vmul.u32 18, %v957_v14  ;;  %v991_v39 = vmul.u32 18, %v990_v19  ;;  %v3085_v46 = vadd.s32 256, %v2089_v44  ;;  %v1384_v4 = vsel %vm2898_vm3, %v3021_v10, 0.0  ;;  %v3098_v14 = vpop.f32.mrb[15].mxu0 }
 0x10f   : > { %vm1144_vm14 = vcmp.lt.s32.totalorder %v3028_v22, 0  ;;  %v980_v28 = vmul.u32 18, %v979_v58  ;;  %3882 = vst [vmem:[#allocation28_spill] sm:$0xff] %v3098_v14  ;;  %v1419_v19 = vadd.f32 %v1418_v7, %v1384_v4  ;;  %v3883_v63 = vsel %vm2792_vm5, %v2797_v34, %v2662_v18  ;;  %628 = vst [vmem:[%s2522_s7 + $0x70] sm:$0xff] %v3098_v14 }
 0x110   : > { %vm3105_vm3 = vcmp.lt.s32.totalorder %v3883_v63, 16  ;;  %v3884_v15 = vmov 0  ;;  %vm3109_vm10 = vcmp.lt.s32.totalorder %v1247_v20, 16  ;;  %v3886_v8 = vmov 0 }
 0x111   : > { %v3885_v15 = vsel %vm3105_vm3, 4294967295, %v3884_v15  ;;  %v3887_v8 = vsel %vm3109_vm10, 4294967295, %v3886_v8  ;;  %v1249_v58 = vsel %vm3070_vm7, %v3051_v25, %v2939_v16  ;;  %v3118_v4 = vadd.s32 18, %v3028_v22  ;;  %v3133_v16 = vpop.f32.mrb[14].mxu1 }
 0x112   : > { %v1385_v20 = vsel %vm2931_vm1, %v3098_v14, 0.0  ;;  %v1001_v18 = vshrl.u32 %v2994_v5, 4  ;;  %v3130_v34 = vmul.u32.u64.low 3817748708, %v2983_v36  ;;  %v3131_v38 = vmul.u32.u64.high 3817748708, %v2983_v36, %v3130_v34  ;;  %3888 = vst [vmem:[#allocation29_spill] sm:$0xff] %v3133_v16  ;;  %647 = vst [vmem:[%s2522_s7 + $0x108] sm:$0xff] %v3133_v16 }
 0x113   : > { %v1420_v25 = vadd.f32 %v1419_v19, %v1385_v20  ;;  %vm3889_vm5 = vcmp.ne.s32.totalorder %v3028_v22, 0  ;;  %v3144_v63 = vsub.s32 %v2724_v1, %v958_v23  ;;  %v3148_v5 = vpop.f32.mrb[15].mxu1  ;;  %v1386_v19 = vsel %vm2966_vm9, %v3090_v33, 0.0  ;;  %v3157_v20 = vpop.f32.mrb[16].mxu0 }
 0x114   : > { %vm3139_vm7 = vmand %vm1144_vm14, %vm3889_vm5  ;;  %3892 = vst [vmem:[#allocation30_spill] sm:$0xff] %v3148_v5  ;;  %v3151_v34 = vmul.u32.u64.low 3817748708, %v3085_v46  ;;  %v3152_v24 = vmul.u32.u64.high 3817748708, %v3085_v46, %v3151_v34  ;;  %v3160_v14 = vsub.s32 %v2781_v51, %v991_v39  ;;  %v3163_v1 = vsub.s32 %v2805_v26, %v980_v28 }
 0x115   : > { %646 = vst [vmem:[%s2522_s7 + $0x100] sm:$0xff] %v3148_v5  ;;  %v3168_v23 = vadd.s32 272, %v2089_v44  ;;  %631 = vst [vmem:[%s2522_s7 + $0x88] sm:$0xff] %v3157_v20  ;;  %v3172_v34 = vpop.f32.mrb[17].mxu0  ;;  %v1421_v56 = vadd.f32 %v1420_v25, %v1386_v19  ;;  %v3893_v51 = vsel %vm2848_vm11, %v2829_v49, %v2699_v48  ;;  %v3894_v39 = vmov 0 }
 0x116   : > { %vm3179_vm14 = vcmp.lt.s32.totalorder %v3893_v51, 16  ;;  %v1012_v26 = vshrl.u32 %v3055_v61, 4  ;;  %v3185_v28 = vmul.u32.u64.low 3817748708, %v3121_v47  ;;  %v3186_v33 = vmul.u32.u64.high 3817748708, %v3121_v47, %v3185_v28  ;;  %630 = vst [vmem:[%s2522_s7 + $0x80] sm:$0xff] %v3172_v34  ;;  %v3198_v61 = vpop.f32.mrb[16].mxu1 }
 0x117   : > { %v3895_v39 = vsel %vm3179_vm14, 4294967295, %v3894_v39  ;;  %v1387_v13 = vsel %vm2999_vm8, %v3172_v34, 0.0  ;;  %v1252_v48 = vsel %vm3139_vm7, %v3118_v4, %v3028_v22  ;;  %v1002_v49 = vmul.u32 18, %v1001_v18  ;;  %3896 = vst [vmem:[#allocation31_spill] sm:$0xff] %v3198_v61  ;;  %649 = vst [vmem:[%s2522_s7 + $0x118] sm:$0xff] %v3198_v61  ;;  %v3207_v28 = vpop.f32.mrb[17].mxu1 }
 0x118   : > { %v1023_v25 = vshrl.u32 %v3078_v42, 4  ;;  %v1422_v19 = vadd.f32 %v1421_v56, %v1387_v13  ;;  %v3205_v51 = vadd.s32 280, %v2089_v44  ;;  %3897 = vst [vmem:[#allocation32_spill] sm:$0xff] %v3207_v28  ;;  %v1388_v22 = vsel %vm3042_vm6, %v3157_v20, 0.0  ;;  %648 = vst [vmem:[%s2522_s7 + $0x110] sm:$0xff] %v3207_v28 }
 0x119   : > { %v1389_v42 = vsel %vm3046_vm2, %v2637_v0, 0.0  ;;  %v3218_v56 = vmul.u32.u64.low 3817748708, %v3168_v23  ;;  %v3219_v4 = vmul.u32.u64.high 3817748708, %v3168_v23, %v3218_v56  ;;  %v3898_v44 = vsel %vm3007_vm13, %v2979_v40, %v2856_v2 }
 0x11a   : > { %v1423_v18 = vadd.f32 %v1422_v19, %v1388_v22  ;;  %vm3226_vm7 = vcmp.lt.s32.totalorder %v3898_v44, 16  ;;  %v3899_v7 = vmov 0  ;;  %v1215_v13 = vadd.s32 18, %v3144_v63 }
 0x11b   : > { %v3900_v7 = vsel %vm3226_vm7, 4294967295, %v3899_v7  ;;  %v1013_v52 = vmul.u32 18, %v1012_v26  ;;  %v3234_v27 = vsub.s32 %v2924_v30, %v1002_v49  ;;  %v1034_v19 = vshrl.u32 %v3131_v38, 4 }
 0x11c   : > { %v1024_v6 = vmul.u32 18, %v1023_v25  ;;  %v1424_v22 = vadd.f32 %v1423_v18, %v1389_v42  ;;  %vm3901_vm13 = vcmp.ne.s32.totalorder %v3144_v63, 0  ;;  %vm3902_vm2 = vcmp.lt.s32.totalorder %v3144_v63, 0 }
 0x11d   : > { %vm3241_vm6 = vmand %vm3902_vm2, %vm3901_vm13  ;;  %v1045_v40 = vshrl.u32 %v3152_v24, 4  ;;  %v3247_v26 = vmul.u32.u64.low 3817748708, %v3205_v51  ;;  %v3248_v56 = vmul.u32.u64.high 3817748708, %v3205_v51, %v3247_v26  ;;  %v1390_v30 = vsel %vm3105_vm3, %v2621_v43, 0.0 }
 0x11e   : > { %v1391_v38 = vsel %vm3109_vm10, %v2721_v50, 0.0  ;;  %vm3256_vm11 = vcmp.lt.s32.totalorder %v1249_v58, 16  ;;  %v3905_v49 = vmov 0  ;;  %v1425_v25 = vadd.f32 %v1424_v22, %v1390_v30 }
 0x11f   : > { %v3906_v49 = vsel %vm3256_vm11, 4294967295, %v3905_v49  ;;  %vm3261_vm13 = vcmp.lt.s32.totalorder %v1252_v48, 16  ;;  %v3907_v24 = vmov 0  ;;  %v1217_v42 = vadd.s32 18, %v3163_v1 }
 0x120   : > { %v3908_v24 = vsel %vm3261_vm13, 4294967295, %v3907_v24  ;;  %v3268_v18 = vsub.s32 %v2946_v32, %v1013_v52  ;;  %v1251_v58 = vsel %vm3241_vm6, %v1215_v13, %v3144_v63  ;;  %v1218_v44 = vadd.s32 18, %v3160_v14 }
 0x121   : > { %vm3909_vm2 = vcmp.ne.s32.totalorder %v3163_v1, 0  ;;  %vm3910_vm10 = vcmp.lt.s32.totalorder %v3163_v1, 0  ;;  %v1035_v22 = vmul.u32 18, %v1034_v19  ;;  %v1056_v26 = vshrl.u32 %v3186_v33, 4 }
 0x122   : > { %vm3278_vm3 = vmand %vm3910_vm10, %vm3909_vm2  ;;  %v1426_v30 = vadd.f32 %v1425_v25, %v1391_v38  ;;  %v1025_v32 = vsub.s32 %v2997_v59, %v1024_v6  ;;  %v1046_v52 = vmul.u32 18, %v1045_v40  ;;  %v1392_v63 = vsel %vm3179_vm14, %v2696_v12, 0.0 }
 0x123   : > { %v1393_v13 = vsel %vm3256_vm11, %v2777_v35, 0.0  ;;  %vm1147_vm6 = vcmp.lt.s32.totalorder %v3234_v27, 0  ;;  %v1067_v19 = vshrl.u32 %v3219_v4, 4  ;;  %vm3293_vm10 = vcmp.lt.s32.totalorder %v1251_v58, 16 }
 0x124   : > { %v1427_v2 = vadd.f32 %v1426_v30, %v1392_v63  ;;  %v3913_v33 = vmov 0  ;;  %v1253_v59 = vsel %vm3278_vm3, %v1217_v42, %v3163_v1  ;;  %vm3915_vm5 = vcmp.ne.s32.totalorder %v3160_v14, 0 }
 0x125   : > { %v3914_v33 = vsel %vm3293_vm10, 4294967295, %v3913_v33  ;;  %vm3916_vm14 = vcmp.lt.s32.totalorder %v3160_v14, 0  ;;  %vm1148_vm8 = vcmp.lt.s32.totalorder %v3268_v18, 0  ;;  %v1219_v4 = vadd.s32 18, %v3234_v27 }
 0x126   : > { %vm3305_vm11 = vmand %vm3916_vm14, %vm3915_vm5  ;;  %v1036_v40 = vsub.s32 %v2983_v36, %v1035_v22  ;;  %v1057_v38 = vmul.u32 18, %v1056_v26  ;;  %v1428_v25 = vadd.f32 %v1427_v2, %v1393_v13  ;;  %vm3919_vm3 = vcmp.ne.s32.totalorder %v3234_v27, 0 }
 0x127   : > { %vm3314_vm9 = vmand %vm1147_vm6, %vm3919_vm3  ;;  %v1047_v42 = vsub.s32 %v3085_v46, %v1046_v52  ;;  %v1078_v58 = vshrl.u32 %v3248_v56, 4  ;;  %v1394_v48 = vsel %vm3226_vm7, %v2760_v9, 0.0  ;;  %v1395_v36 = vsel %vm3293_vm10, %v2871_v45, 0.0  ;;  %v4030_v56 = vld [vmem:[#allocation29_spill] sm:$0xff] }
 0x128   : > { %vm1149_vm14 = vcmp.lt.s32.totalorder %v1025_v32, 0  ;;  %v1068_v22 = vmul.u32 18, %v1067_v19  ;;  %v1429_v26 = vadd.f32 %v1428_v25, %v1394_v48  ;;  %v1254_v30 = vsel %vm3305_vm11, %v1218_v44, %v3160_v14 }
 0x129   : > { %vm3329_vm5 = vcmp.lt.s32.totalorder %v1253_v59, 16  ;;  %v3922_v63 = vmov 0  ;;  %v1220_v46 = vadd.s32 18, %v3268_v18  ;;  %vm3924_vm6 = vcmp.ne.s32.totalorder %v3268_v18, 0 }
 0x12a   : > { %v3923_v63 = vsel %vm3329_vm5, 4294967295, %v3922_v63  ;;  %vm3338_vm3 = vmand %vm1148_vm8, %vm3924_vm6  ;;  %v1255_v52 = vsel %vm3314_vm9, %v1219_v4, %v3234_v27  ;;  %vm1114_vm2 = vcmp.ne.s32.totalorder %v1036_v40, 0  ;;  %vm1150_vm11 = vcmp.lt.s32.totalorder %v1036_v40, 0 }
 0x12b   : > { %v1221_v14 = vadd.s32 18, %v1025_v32  ;;  %v1430_v44 = vadd.f32 %v1429_v26, %v1395_v36  ;;  %vm3927_vm10 = vcmp.ne.s32.totalorder %v1025_v32, 0  ;;  %v1058_v19 = vsub.s32 %v3121_v47, %v1057_v38 }
 0x12c   : > { %vm3346_vm7 = vmand %vm1149_vm14, %vm3927_vm10  ;;  %v1079_v2 = vmul.u32 18, %v1078_v58  ;;  %v1396_v59 = vsel %vm3261_vm13, %v2858_v11, 0.0  ;;  %v1397_v27 = vsel %vm3329_vm5, %v2943_v55, 0.0  ;;  %vm1151_vm9 = vcmp.lt.s32.totalorder %v1047_v42, 0 }
 0x12d   : > { %v1069_v6 = vsub.s32 %v3168_v23, %v1068_v22  ;;  %vm3358_vm8 = vcmp.lt.s32.totalorder %v1254_v30, 16  ;;  %v1431_v25 = vadd.f32 %v1430_v44, %v1396_v59  ;;  %vm3362_vm10 = vcmp.lt.s32.totalorder %v1255_v52, 16  ;;  %vm3371_vm14 = vmand %vm1150_vm11, %vm1114_vm2 }
 0x12e   : > { %v1256_v38 = vsel %vm3338_vm3, %v1220_v46, %v3268_v18  ;;  %v1222_v23 = vadd.s32 18, %v1036_v40  ;;  %v1257_v58 = vsel %vm3346_vm7, %v1221_v14, %v1025_v32  ;;  %v1223_v48 = vadd.s32 18, %v1047_v42  ;;  %v4027_v32 = vld [vmem:[#allocation30_spill] sm:$0xff] }
 0x12f   : > { %v1432_v36 = vadd.f32 %v1431_v25, %v1397_v27  ;;  %vm1116_vm6 = vcmp.ne.s32.totalorder %v1058_v19, 0  ;;  %vm1152_vm1 = vcmp.lt.s32.totalorder %v1058_v19, 0  ;;  %vm3936_vm5 = vcmp.ne.s32.totalorder %v1047_v42, 0 }
 0x130   : > { %vm3378_vm13 = vmand %vm1151_vm9, %vm3936_vm5  ;;  %v1080_v18 = vsub.s32 %v3205_v51, %v1079_v2  ;;  %v1398_v26 = vsel %vm3358_vm8, %v2921_v17, 0.0  ;;  %v1399_v30 = vsel %vm3362_vm10, %v3016_v54, 0.0  ;;  %vm1117_vm7 = vcmp.ne.s32.totalorder %v1069_v6, 0 }
 0x131   : > { %vm1153_vm2 = vcmp.lt.s32.totalorder %v1069_v6, 0  ;;  %vm3389_vm3 = vcmp.lt.s32.totalorder %v1256_v38, 16  ;;  %v1433_v46 = vadd.f32 %v1432_v36, %v1398_v26  ;;  %vm3393_vm5 = vcmp.lt.s32.totalorder %v1257_v58, 16  ;;  %vm3399_vm11 = vmand %vm1152_vm1, %vm1116_vm6 }
 0x132   : > { %v1258_v51 = vsel %vm3371_vm14, %v1222_v23, %v1036_v40  ;;  %v1224_v14 = vadd.s32 18, %v1058_v19  ;;  %v1259_v44 = vsel %vm3378_vm13, %v1223_v48, %v1047_v42  ;;  %v1225_v13 = vadd.s32 18, %v1069_v6  ;;  %vm3405_vm9 = vmand %vm1153_vm2, %vm1117_vm7 }
 0x133   : > { %v1434_v2 = vadd.f32 %v1433_v46, %v1399_v30  ;;  %v1400_v27 = vsel %vm3389_vm3, %v2990_v29, 0.0  ;;  %v1401_v40 = vsel %vm3393_vm5, %v3082_v62, 0.0  ;;  %vm1118_vm1 = vcmp.ne.s32.totalorder %v1080_v18, 0 }
 0x134   : > { %vm1154_vm14 = vcmp.lt.s32.totalorder %v1080_v18, 0  ;;  %vm3415_vm6 = vcmp.lt.s32.totalorder %v1258_v51, 16  ;;  %vm3419_vm13 = vcmp.lt.s32.totalorder %v1259_v44, 16  ;;  %v3949_v38 = vmov 0 }
 0x135   : > { %v1435_v42 = vadd.f32 %v1434_v2, %v1400_v27  ;;  %v3950_v38 = vsel %vm3419_vm13, 4294967295, %v3949_v38  ;;  %v1260_v1 = vsel %vm3399_vm11, %v1224_v14, %v1058_v19  ;;  %v1226_v23 = vadd.s32 18, %v1080_v18  ;;  %vm1190_vm7 = vmand %vm1154_vm14, %vm1118_vm1 }
 0x136   : > { %3951 = vst [vmem:[#allocation33_spill] sm:$0xff] %v3950_v38  ;;  %v1261_v58 = vsel %vm3405_vm9, %v1225_v13, %v1069_v6  ;;  %v1402_v36 = vsel %vm3415_vm6, %v3074_v57, 0.0  ;;  %v1403_v22 = vsel %vm3419_vm13, %v3148_v5, 0.0  ;;  %vm3433_vm2 = vcmp.lt.s32.totalorder %v1260_v1, 16 }
 0x137   : > { %v1436_v48 = vadd.f32 %v1435_v42, %v1401_v40  ;;  %v3952_v26 = vmov 0  ;;  %vm3437_vm11 = vcmp.lt.s32.totalorder %v1261_v58, 16  ;;  %v3955_v19 = vmov 0 }
 0x138   : > { %v3953_v26 = vsel %vm3433_vm2, 4294967295, %v3952_v26  ;;  %v3956_v19 = vsel %vm3437_vm11, 4294967295, %v3955_v19  ;;  %v1262_v6 = vsel %vm1190_vm7, %v1226_v23, %v1080_v18  ;;  %v1404_v51 = vsel %vm3433_vm2, %v3133_v16, 0.0 }
 0x139   : > { %3954 = vst [vmem:[#allocation34_spill] sm:$0xff] %v3953_v26  ;;  %v1437_v30 = vadd.f32 %v1436_v48, %v1402_v36  ;;  %3957 = vst [vmem:[#allocation35_spill] sm:$0xff] %v3956_v19  ;;  %v1405_v52 = vsel %vm3437_vm11, %v3207_v28, 0.0  ;;  %vm3447_vm9 = vcmp.lt.s32.totalorder %v1262_v6, 16  ;;  %v3958_v14 = vmov 0  ;;  %v3974_v19 = vld [vmem:[#allocation4_spill] sm:$0xff] }
 0x13a   : > { %v3959_v14 = vsel %vm3447_vm9, 4294967295, %v3958_v14  ;;  %v1406_v2 = vsel %vm3447_vm9, %v3198_v61, 0.0  ;;  %vm3975_vm7 = vnez %v3974_v19  ;;  %v3976_v26 = vld [vmem:[#allocation5_spill] sm:$0xff] }
 0x13b   : > { %v1438_v46 = vadd.f32 %v1437_v30, %v1403_v22  ;;  %3960 = vst [vmem:[#allocation36_spill] sm:$0xff] %v3959_v14  ;;  %vm3977_vm9 = vnez %v3976_v26 }
 0x13d   : > { %v1439_v44 = vadd.f32 %v1438_v46, %v1404_v51  ;;  %v3961_v46 = vld [vmem:[#allocation11_spill] sm:$0xff] }
 0x13f   : > { %v1440_v13 = vadd.f32 %v1439_v44, %v1405_v52  ;;  %v3962_v52 = vld [vmem:[#allocation14_spill] sm:$0xff] }
 0x141   : > { %v1441_v18 = vadd.f32 %v1440_v13, %v1406_v2 }
 0x143   : > { %v1442_v59 = vrot.slane %v1441_v18, 4 }
 0x145   : > { %v1443_v27 = vadd.f32 %v1442_v59, %v1441_v18 }
 0x147   : > { %v1444_v40 = vrot.slane %v1443_v27, 2 }
 0x149   : > { %v1445_v42 = vadd.f32 %v1444_v40, %v1443_v27  ;;  %v3967_v27 = vld [vmem:[#allocation24_spill] sm:$0xff] }
 0x14b   : > { %v1446_v1 = vrot.slane %v1445_v42, 1 }
 0x14d   : > { %v1447_v23 = vadd.f32 %v1446_v1, %v1445_v42 }
 0x14f   : > { %v3458_v58 = vmul.f32 0.00390625, %v1447_v23  ;;  %1521 = vst [vmem:[%s211_s10] sm:$0x1] %v1447_v23  ;;  %v3969_v23 = vld [vmem:[#allocation27_spill] sm:$0xff] }
 0x151   : > { %v1449_v48 = vsub.f32 %v2584_v21, %v3458_v58  ;;  %v1450_v36 = vsub.f32 %v2560_v60, %v3458_v58  ;;  %v1451_v22 = vsub.f32 %v2671_v31, %v3458_v58  ;;  %v1452_v30 = vsub.f32 %v2643_v53, %v3458_v58  ;;  %v3963_v60 = vld [vmem:[#allocation18_spill] sm:$0xff]  ;;  %v3964_v31 = vld [vmem:[#allocation17_spill] sm:$0xff] }
 0x152   : > { %v1453_v6 = vsub.f32 %v2740_v41, %v3458_v58  ;;  %v1454_v51 = vsub.f32 %v3961_v46, %v3458_v58  ;;  %v1455_v44 = vsub.f32 %v3962_v52, %v3458_v58  ;;  %v1456_v21 = vsub.f32 %v2786_v3, %v3458_v58  ;;  %v3965_v53 = vld [vmem:[#allocation22_spill] sm:$0xff]  ;;  %v3966_v41 = vld [vmem:[#allocation21_spill] sm:$0xff]  ;;  %v3968_v3 = vld [vmem:[#allocation28_spill] sm:$0xff] }
 0x153   : > { %v1457_v13 = vsub.f32 %v3963_v60, %v3458_v58  ;;  %v1458_v2 = vsub.f32 %v3964_v31, %v3458_v58  ;;  %v1459_v18 = vsub.f32 %v3965_v53, %v3458_v58  ;;  %v1460_v59 = vsub.f32 %v3966_v41, %v3458_v58  ;;  %v3970_v60 = vld [vmem:[#allocation3_spill] sm:$0xff]  ;;  %v3972_v52 = vld [vmem:[#allocation2_spill] sm:$0xff] }
 0x154   : > { %v1461_v40 = vsub.f32 %v3967_v27, %v3458_v58  ;;  %v1462_v42 = vsub.f32 %v3021_v10, %v3458_v58  ;;  %v1463_v1 = vsub.f32 %v3968_v3, %v3458_v58  ;;  %v1464_v46 = vsub.f32 %v3969_v23, %v3458_v58  ;;  %v3978_v10 = vld [vmem:[#allocation6_spill] sm:$0xff] }
 0x155   : > { %vm3971_vm1 = vnez %v3970_v60  ;;  %vm3973_vm14 = vnez %v3972_v52  ;;  %v1487_v31 = vsel %vm3975_vm7, %v1451_v22, 0.0  ;;  %v1488_v53 = vsel %vm3977_vm9, %v1452_v30, 0.0  ;;  %v3980_v60 = vld [vmem:[#allocation7_spill] sm:$0xff] }
 0x156   : > { %v1485_v27 = vsel %vm3971_vm1, %v1449_v48, 0.0  ;;  %v1486_v3 = vsel %vm3973_vm14, %v1450_v36, 0.0  ;;  %v1524_v16 = vmul.f32 %v1487_v31, %v1487_v31  ;;  %vm3979_vm11 = vnez %v3978_v10  ;;  %v3984_v31 = vld [vmem:[#allocation10_spill] sm:$0xff]  ;;  %v3988_v10 = vld [vmem:[#allocation13_spill] sm:$0xff] }
 0x157   : > { %v1522_v14 = vmul.f32 %v1485_v27, %v1485_v27  ;;  %v1523_v23 = vmul.f32 %v1486_v3, %v1486_v3  ;;  %v1489_v28 = vsel %vm3979_vm11, %v1453_v6, 0.0  ;;  %v1525_v41 = vmul.f32 %v1488_v53, %v1488_v53 }
 0x158   : > { %vm3981_vm1 = vnez %v3980_v60  ;;  %v1526_v52 = vmul.f32 %v1489_v28, %v1489_v28  ;;  %v1491_v3 = vsel %vm2628_vm12, %v1455_v44, 0.0  ;;  %v1492_v26 = vsel %vm2678_vm0, %v1456_v21, 0.0 }
 0x159   : > { %v1558_v38 = vadd.f32 %v1523_v23, %v1522_v14  ;;  %v1490_v48 = vsel %vm3981_vm1, %v1454_v51, 0.0  ;;  %v1528_v30 = vmul.f32 %v1491_v3, %v1491_v3  ;;  %vm3985_vm9 = vnez %v3984_v31  ;;  %v3992_v3 = vld [vmem:[#allocation19_spill] sm:$0xff] }
 0x15a   : > { %v1527_v19 = vmul.f32 %v1490_v48, %v1490_v48  ;;  %v1493_v6 = vsel %vm3985_vm9, %v1457_v13, 0.0  ;;  %v1529_v53 = vmul.f32 %v1492_v26, %v1492_v26  ;;  %vm3989_vm14 = vnez %v3988_v10  ;;  %v3994_v26 = vld [vmem:[#allocation20_spill] sm:$0xff]  ;;  %v3996_v31 = vld [vmem:[#allocation23_spill] sm:$0xff] }
 0x15b   : > { %v1559_v61 = vadd.f32 %v1558_v38, %v1524_v16  ;;  %v3986_v38 = vld [vmem:[#allocation12_spill] sm:$0xff]  ;;  %v1530_v28 = vmul.f32 %v1493_v6, %v1493_v6  ;;  %v1495_v44 = vsel %vm3989_vm14, %v1459_v18, 0.0  ;;  %v1496_v5 = vsel %vm2816_vm15, %v1460_v59, 0.0 }
 0x15c   : > { %vm3987_vm11 = vnez %v3986_v38  ;;  %v1532_v21 = vmul.f32 %v1495_v44, %v1495_v44  ;;  %v1497_v13 = vsel %vm2865_vm4, %v1461_v40, 0.0  ;;  %vm3993_vm12 = vnez %v3992_v3  ;;  %v4004_v44 = vld [vmem:[#allocation26_spill] sm:$0xff] }
 0x15d   : > { %v1560_v36 = vadd.f32 %v1559_v61, %v1525_v41  ;;  %v1494_v51 = vsel %vm3987_vm11, %v1458_v2, 0.0  ;;  %v1498_v2 = vsel %vm3993_vm12, %v1462_v42, 0.0  ;;  %vm3995_vm0 = vnez %v3994_v26 }
 0x15e   : > { %v1531_v41 = vmul.f32 %v1494_v51, %v1494_v51  ;;  %v1499_v18 = vsel %vm3995_vm0, %v1463_v1, 0.0  ;;  %vm3997_vm7 = vnez %v3996_v31  ;;  %v3998_v40 = vsub.f32 %v3172_v34, %v3458_v58 }
 0x15f   : > { %v1561_v22 = vadd.f32 %v1560_v36, %v1526_v52  ;;  %v1533_v36 = vmul.f32 %v1496_v5, %v1496_v5  ;;  %v1500_v59 = vsel %vm3997_vm7, %v1464_v46, 0.0  ;;  %v1536_v6 = vmul.f32 %v1499_v18, %v1499_v18 }
 0x160   : > { %vm3999_vm15 = vnez %v3865_v37  ;;  %v1537_v38 = vmul.f32 %v1500_v59, %v1500_v59  ;;  %v4000_v51 = vsub.f32 %v3157_v20, %v3458_v58  ;;  %v4003_v46 = vsub.f32 %v2637_v0, %v3458_v58 }
 0x161   : > { %v1562_v14 = vadd.f32 %v1561_v22, %v1527_v19  ;;  %v1534_v19 = vmul.f32 %v1497_v13, %v1497_v13  ;;  %vm4005_vm1 = vnez %v4004_v44  ;;  %v4006_v37 = vsub.f32 %v2621_v43, %v3458_v58 }
 0x162   : > { %vm4007_vm9 = vnez %v3885_v15  ;;  %vm4009_vm11 = vnez %v3887_v8  ;;  %v4010_v13 = vsub.f32 %v2696_v12, %v3458_v58  ;;  %vm4011_vm14 = vnez %v3895_v39 }
 0x163   : > { %v1563_v16 = vadd.f32 %v1562_v14, %v1528_v30  ;;  %v1535_v30 = vmul.f32 %v1498_v2, %v1498_v2  ;;  %v1504_v60 = vsel %vm4007_vm9, %v4006_v37, 0.0  ;;  %v4012_v15 = vsub.f32 %v2777_v35, %v3458_v58 }
 0x164   : > { %v1541_v0 = vmul.f32 %v1504_v60, %v1504_v60  ;;  %vm4013_vm12 = vnez %v3906_v49  ;;  %v4014_v8 = vsub.f32 %v2760_v9, %v3458_v58  ;;  %vm4015_vm0 = vnez %v3900_v7  ;;  %v4033_v60 = vld [vmem:[#allocation32_spill] sm:$0xff] }
 0x165   : > { %v1564_v61 = vadd.f32 %v1563_v16, %v1529_v53  ;;  %v1501_v16 = vsel %vm3999_vm15, %v3998_v40, 0.0  ;;  %v1507_v3 = vsel %vm4013_vm12, %v4012_v15, 0.0  ;;  %v4016_v39 = vsub.f32 %v2871_v45, %v3458_v58 }
 0x166   : > { %v1544_v12 = vmul.f32 %v1507_v3, %v1507_v3  ;;  %vm4017_vm7 = vnez %v3914_v33  ;;  %v4018_v49 = vsub.f32 %v2858_v11, %v3458_v58  ;;  %vm4019_vm15 = vnez %v3908_v24 }
 0x167   : > { %v1565_v23 = vadd.f32 %v1564_v61, %v1530_v28  ;;  %v4001_v28 = vld [vmem:[#allocation25_spill] sm:$0xff]  ;;  %v1538_v61 = vmul.f32 %v1501_v16, %v1501_v16  ;;  %v1509_v26 = vsel %vm4017_vm7, %v4016_v39, 0.0  ;;  %v4020_v7 = vsub.f32 %v2943_v55, %v3458_v58 }
 0x168   : > { %vm4002_vm4 = vnez %v4001_v28  ;;  %v1546_v9 = vmul.f32 %v1509_v26, %v1509_v26  ;;  %v4022_v33 = vsub.f32 %v2921_v17, %v3458_v58  ;;  %v4023_v24 = vsub.f32 %v3016_v54, %v3458_v58 }
 0x169   : > { %v1566_v48 = vadd.f32 %v1565_v23, %v1531_v41  ;;  %v1502_v1 = vsel %vm4002_vm4, %v4000_v51, 0.0  ;;  %v1503_v41 = vsel %vm4005_vm1, %v4003_v46, 0.0  ;;  %vm4021_vm4 = vnez %v3923_v63 }
 0x16a   : > { %v1539_v34 = vmul.f32 %v1502_v1, %v1502_v1  ;;  %v1540_v20 = vmul.f32 %v1503_v41, %v1503_v41  ;;  %v1511_v31 = vsel %vm4021_vm4, %v4020_v7, 0.0  ;;  %v1513_v40 = vsel %vm3362_vm10, %v4023_v24, 0.0 }
 0x16b   : > { %v1567_v27 = vadd.f32 %v1566_v48, %v1532_v21  ;;  %v4008_v21 = vsub.f32 %v2721_v50, %v3458_v58  ;;  %v1548_v11 = vmul.f32 %v1511_v31, %v1511_v31  ;;  %v4024_v63 = vsub.f32 %v2990_v29, %v3458_v58 }
 0x16c   : > { %v1550_v17 = vmul.f32 %v1513_v40, %v1513_v40  ;;  %v4025_v4 = vsub.f32 %v3082_v62, %v3458_v58  ;;  %v4026_v47 = vsub.f32 %v3074_v57, %v3458_v58 }
 0x16d   : > { %v1568_v22 = vadd.f32 %v1567_v27, %v1533_v36  ;;  %v1505_v48 = vsel %vm4009_vm11, %v4008_v21, 0.0  ;;  %v1506_v36 = vsel %vm4011_vm14, %v4010_v13, 0.0 }
 0x16e   : > { %v1542_v43 = vmul.f32 %v1505_v48, %v1505_v48  ;;  %v1543_v50 = vmul.f32 %v1506_v36, %v1506_v36  ;;  %v1515_v51 = vsel %vm3393_vm5, %v4025_v4, 0.0  ;;  %v1516_v1 = vsel %vm3415_vm6, %v4026_v47, 0.0  ;;  %v4039_v36 = vld [vmem:[#allocation36_spill] sm:$0xff] }
 0x16f   : > { %v1569_v14 = vadd.f32 %v1568_v22, %v1534_v19  ;;  %v1508_v19 = vsel %vm4015_vm0, %v4014_v8, 0.0  ;;  %v1552_v29 = vmul.f32 %v1515_v51, %v1515_v51  ;;  %v1553_v62 = vmul.f32 %v1516_v1, %v1516_v1 }
 0x170   : > { %v1545_v35 = vmul.f32 %v1508_v19, %v1508_v19  ;;  %vm4040_vm10 = vnez %v4039_v36 }
 0x171   : > { %v1570_v53 = vadd.f32 %v1569_v14, %v1535_v30  ;;  %v1510_v30 = vsel %vm4019_vm15, %v4018_v49, 0.0 }
 0x172   : > { %v1547_v45 = vmul.f32 %v1510_v30, %v1510_v30 }
 0x173   : > { %v1571_v42 = vadd.f32 %v1570_v53, %v1536_v6  ;;  %v1512_v6 = vsel %vm3358_vm8, %v4022_v33, 0.0 }
 0x174   : > { %v1549_v55 = vmul.f32 %v1512_v6, %v1512_v6 }
 0x175   : > { %v1572_v10 = vadd.f32 %v1571_v42, %v1537_v38  ;;  %v1514_v38 = vsel %vm3389_vm3, %v4024_v63, 0.0 }
 0x176   : > { %v1551_v54 = vmul.f32 %v1514_v38, %v1514_v38 }
 0x177   : > { %v1573_v23 = vadd.f32 %v1572_v10, %v1538_v61  ;;  %v4028_v10 = vsub.f32 %v4027_v32, %v3458_v58 }
 0x179   : > { %v1574_v5 = vadd.f32 %v1573_v23, %v1539_v34  ;;  %v1517_v44 = vsel %vm3419_vm13, %v4028_v10, 0.0  ;;  %v4031_v34 = vsub.f32 %v4030_v56, %v3458_v58 }
 0x17a   : > { %v1554_v57 = vmul.f32 %v1517_v44, %v1517_v44 }
 0x17b   : > { %v1575_v52 = vadd.f32 %v1574_v5, %v1540_v20  ;;  %v1518_v37 = vsel %vm3433_vm2, %v4031_v34, 0.0  ;;  %v4034_v20 = vsub.f32 %v4033_v60, %v3458_v58  ;;  %v4035_v5 = vld [vmem:[#allocation35_spill] sm:$0xff] }
 0x17c   : > { %vm4036_vm8 = vnez %v4035_v5  ;;  %v1555_v48 = vmul.f32 %v1518_v37, %v1518_v37 }
 0x17d   : > { %v1576_v27 = vadd.f32 %v1575_v52, %v1541_v0  ;;  %v1519_v21 = vsel %vm4036_vm8, %v4034_v20, 0.0  ;;  %v4037_v52 = vld [vmem:[#allocation31_spill] sm:$0xff] }
 0x17e   : > { %v4038_v13 = vsub.f32 %v4037_v52, %v3458_v58 }
 0x17f   : > { %v1577_v2 = vadd.f32 %v1576_v27, %v1542_v43  ;;  %v1556_v27 = vmul.f32 %v1519_v21, %v1519_v21 }
 0x180   : > { %v1520_v43 = vsel %vm4040_vm10, %v4038_v13, 0.0 }
 0x181   : > { %v1578_v22 = vadd.f32 %v1577_v2, %v1543_v50  ;;  %v1557_v3 = vmul.f32 %v1520_v43, %v1520_v43 }
 0x183   : > { %v1579_v18 = vadd.f32 %v1578_v22, %v1544_v12 }
 0x185   : > { %v1580_v14 = vadd.f32 %v1579_v18, %v1545_v35 }
 0x187   : > { %v1581_v59 = vadd.f32 %v1580_v14, %v1546_v9 }
 0x189   : > { %v1582_v53 = vadd.f32 %v1581_v59, %v1547_v45 }
 0x18b   : > { %v1583_v16 = vadd.f32 %v1582_v53, %v1548_v11 }
 0x18d   : > { %v1584_v42 = vadd.f32 %v1583_v16, %v1549_v55 }
 0x18f   : > { %v1585_v28 = vadd.f32 %v1584_v42, %v1550_v17 }
 0x191   : > { %v1586_v61 = vadd.f32 %v1585_v28, %v1551_v54 }
 0x193   : > { %v1587_v41 = vadd.f32 %v1586_v61, %v1552_v29 }
 0x195   : > { %v1588_v25 = vadd.f32 %v1587_v41, %v1553_v62 }
 0x197   : > { %v1589_v0 = vadd.f32 %v1588_v25, %v1554_v57 }
 0x199   : > { %v1590_v15 = vadd.f32 %v1589_v0, %v1555_v48 }
 0x19b   : > { %v1591_v50 = vadd.f32 %v1590_v15, %v1556_v27 }
 0x19d   : > { %v1592_v2 = vadd.f32 %v1591_v50, %v1557_v3 }
 0x19f   : > { %v1593_v8 = vrot.slane %v1592_v2, 4 }
 0x1a1   : > { %v1594_v19 = vadd.f32 %v1593_v8, %v1592_v2 }
 0x1a3   : > { %v1595_v12 = vrot.slane %v1594_v19, 2 }
 0x1a5   : > { %v1596_v22 = vadd.f32 %v1595_v12, %v1594_v19 }
 0x1a7   : > { %v1597_v39 = vrot.slane %v1596_v22, 1 }
 0x1a9   : > { %v1598_v26 = vadd.f32 %v1597_v39, %v1596_v22 }
 0x1ab   : > { %1599 = vst [vmem:[%s214_s13] sm:$0x1] %v1598_v26 }
 0x1ac PF: > { %s15_s15 = sadd.s32 1, %s1957_s15  }
 0x1ad   : > { %p12_p4 = scmp.ge.s32.totalorder %s15_s15, 4  }
 0x1af   :  { %14 = sbr.rel (!%p12_p4) target bundleno = 1 (0x1), region = 82 }

// kernel: conv2d_with_sigmoid.3
= control target key start
LH: loop header
LB: loop body
LE: loop exit
PB: predicated region body
PF: predicated region fallthrough
CT: control target
= control target key end

     0   :  { %s7088_s21 = smov 0   ;;  %s9844_s0 = inlined_call_operand.vmem [shape: f32[2,288,128], index: 0, kind: input, shape index: {}]   ;;  %s9845_s1 = inlined_call_operand.vmem [shape: f32[1,128], index: 1, kind: input, shape index: {}]   ;;  %s9846_s2 = inlined_call_operand.vmem [shape: f32[1,128], index: 2, kind: input, shape index: {}]   ;;  %s9847_s3 = inlined_call_operand.vmem [shape: f32[9,128,128], index: 3, kind: input, shape index: {}]   ;;  %s9848_s4 = inlined_call_operand.vmem [shape: f32[2,288,128], index: 4, kind: output, shape index: {0}]   ;;  %s9849_s5 = inlined_call_operand.vmem [shape: f32[2,1,128], index: 5, kind: output, shape index: {1}]   ;;  %s9850_s6 = inlined_call_operand.vmem [shape: f32[2,1,128], index: 6, kind: output, shape index: {2}]  }
   0x1 LB: > { %s4783_s22 = sadd.s32 4294967295, %s7050_s21   ;;  %p4787_p0 = scmp.ge.s32.totalorder %s7050_s21, 1  ;;  %s7050_s21 = sphi %s7088_s21, %s17_s21  }
   0x2   : > { %p217_p1 = scmp.lt.s32.totalorder %s7050_s21, 3 }
   0x4   : > { %p218_p2 = pnand %p4787_p0, %p217_p1 }
   0x6   : > { %221 = sbr.rel (%p218_p2) target bundleno = 812 (0x32c), region = 36 }
   0xd   : > { %v4828_v0 = vld [vmem:[%s9847_s3 + $0x80] sm:$0xff]  ;;  %v4829_v1 = vld [vmem:[%s9847_s3 + $0x88] sm:$0xff]  ;;  %p7105_p3 = scmp.lt.s32.totalorder %s4783_s22, 1  ;;  %v679_v3 = vlaneseq  ;;  %v4830_v6 = vld [vmem:[%s9847_s3 + $0x90] sm:$0xff]  ;;  %v7052_v8 = vmov 0.0  }
   0xe   : > { %v4876_v2 = vld [vmem:[%s9847_s3 + $0x200] sm:$0xff]  ;;  %v6200_v4 = vpack.c.bf16 %v4829_v1, %v4828_v0  ;;  %v4877_v5 = vld [vmem:[%s9847_s3 + $0x208] sm:$0xff]  ;;  %v4831_v7 = vld [vmem:[%s9847_s3 + $0x98] sm:$0xff]  ;;  %1437 = vst [vmem:[#allocation2 + $0x8] sm:$0xff] %v7052_v8 }
   0xf   : > { %1438 = vst [vmem:[#allocation2 + $0x10] sm:$0xff] %v7052_v8  ;;  %1439 = vst [vmem:[#allocation2 + $0x18] sm:$0xff] %v7052_v8  ;;  %v7118_v9 = vpack.c.bf16 %v4877_v5, %v4876_v2  ;;  %v6204_v10 = vpack.c.bf16 %v4831_v7, %v4830_v6  ;;  %v4878_v11 = vld [vmem:[%s9847_s3 + $0x210] sm:$0xff]  ;;  %v4879_v12 = vld [vmem:[%s9847_s3 + $0x218] sm:$0xff]  ;;  %s10280_s22 = smov (!%p7105_p3, %s4783_s22), 1  ;;  %v7133_v14 = vshrl.u32 %v679_v3, 7 }
  0x10   : > { %1440 = vst [vmem:[#allocation2 + $0x140] sm:$0xff] %v7052_v8  ;;  %1441 = vst [vmem:[#allocation2 + $0x148] sm:$0xff] %v7052_v8  ;;  %v4832_v13 = vld [vmem:[%s9847_s3 + $0xa0] sm:$0xff]  ;;  %6201 = vmatprep.subr.bf16.mxu1 %v6200_v4  ;;  %v7135_v15 = vpack.c.bf16 %v4879_v12, %v4878_v11  ;;  %v4833_v16 = vld [vmem:[%s9847_s3 + $0xa8] sm:$0xff]  ;;  %s6792_s26 = smul.u32 288, %s10280_s22  ;;  %s265_s18 = scalar_lea.vmem %s9849_s5, %s10280_s22 }
  0x11   : > { %1442 = vst [vmem:[#allocation2 + $0x150] sm:$0xff] %v7052_v8  ;;  %v4880_v17 = vld [vmem:[%s9847_s3 + $0x220] sm:$0xff]  ;;  %v4881_v18 = vld [vmem:[%s9847_s3 + $0x228] sm:$0xff]  ;;  %6203 = vmatpush3.bf16.msra.mxu1 %v6200_v4  ;;  %6329 = vmatprep.subr.bf16.mxu0 %v7118_v9  ;;  %v7149_v19 = vmul.u32.u64.low 3817748708, %v7133_v14  ;;  %v7150_v20 = vmul.u32.u64.high 3817748708, %v7133_v14, %v7149_v19  ;;  %v6208_v21 = vpack.c.bf16 %v4833_v16, %v4832_v13  ;;  %v4834_v22 = vld [vmem:[%s9847_s3 + $0xb0] sm:$0xff]  ;;  %s268_s23 = scalar_lea.vmem %s9850_s6, %s10280_s22 }
  0x12   : > { %6205 = vmatprep.subr.bf16.mxu1 %v6204_v10  ;;  %6331 = vmatpush3.bf16.msra.mxu0 %v7118_v9  ;;  %v4835_v23 = vld [vmem:[%s9847_s3 + $0xb8] sm:$0xff]  ;;  %v4882_v24 = vld [vmem:[%s9847_s3 + $0x230] sm:$0xff]  ;;  %v7163_v25 = vadd.s32 8, %v7133_v14  ;;  %v7166_v26 = vadd.s32 16, %v7133_v14  ;;  %v7169_v27 = vpack.c.bf16 %v4881_v18, %v4880_v17  ;;  %v4836_v29 = vld [vmem:[%s9847_s3 + $0xc0] sm:$0xff]  ;;  %s7207_s8 = scalar_lea.vmem %s9844_s0, %s6792_s26  ;;  %v7211_v41 = vadd.s32 24, %v7133_v14  ;;  %s9379_s16 = scalar_lea.vmem %s9848_s4, %s6792_s26 }
  0x13   : > { %6333 = vmatprep.subr.bf16.mxu0 %v7135_v15  ;;  %v4883_v28 = vld [vmem:[%s9847_s3 + $0x238] sm:$0xff]  ;;  %v4837_v30 = vld [vmem:[%s9847_s3 + $0xc8] sm:$0xff]  ;;  %v4884_v31 = vld [vmem:[%s9847_s3 + $0x240] sm:$0xff]  ;;  %v6212_v36 = vpack.c.bf16 %v4835_v23, %v4834_v22  ;;  %v722_v40 = vshrl.u32 %v7150_v20, 4  ;;  %v7230_v48 = vadd.s32 32, %v7133_v14  ;;  %v7242_v54 = vadd.s32 40, %v7133_v14 }
  0x14   : > { %v4885_v32 = vld [vmem:[%s9847_s3 + $0x248] sm:$0xff]  ;;  %v4838_v33 = vld [vmem:[%s9847_s3 + $0xd0] sm:$0xff]  ;;  %v7190_v34 = vmul.u32.u64.low 3817748708, %v7163_v25  ;;  %v7191_v35 = vmul.u32.u64.high 3817748708, %v7163_v25, %v7190_v34  ;;  %v4839_v37 = vld [vmem:[%s9847_s3 + $0xd8] sm:$0xff]  ;;  %v7214_v42 = vpack.c.bf16 %v4883_v28, %v4882_v24  ;;  %v7233_v49 = vpack.c.bf16 %v4837_v30, %v4836_v29 }
  0x15   : > { %6207 = vmatpush3.bf16.msra.mxu1 %v6204_v10  ;;  %v4886_v38 = vld [vmem:[%s9847_s3 + $0x250] sm:$0xff]  ;;  %v4887_v39 = vld [vmem:[%s9847_s3 + $0x258] sm:$0xff]  ;;  %v4840_v43 = vld [vmem:[%s9847_s3 + $0xe0] sm:$0xff]  ;;  %v7226_v46 = vmul.u32.u64.low 3817748708, %v7166_v26  ;;  %v7227_v47 = vmul.u32.u64.high 3817748708, %v7166_v26, %v7226_v46  ;;  %v723_v53 = vmul.u32 18, %v722_v40  ;;  %v7247_v56 = vpack.c.bf16 %v4885_v32, %v4884_v31 }
  0x16   : > { %6209 = vmatprep.subr.bf16.mxu1 %v6208_v21  ;;  %6335 = vmatpush3.bf16.msra.mxu0 %v7135_v15  ;;  %v4841_v44 = vld [vmem:[%s9847_s3 + $0xe8] sm:$0xff]  ;;  %v4888_v45 = vld [vmem:[%s9847_s3 + $0x260] sm:$0xff]  ;;  %v4842_v51 = vld [vmem:[%s9847_s3 + $0xf0] sm:$0xff]  ;;  %v7245_v55 = vadd.s32 48, %v7133_v14  ;;  %v7249_v57 = vpack.c.bf16 %v4839_v37, %v4838_v33  ;;  %v733_v61 = vshrl.u32 %v7191_v35, 4  ;;  %v7262_v62 = vadd.s32 56, %v7133_v14 }
  0x17   : > { %6337 = vmatprep.subr.bf16.mxu0 %v7169_v27  ;;  %v4889_v50 = vld [vmem:[%s9847_s3 + $0x268] sm:$0xff]  ;;  %v4843_v58 = vld [vmem:[%s9847_s3 + $0xf8] sm:$0xff]  ;;  %v269_v59 = vld [vmem:[%s7207_s8] sm:$0xff]  ;;  %v7264_v63 = vpack.c.bf16 %v4887_v39, %v4886_v38  ;;  %v7279_v4 = vmul.u32.u64.low 3817748708, %v7211_v41  ;;  %v7280_v5 = vmul.u32.u64.high 3817748708, %v7211_v41, %v7279_v4  ;;  %v7283_v6 = vpack.c.bf16 %v4841_v44, %v4840_v43 }
  0x18   : > { %v1532_v52 = vld [vmem:[#allocation2 + $0xe] sm:$0xff]  ;;  %v7258_v60 = vld [vmem:[%s9845_s1] ss:$0 sm:$0xff]  ;;  %v4891_v1 = vld [vmem:[%s9847_s3 + $0x278] sm:$0xff]  ;;  %v7286_v7 = vsub.s32 %v7133_v14, %v723_v53  ;;  %v734_v10 = vmul.u32 18, %v733_v61  ;;  %v744_v11 = vshrl.u32 %v7227_v47, 4  ;;  %v7291_v12 = vpack.c.bf16 %v4889_v50, %v4888_v45 }
  0x19   : > { %5458 = vmatprep.mubr.f32.mxu1 %v1532_v52  ;;  %6211 = vmatpush3.bf16.msra.mxu1 %v6208_v21  ;;  %v4890_v0 = vld [vmem:[%s9847_s3 + $0x270] sm:$0xff]  ;;  %v312_v2 = vmul.f32 %v7258_v60, %v269_v59  ;;  %v7276_v3 = vld [vmem:[%s9846_s2] ss:$0 sm:$0xff]  ;;  %v270_v8 = vld [vmem:[%s7207_s8 + $0x8] sm:$0xff]  ;;  %v7293_v13 = vpack.c.bf16 %v4843_v58, %v4842_v51  ;;  %v7301_v19 = vadd.s32 64, %v7133_v14  ;;  %v7314_v28 = vadd.s32 72, %v7133_v14 }
  0x1a   : > { %6213 = vmatprep.subr.bf16.mxu1 %v6212_v36  ;;  %6339 = vmatpush3.bf16.msra.mxu0 %v7169_v27  ;;  %v271_v17 = vld [vmem:[%s7207_s8 + $0x10] sm:$0xff]  ;;  %v272_v18 = vld [vmem:[%s7207_s8 + $0x18] sm:$0xff]  ;;  %v7303_v20 = vpack.c.bf16 %v4891_v1, %v4890_v0  ;;  %v1516_v21 = vld [vmem:[%s9847_s3] sm:$0xff]  ;;  %v313_v23 = vmul.f32 %v7258_v60, %v270_v8  ;;  %v7318_v30 = vsub.s32 %v7163_v25, %v734_v10  ;;  %v7322_v32 = vadd.s32 80, %v7133_v14 }
  0x1b   : > { %6341 = vmatprep.subr.bf16.mxu0 %v7214_v42  ;;  %v7296_v16 = vadd.f32 %v7276_v3, %v312_v2  ;;  %v1517_v22 = vld [vmem:[%s9847_s3 + $0x8] sm:$0xff]  ;;  %v314_v24 = vmul.f32 %v7258_v60, %v271_v17  ;;  %v315_v31 = vmul.f32 %v7258_v60, %v272_v18  ;;  %vm1112_vm0 = vcmp.ne.s32.totalorder %v7286_v7, 0  ;;  %v273_v46 = vld [vmem:[%s7207_s8 + $0x20] sm:$0xff]  ;;  %v4894_v58 = vld [vmem:[%s9847_s3 + $0x290] sm:$0xff] }
  0x1c   : > { %vm1148_vm1 = vcmp.lt.s32.totalorder %v7286_v7, 0  ;;  %v7329_v33 = vadd.f32 %v7276_v3, %v313_v23  ;;  %v745_v34 = vmul.u32 18, %v744_v11  ;;  %v7334_v35 = vpack.c.bf16 %v1517_v22, %v1516_v21  ;;  %v4893_v37 = vld [vmem:[%s9847_s3 + $0x288] sm:$0xff]  ;;  %v4895_v59 = vld [vmem:[%s9847_s3 + $0x298] sm:$0xff] }
  0x1d   : > { %6215 = vmatpush3.bf16.msra.mxu1 %v6212_v36  ;;  %v391_v29 = vmax.f32 %v7296_v16, 0.0  ;;  %v4892_v36 = vld [vmem:[%s9847_s3 + $0x280] sm:$0xff]  ;;  %v7343_v38 = vadd.f32 %v7276_v3, %v314_v24  ;;  %v7346_v39 = vadd.s32 88, %v7133_v14  ;;  %v7349_v40 = vadd.s32 18, %v7286_v7  ;;  %vm7362_vm2 = vmand %vm1148_vm1, %vm1112_vm0  ;;  %v275_v24 = vld [vmem:[%s7207_s8 + $0x30] sm:$0xff] }
  0x1e   : > { %6217 = vmatprep.subr.bf16.mxu1 %v7233_v49  ;;  %6343 = vmatpush3.bf16.msra.mxu0 %v7214_v42  ;;  %v392_v43 = vmax.f32 %v7329_v33, 0.0  ;;  %v7353_v44 = vadd.f32 %v7276_v3, %v315_v31  ;;  %v755_v45 = vshrl.u32 %v7280_v5, 4  ;;  %vm1113_vm3 = vcmp.ne.s32.totalorder %v7318_v30, 0  ;;  %v276_v31 = vld [vmem:[%s7207_s8 + $0x38] sm:$0xff] }
  0x1f   : > { %6345 = vmatprep.subr.bf16.mxu0 %v7247_v56  ;;  %v4792_v25 = vmul.f32 -1.442695, %v391_v29  ;;  %vm1149_vm4 = vcmp.lt.s32.totalorder %v7318_v30, 0  ;;  %v393_v50 = vmax.f32 %v7343_v38, 0.0  ;;  %v7376_v52 = vadd.s32 18, %v7318_v30 }
  0x20   : > { %v4793_v51 = vmul.f32 -1.442695, %v392_v43  ;;  %v7379_v53 = vsub.s32 %v7166_v26, %v745_v34  ;;  %v394_v0 = vmax.f32 %v7353_v44, 0.0  ;;  %v756_v1 = vmul.u32 18, %v755_v45  ;;  %v274_v26 = vld [vmem:[%s7207_s8 + $0x28] sm:$0xff]  ;;  %vm7401_vm5 = vmand %vm1149_vm4, %vm1113_vm3 }
  0x21   : > { %6219 = vmatpush3.bf16.msra.mxu1 %v7233_v49  ;;  %6874 = vpow2.f32 %v4792_v25  ;;  %v7371_v49 = vpack.c.bf16 %v4893_v37, %v4892_v36  ;;  %v4794_v61 = vmul.f32 -1.442695, %v393_v50  ;;  %v316_v2 = vmul.f32 %v7258_v60, %v273_v46 }
  0x22   : > { %6221 = vmatprep.subr.bf16.mxu1 %v7249_v57  ;;  %6347 = vmatpush3.bf16.msra.mxu0 %v7247_v56  ;;  %v1256_v4 = vsel %vm7362_vm2, %v7349_v40, %v7286_v7  ;;  %6876 = vpow2.f32 %v4793_v51  ;;  %v7406_v8 = vmul.u32.u64.low 3817748708, %v7230_v48  ;;  %v7407_v10 = vmul.u32.u64.high 3817748708, %v7230_v48, %v7406_v8  ;;  %v277_v40 = vld [vmem:[%s7207_s8 + $0x40] sm:$0xff] }
  0x23   : > { %6349 = vmatprep.subr.bf16.mxu0 %v7264_v63  ;;  %6878 = vpow2.f32 %v4794_v61  ;;  %v4795_v11 = vmul.f32 -1.442695, %v394_v0  ;;  %v7413_v17 = vsub.s32 %v7211_v41, %v756_v1  ;;  %v7415_v18 = vpack.c.bf16 %v4895_v59, %v4894_v58  ;;  %v1519_v8 = vld [vmem:[%s9847_s3 + $0x18] sm:$0xff] }
  0x24   : > { %v7420_v21 = vadd.f32 %v7276_v3, %v316_v2  ;;  %v317_v22 = vmul.f32 %v7258_v60, %v274_v26  ;;  %v1257_v41 = vsel %vm7401_vm5, %v7376_v52, %v7318_v30  ;;  %vm1114_vm6 = vcmp.ne.s32.totalorder %v7379_v53, 0  ;;  %v1518_v26 = vld [vmem:[%s9847_s3 + $0x10] sm:$0xff]  ;;  %v4899_v52 = vld [vmem:[%s9847_s3 + $0x2b8] sm:$0xff] }
  0x25   : > { %6223 = vmatpush3.bf16.msra.mxu1 %v7249_v57  ;;  %v7424_v57 = vmul.u32.u64.low 3817748708, %v7242_v54  ;;  %v7425_v23 = vmul.u32.u64.high 3817748708, %v7242_v54, %v7424_v57  ;;  %vm1150_vm7 = vcmp.lt.s32.totalorder %v7379_v53, 0  ;;  %6880 = vpow2.f32 %v4795_v11  ;;  %v4898_v30 = vld [vmem:[%s9847_s3 + $0x2b0] sm:$0xff] }
  0x26   : > { %6225 = vmatprep.subr.bf16.mxu1 %v7283_v6  ;;  %6351 = vmatpush3.bf16.msra.mxu0 %v7264_v63  ;;  %v7437_v34 = vadd.s32 18, %v7379_v53  ;;  %v395_v25 = vmax.f32 %v7420_v21, 0.0  ;;  %v766_v36 = vshrl.u32 %v7407_v10, 4  ;;  %v7442_v37 = vadd.f32 %v7276_v3, %v317_v22  ;;  %vm7453_vm10 = vmand %vm1150_vm7, %vm1114_vm6 }
  0x27   : > { %6353 = vmatprep.subr.bf16.mxu0 %v7291_v12  ;;  %vm1115_vm8 = vcmp.ne.s32.totalorder %v7413_v17, 0  ;;  %vm1151_vm9 = vcmp.lt.s32.totalorder %v7413_v17, 0  ;;  %v318_v45 = vmul.f32 %v7258_v60, %v275_v24  ;;  %v319_v46 = vmul.f32 %v7258_v60, %v276_v31  ;;  %v1533_v31 = vld [vmem:[#allocation2 + $0x16] sm:$0xff] }
  0x28   : > { %v4796_v58 = vmul.f32 -1.442695, %v395_v25  ;;  %v767_v59 = vmul.u32 18, %v766_v36  ;;  %v396_v61 = vmax.f32 %v7442_v37, 0.0  ;;  %v777_v2 = vshrl.u32 %v7425_v23, 4  ;;  %vm7492_vm11 = vmand %vm1151_vm9, %vm1115_vm8 }
  0x29   : > { %6227 = vmatpush3.bf16.msra.mxu1 %v7283_v6  ;;  %v7458_v6 = vadd.s32 18, %v7413_v17  ;;  %v7472_v10 = vadd.f32 %v7276_v3, %v318_v45  ;;  %v7475_v11 = vmul.u32.u64.low 3817748708, %v7245_v55  ;;  %v7476_v22 = vmul.u32.u64.high 3817748708, %v7245_v55, %v7475_v11 }
  0x2a   : > { %6229 = vmatprep.subr.bf16.mxu1 %v7293_v13  ;;  %6355 = vmatpush3.bf16.msra.mxu0 %v7291_v12  ;;  %6882 = vpow2.f32 %v4796_v58  ;;  %v7479_v24 = vsub.s32 %v7230_v48, %v767_v59  ;;  %v4797_v23 = vmul.f32 -1.442695, %v396_v61  ;;  %v1258_v36 = vsel %vm7453_vm10, %v7437_v34, %v7379_v53 }
  0x2b   : > { %v6875_v1 = vpop.eup %6874  ;;  %6357 = vmatprep.subr.bf16.mxu0 %v7303_v20  ;;  %v778_v48 = vmul.u32 18, %v777_v2  ;;  %v397_v58 = vmax.f32 %v7472_v10, 0.0  ;;  %v7498_v59 = vadd.f32 %v7276_v3, %v319_v46  ;;  %v6236_v53 = vpack.c.bf16 %v1519_v8, %v1518_v26 }
  0x2c   : > { %v535_v57 = vadd.f32 1.0, %v6875_v1  ;;  %vm1116_vm12 = vcmp.ne.s32.totalorder %v7479_v24, 0  ;;  %vm1152_vm13 = vcmp.lt.s32.totalorder %v7479_v24, 0  ;;  %vm7515_vm14 = vcmp.lt.s32.totalorder %v1256_v4, 16 }
  0x2d   : > { %6231 = vmatpush3.bf16.msra.mxu1 %v7293_v13  ;;  %v6877_v13 = vpop.eup %6876  ;;  %v7506_v46 = vsub.s32 %v7242_v54, %v778_v48  ;;  %v4798_v1 = vmul.f32 -1.442695, %v397_v58  ;;  %v1259_v54 = vsel %vm7492_vm11, %v7458_v6, %v7413_v17  ;;  %v788_v8 = vshrl.u32 %v7476_v22, 4  ;;  %vm7534_vm1 = vmand %vm1152_vm13, %vm1116_vm12  ;;  %v4897_v6 = vld [vmem:[%s9847_s3 + $0x2a8] sm:$0xff] }
  0x2e   : > { %6359 = vmatpush3.bf16.msra.mxu0 %v7303_v20  ;;  %6884 = vrcp.f32 %v535_v57  ;;  %6233 = vmatprep.subr.bf16.mxu1 %v7334_v35  ;;  %v6879_v34 = vpop.eup %6878  ;;  %v536_v51 = vadd.f32 1.0, %v6877_v13  ;;  %v398_v11 = vmax.f32 %v7498_v59, 0.0  ;;  %v1224_v7 = vadd.s32 18, %v7479_v24 }
  0x2f   : > { %6361 = vmatprep.subr.bf16.mxu0 %v7371_v49  ;;  %6886 = vpow2.f32 %v4797_v23  ;;  %v537_v26 = vadd.f32 1.0, %v6879_v34  ;;  %v6881_v57 = vpop.eup %6880  ;;  %vm1117_vm15 = vcmp.ne.s32.totalorder %v7506_v46, 0  ;;  %vm1153_vm0 = vcmp.lt.s32.totalorder %v7506_v46, 0 }
  0x30   : > { %5459 = vmatmul.mubr.f32.vlgmr.msra.gmra.mrb[0].mxu1 %v1533_v31  ;;  %6888 = vrcp.f32 %v536_v51  ;;  %v538_v47 = vadd.f32 1.0, %v6881_v57  ;;  %v7539_v17 = vadd.s32 18, %v7506_v46  ;;  %v789_v22 = vmul.u32 18, %v788_v8  ;;  %vm7556_vm3 = vmand %vm1153_vm0, %vm1117_vm15  ;;  %v278_v51 = vld [vmem:[%s7207_s8 + $0x48] sm:$0xff] }
  0x31   : > { %6235 = vmatpush3.bf16.msra.mxu1 %v7334_v35  ;;  %6890 = vrcp.f32 %v537_v26  ;;  %v4896_v35 = vld [vmem:[%s9847_s3 + $0x2a0] sm:$0xff]  ;;  %vm7552_vm2 = vcmp.lt.s32.totalorder %v1257_v41, 16  ;;  %v4799_v45 = vmul.f32 -1.442695, %v398_v11  ;;  %vm7572_vm4 = vcmp.lt.s32.totalorder %v1258_v36, 16  ;;  %v1521_v26 = vld [vmem:[%s9847_s3 + $0x28] sm:$0xff] }
  0x32   : > { %6237 = vmatprep.subr.bf16.mxu1 %v6236_v53  ;;  %6892 = vpow2.f32 %v4798_v1  ;;  %v7563_v48 = vmul.u32.u64.low 3817748708, %v7262_v62  ;;  %v7564_v13 = vmul.u32.u64.high 3817748708, %v7262_v62, %v7563_v48  ;;  %v9986_v5 = vmov 0  ;;  %v1520_v1 = vld [vmem:[%s9847_s3 + $0x20] sm:$0xff] }
  0x33   : > { %v9987_v5 = vsel %vm7572_vm4, 4294967295, %v9986_v5  ;;  %6894 = vrcp.f32 %v538_v47  ;;  %v7577_v41 = vsub.s32 %v7245_v55, %v789_v22  ;;  %v320_v34 = vmul.f32 %v7258_v60, %v277_v40 }
  0x34   : > { %9988 = vst [vmem:[#allocation3_spill] sm:$0xff] %v9987_v5  ;;  %v7587_v8 = vpack.c.bf16 %v4897_v6, %v4896_v35  ;;  %6896 = vpow2.f32 %v4799_v45  ;;  %v7590_v36 = vmul.u32.u64.low 3817748708, %v7301_v19  ;;  %v7591_v55 = vmul.u32.u64.high 3817748708, %v7301_v19, %v7590_v36  ;;  %v6883_v57 = vpop.eup %6882 }
  0x35   : > { %6239 = vmatpush3.bf16.msra.mxu1 %v6236_v53  ;;  %vm7593_vm5 = vcmp.lt.s32.totalorder %v1259_v54, 16  ;;  %v9989_v40 = vmov 0  ;;  %v1260_v47 = vsel %vm7534_vm1, %v1224_v7, %v7479_v24  ;;  %v1261_v53 = vsel %vm7556_vm3, %v7539_v17, %v7506_v46  ;;  %v279_v46 = vld [vmem:[%s7207_s8 + $0x50] sm:$0xff] }
  0x36   : > { %v9990_v40 = vsel %vm7593_vm5, 4294967295, %v9989_v40  ;;  %v7604_v35 = vpack.c.bf16 %v4899_v52, %v4898_v30  ;;  %v7607_v6 = vadd.f32 %v7276_v3, %v320_v34  ;;  %v539_v22 = vadd.f32 1.0, %v6883_v57 }
  0x37   : > { %9991 = vst [vmem:[#allocation4_spill] sm:$0xff] %v9990_v40  ;;  %v799_v54 = vshrl.u32 %v7564_v13, 4  ;;  %v321_v45 = vmul.f32 %v7258_v60, %v278_v51  ;;  %v6240_v48 = vpack.c.bf16 %v1521_v26, %v1520_v1  ;;  %vm1118_vm6 = vcmp.ne.s32.totalorder %v7577_v41, 0 }
  0x38   : > { %v6885_v36 = vpop.eup %6884  ;;  %v399_v24 = vmax.f32 %v7607_v6, 0.0  ;;  %v7614_v7 = vmul.u32.u64.low 3817748708, %v7314_v28  ;;  %v7615_v4 = vmul.u32.u64.high 3817748708, %v7314_v28, %v7614_v7  ;;  %6898 = vrcp.f32 %v539_v22 }
  0x39   : > { %v6887_v17 = vpop.eup %6886  ;;  %v643_v31 = vmul.f32 %v6885_v36, %v391_v29  ;;  %vm1154_vm7 = vcmp.lt.s32.totalorder %v7577_v41, 0  ;;  %v800_v13 = vmul.u32 18, %v799_v54  ;;  %6241 = vmatprep.subr.bf16.mxu1 %v6240_v48  ;;  %v810_v34 = vshrl.u32 %v7591_v55, 4 }
  0x3a   : > { %v540_v30 = vadd.f32 1.0, %v6887_v17  ;;  %v4800_v52 = vmul.f32 -1.442695, %v399_v24  ;;  %v7625_v51 = vadd.f32 %v7276_v3, %v321_v45  ;;  %6243 = vmatpush3.bf16.msra.mxu1 %v6240_v48  ;;  %v6889_v1 = vpop.eup %6888  ;;  %vm7629_vm8 = vcmp.lt.s32.totalorder %v1260_v47, 16  ;;  %vm7646_vm9 = vmand %vm1154_vm7, %vm1118_vm6 }
  0x3b   : > { %v1400_v16 = vsel %vm7515_vm14, %v643_v31, 0.0  ;;  %v9992_v29 = vmov 0  ;;  %v1226_v26 = vadd.s32 18, %v7577_v41  ;;  %v7635_v57 = vsub.s32 %v7262_v62, %v800_v13  ;;  %v6891_v55 = vpop.eup %6890  ;;  %7026 = vmatprep.mubr.msk.f32.mxu0 %vm7515_vm14, %v643_v31 }
  0x3c   : > { %v9993_v29 = vsel %vm7629_vm8, 4294967295, %v9992_v29  ;;  %v322_v22 = vmul.f32 %v7258_v60, %v279_v46  ;;  %1444 = vst [vmem:[#allocation2 + $0x20] sm:$0xff] %v1400_v16  ;;  %v644_v54 = vmul.f32 %v6889_v1, %v392_v43  ;;  %6900 = vrcp.f32 %v540_v30  ;;  %v6893_v48 = vpop.eup %6892 }
  0x3d   : > { %9994 = vst [vmem:[#allocation5_spill] sm:$0xff] %v9993_v29  ;;  %v811_v62 = vmul.u32 18, %v810_v34  ;;  %v400_v45 = vmax.f32 %v7625_v51, 0.0  ;;  %v645_v36 = vmul.f32 %v6891_v55, %v393_v50  ;;  %vm1119_vm10 = vcmp.ne.s32.totalorder %v7635_v57, 0  ;;  %v6895_v43 = vpop.eup %6894  ;;  %v304_v29 = vld [vmem:[%s7207_s8 + $0x118] sm:$0xff] }
  0x3e   : > { %vm1155_vm11 = vcmp.lt.s32.totalorder %v7635_v57, 0  ;;  %v1227_v33 = vadd.s32 18, %v7635_v57  ;;  %v1401_v7 = vsel %vm7552_vm2, %v644_v54, 0.0  ;;  %vm7658_vm12 = vcmp.lt.s32.totalorder %v1261_v53, 16  ;;  %v6897_v50 = vpop.eup %6896  ;;  %7027 = vmatmul.mubr.msk.f32.vlgmr.msra.gmra.mrb[0].mxu0 %vm7552_vm2, %v644_v54  ;;  %v281_v54 = vld [vmem:[%s7207_s8 + $0x60] sm:$0xff] }
  0x3f   : > { %v9997_v46 = vmov 0  ;;  %v541_v17 = vadd.f32 1.0, %v6893_v48  ;;  %vm7662_vm13 = vmand %vm1155_vm11, %vm1119_vm10  ;;  %6902 = vpow2.f32 %v4800_v52  ;;  %v7667_v38 = vsub.s32 %v7301_v19, %v811_v62  ;;  %1445 = vst [vmem:[#allocation2 + $0x28] sm:$0xff] %v1401_v7  ;;  %v280_v19 = vld [vmem:[%s7207_s8 + $0x58] sm:$0xff]  ;;  %6363 = vmatpush3.bf16.msra.mxu0 %v7371_v49  ;;  %7028 = vmatprep.mubr.msk.f32.mxu0 %vm7572_vm4, %v645_v36  ;;  %v4901_v49 = vld [vmem:[%s9847_s3 + $0x2c8] sm:$0xff] }
  0x40   : > { %v9998_v46 = vsel %vm7658_vm12, 4294967295, %v9997_v46  ;;  %v1402_v53 = vsel %vm7572_vm4, %v645_v36, 0.0  ;;  %v646_v13 = vmul.f32 %v6895_v43, %v394_v0  ;;  %v1262_v30 = vsel %vm7646_vm9, %v1226_v26, %v7577_v41  ;;  %v4900_v0 = vld [vmem:[%s9847_s3 + $0x2c0] sm:$0xff]  ;;  %6365 = vmatprep.subr.bf16.mxu0 %v7415_v18  ;;  %v4903_v43 = vld [vmem:[%s9847_s3 + $0x2d8] sm:$0xff] }
  0x41   : > { %9999 = vst [vmem:[#allocation6_spill] sm:$0xff] %v9998_v46  ;;  %v4801_v52 = vmul.f32 -1.442695, %v400_v45  ;;  %1446 = vst [vmem:[#allocation2 + $0x30] sm:$0xff] %v1402_v53  ;;  %6904 = vrcp.f32 %v541_v17  ;;  %v542_v34 = vadd.f32 1.0, %v6897_v50  ;;  %v1263_v44 = vsel %vm7662_vm13, %v1227_v33, %v7635_v57 }
  0x42   : > { %vm1120_vm15 = vcmp.ne.s32.totalorder %v7667_v38, 0  ;;  %v1403_v41 = vsel %vm7593_vm5, %v646_v13, 0.0  ;;  %vm1156_vm0 = vcmp.lt.s32.totalorder %v7667_v38, 0  ;;  %v7699_v1 = vadd.s32 18, %v7667_v38  ;;  %v6899_v47 = vpop.eup %6898  ;;  %7029 = vmatmul.mubr.msk.f32.gmra.mrb[2].mxu0 %vm7593_vm5, %v646_v13 }
  0x43   : > { %6906 = vpow2.f32 %v4801_v52  ;;  %1447 = vst [vmem:[#allocation2 + $0x38] sm:$0xff] %v1403_v41  ;;  %vm7701_vm1 = vmand %vm1156_vm0, %vm1120_vm15  ;;  %v821_v26 = vshrl.u32 %v7615_v4, 4  ;;  %v7707_v57 = vadd.f32 %v7276_v3, %v322_v22  ;;  %v323_v55 = vmul.f32 %v7258_v60, %v280_v19  ;;  %v1534_v62 = vld [vmem:[#allocation2 + $0x1e] sm:$0xff]  ;;  %v4902_v22 = vld [vmem:[%s9847_s3 + $0x2d0] sm:$0xff]  ;;  %6367 = vmatpush3.bf16.msra.mxu0 %v7415_v18 }
  0x44   : > { %6908 = vrcp.f32 %v542_v34  ;;  %vm7713_vm3 = vcmp.lt.s32.totalorder %v1262_v30, 16  ;;  %v10004_v48 = vmov 0  ;;  %v7717_v36 = vpack.c.bf16 %v4901_v49, %v4900_v0  ;;  %5461 = vmatprep.mubr.f32.mxu1 %v1534_v62  ;;  %6369 = vmatprep.subr.bf16.mxu0 %v7587_v8 }
  0x45   : > { %v10005_v48 = vsel %vm7713_vm3, 4294967295, %v10004_v48  ;;  %v7720_v33 = vmul.u32.u64.low 3817748708, %v7322_v32  ;;  %v7721_v4 = vmul.u32.u64.high 3817748708, %v7322_v32, %v7720_v33  ;;  %v647_v7 = vmul.f32 %v6899_v47, %v395_v25 }
  0x46   : > { %10006 = vst [vmem:[#allocation7_spill] sm:$0xff] %v10005_v48  ;;  %vm7732_vm6 = vcmp.lt.s32.totalorder %v1263_v44, 16  ;;  %v10007_v17 = vmov 0  ;;  %v1264_v31 = vsel %vm7701_vm1, %v7699_v1, %v7667_v38  ;;  %v822_v50 = vmul.u32 18, %v821_v26  ;;  %v6901_v30 = vpop.eup %6900  ;;  %v1535_v52 = vld [vmem:[#allocation2 + $0x26] sm:$0xff]  ;;  %v284_v1 = vld [vmem:[%s7207_s8 + $0x78] sm:$0xff] }
  0x47   : > { %v10008_v17 = vsel %vm7732_vm6, 4294967295, %v10007_v17  ;;  %v401_v53 = vmax.f32 %v7707_v57, 0.0  ;;  %v7743_v13 = vadd.f32 %v7276_v3, %v323_v55  ;;  %v324_v25 = vmul.f32 %v7258_v60, %v281_v54  ;;  %5462 = vmatmul.mubr.f32.gmra.mrb[2].mxu1 %v1535_v52  ;;  %7030 = vmatprep.mubr.msk.f32.mxu0 %vm7629_vm8, %v647_v7  ;;  %v282_v54 = vld [vmem:[%s7207_s8 + $0x68] sm:$0xff] }
  0x48   : > { %10009 = vst [vmem:[#allocation8_spill] sm:$0xff] %v10008_v17  ;;  %v7746_v18 = vmul.u32.u64.low 3817748708, %v7346_v39  ;;  %v7747_v21 = vmul.u32.u64.high 3817748708, %v7346_v39, %v7746_v18  ;;  %v1404_v19 = vsel %vm7629_vm8, %v647_v7, 0.0  ;;  %v7753_v34 = vsub.s32 %v7314_v28, %v822_v50  ;;  %v1536_v49 = vld [vmem:[#allocation2 + $0x2e] sm:$0xff]  ;;  %6371 = vmatpush3.bf16.msra.mxu0 %v7587_v8 }
  0x49   : > { %v4802_v44 = vmul.f32 -1.442695, %v401_v53  ;;  %v7757_v0 = vpack.c.bf16 %v4903_v43, %v4902_v22  ;;  %1448 = vst [vmem:[#allocation2 + $0x40] sm:$0xff] %v1404_v19  ;;  %v648_v41 = vmul.f32 %v6901_v30, %v396_v61  ;;  %v832_v26 = vshrl.u32 %v7721_v4, 4  ;;  %v6903_v47 = vpop.eup %6902  ;;  %5464 = vmatprep.mubr.f32.mxu1 %v1536_v49  ;;  %6373 = vmatprep.subr.bf16.mxu0 %v7604_v35  ;;  %v283_v4 = vld [vmem:[%s7207_s8 + $0x70] sm:$0xff] }
  0x4a   : > { %v402_v55 = vmax.f32 %v7743_v13, 0.0  ;;  %v7766_v28 = vadd.f32 %v7276_v3, %v324_v25  ;;  %vm1121_vm7 = vcmp.ne.s32.totalorder %v7753_v34, 0  ;;  %vm1157_vm9 = vcmp.lt.s32.totalorder %v7753_v34, 0  ;;  %v1537_v37 = vld [vmem:[#allocation2 + $0x36] sm:$0xff] }
  0x4b   : > { %v1229_v62 = vadd.s32 18, %v7753_v34  ;;  %6910 = vpow2.f32 %v4802_v44  ;;  %v1405_v61 = vsel %vm7658_vm12, %v648_v41, 0.0  ;;  %v543_v33 = vadd.f32 1.0, %v6903_v47  ;;  %vm7776_vm10 = vmand %vm1157_vm9, %vm1121_vm7  ;;  %v6905_v43 = vpop.eup %6904  ;;  %7031 = vmatmul.mubr.msk.f32.gmra.mrb[4].mxu0 %vm7658_vm12, %v648_v41  ;;  %5465 = vmatmul.mubr.f32.gmra.mrb[4].mxu1 %v1537_v37  ;;  %v4904_v47 = vld [vmem:[%s9847_s3 + $0x2e0] sm:$0xff] }
  0x4c   : > { %v833_v22 = vmul.u32 18, %v832_v26  ;;  %v4803_v8 = vmul.f32 -1.442695, %v402_v55  ;;  %1449 = vst [vmem:[#allocation2 + $0x48] sm:$0xff] %v1405_v61  ;;  %v843_v7 = vshrl.u32 %v7747_v21, 4  ;;  %v403_v50 = vmax.f32 %v7766_v28, 0.0  ;;  %6375 = vmatpush3.bf16.msra.mxu0 %v7604_v35 }
  0x4d   : > { %v7787_v18 = vadd.s32 96, %v7133_v14  ;;  %v325_v25 = vmul.f32 %v7258_v60, %v282_v54  ;;  %v6907_v30 = vpop.eup %6906  ;;  %v649_v52 = vmul.f32 %v6905_v43, %v397_v58  ;;  %6912 = vrcp.f32 %v543_v33  ;;  %6377 = vmatprep.subr.bf16.mxu0 %v7717_v36  ;;  %v1523_v54 = vld [vmem:[%s9847_s3 + $0x38] sm:$0xff]  ;;  %v4905_v33 = vld [vmem:[%s9847_s3 + $0x2e8] sm:$0xff] }
  0x4e   : > { %v1265_v19 = vsel %vm7776_vm10, %v1229_v62, %v7753_v34  ;;  %v7796_v44 = vsub.s32 %v7322_v32, %v833_v22  ;;  %v6909_v21 = vpop.eup %6908  ;;  %v544_v49 = vadd.f32 1.0, %v6907_v30  ;;  %6914 = vpow2.f32 %v4803_v8  ;;  %v1522_v32 = vld [vmem:[%s9847_s3 + $0x30] sm:$0xff] }
  0x4f   : > { %v844_v41 = vmul.u32 18, %v843_v7  ;;  %v4804_v26 = vmul.f32 -1.442695, %v403_v50  ;;  %v1406_v10 = vsel %vm7713_vm3, %v649_v52, 0.0  ;;  %v650_v58 = vmul.f32 %v6909_v21, %v398_v11  ;;  %7032 = vmatprep.mubr.msk.f32.mxu0 %vm7713_vm3, %v649_v52 }
  0x50   : > { %vm1122_vm11 = vcmp.ne.s32.totalorder %v7796_v44, 0  ;;  %vm1158_vm13 = vcmp.lt.s32.totalorder %v7796_v44, 0  ;;  %v1538_v35 = vld [vmem:[#allocation2 + $0x3e] sm:$0xff]  ;;  %1450 = vst [vmem:[#allocation2 + $0x50] sm:$0xff] %v1406_v10  ;;  %6916 = vrcp.f32 %v544_v49  ;;  %v1230_v59 = vadd.s32 18, %v7796_v44  ;;  %6379 = vmatpush3.bf16.msra.mxu0 %v7717_v36 }
  0x51   : > { %v7815_v11 = vsub.s32 %v7346_v39, %v844_v41  ;;  %v7818_v34 = vadd.f32 %v7276_v3, %v325_v25  ;;  %5467 = vmatprep.mubr.f32.mxu1 %v1538_v35  ;;  %v1407_v62 = vsel %vm7732_vm6, %v650_v58, 0.0  ;;  %vm7828_vm15 = vmand %vm1158_vm13, %vm1122_vm11  ;;  %6918 = vpow2.f32 %v4804_v26  ;;  %7033 = vmatmul.mubr.msk.f32.gmra.mrb[6].mxu0 %vm7732_vm6, %v650_v58  ;;  %v285_v35 = vld [vmem:[%s7207_s8 + $0x80] sm:$0xff] }
  0x52   : > { %v7833_v39 = vmul.u32.u64.low 3817748708, %v7787_v18  ;;  %v7834_v61 = vmul.u32.u64.high 3817748708, %v7787_v18, %v7833_v39  ;;  %1451 = vst [vmem:[#allocation2 + $0x58] sm:$0xff] %v1407_v62  ;;  %vm7847_vm0 = vcmp.lt.s32.totalorder %v1264_v31, 16  ;;  %v10014_v22 = vmov 0  ;;  %6381 = vmatprep.subr.bf16.mxu0 %v7757_v0 }
  0x53   : > { %v10015_v22 = vsel %vm7847_vm0, 4294967295, %v10014_v22  ;;  %vm7851_vm7 = vcmp.lt.s32.totalorder %v1265_v19, 16  ;;  %v10017_v8 = vmov 0  ;;  %vm1123_vm9 = vcmp.ne.s32.totalorder %v7815_v11, 0  ;;  %v1539_v43 = vld [vmem:[#allocation2 + $0x46] sm:$0xff] }
  0x54   : > { %10016 = vst [vmem:[#allocation9_spill] sm:$0xff] %v10015_v22  ;;  %v10018_v8 = vsel %vm7851_vm7, 4294967295, %v10017_v8  ;;  %vm1159_vm10 = vcmp.lt.s32.totalorder %v7815_v11, 0  ;;  %v404_v16 = vmax.f32 %v7818_v34, 0.0  ;;  %v7860_v7 = vadd.s32 104, %v7133_v14  ;;  %5468 = vmatmul.mubr.f32.gmra.mrb[6].mxu1 %v1539_v43  ;;  %6383 = vmatpush3.bf16.msra.mxu0 %v7757_v0 }
  0x55   : > { %10019 = vst [vmem:[#allocation10_spill] sm:$0xff] %v10018_v8  ;;  %v6244_v38 = vpack.c.bf16 %v1523_v54, %v1522_v32  ;;  %v6911_v31 = vpop.eup %6910  ;;  %v1266_v25 = vsel %vm7828_vm15, %v1230_v59, %v7796_v44  ;;  %v6384_v30 = vpack.c.bf16 %v4905_v33, %v4904_v47  ;;  %v326_v36 = vmul.f32 %v7258_v60, %v283_v4  ;;  %vm7879_vm1 = vmand %vm1159_vm10, %vm1123_vm9 }
  0x56   : > { %v7869_v52 = vadd.s32 112, %v7133_v14  ;;  %v545_v19 = vadd.f32 1.0, %v6911_v31  ;;  %v1231_v21 = vadd.s32 18, %v7815_v11  ;;  %v854_v49 = vshrl.u32 %v7834_v61, 4 }
  0x57   : > { %v4805_v41 = vmul.f32 -1.442695, %v404_v16  ;;  %6245 = vmatprep.subr.bf16.mxu1 %v6244_v38  ;;  %v7884_v26 = vmul.u32.u64.low 3817748708, %v7860_v7  ;;  %v7885_v10 = vmul.u32.u64.high 3817748708, %v7860_v7, %v7884_v26  ;;  %v7888_v58 = vadd.f32 %v7276_v3, %v326_v36  ;;  %v6913_v59 = vpop.eup %6912  ;;  %v1540_v54 = vld [vmem:[#allocation2 + $0x4e] sm:$0xff]  ;;  %6385 = vmatprep.subr.bf16.mxu0 %v6384_v30 }
  0x58   : > { %6247 = vmatpush3.bf16.msra.mxu1 %v6244_v38  ;;  %v327_v32 = vmul.f32 %v7258_v60, %v284_v1  ;;  %6920 = vrcp.f32 %v545_v19  ;;  %v855_v47 = vmul.u32 18, %v854_v49  ;;  %v6915_v39 = vpop.eup %6914  ;;  %5470 = vmatprep.mubr.f32.mxu1 %v1540_v54  ;;  %v651_v61 = vmul.f32 %v6913_v59, %v399_v24 }
  0x59   : > { %v7894_v62 = vmul.u32.u64.low 3817748708, %v7869_v52  ;;  %v7895_v37 = vmul.u32.u64.high 3817748708, %v7869_v52, %v7894_v62  ;;  %6922 = vpow2.f32 %v4805_v41  ;;  %v405_v33 = vmax.f32 %v7888_v58, 0.0  ;;  %v1541_v43 = vld [vmem:[#allocation2 + $0x56] sm:$0xff]  ;;  %6387 = vmatpush3.bf16.msra.mxu0 %v6384_v30 }
  0x5a   : > { %v7901_v4 = vadd.f32 %v7276_v3, %v327_v32  ;;  %vm7903_vm11 = vcmp.lt.s32.totalorder %v1266_v25, 16  ;;  %v10022_v38 = vmov 0  ;;  %v546_v0 = vadd.f32 1.0, %v6915_v39  ;;  %v6917_v31 = vpop.eup %6916  ;;  %5471 = vmatmul.mubr.f32.gmra.mrb[8].mxu1 %v1541_v43  ;;  %7034 = vmatprep.mubr.msk.f32.mxu0 %vm7847_vm0, %v651_v61  ;;  %v4906_v30 = vld [vmem:[%s9847_s3 + $0x2f0] sm:$0xff]  ;;  %v4907_v32 = vld [vmem:[%s9847_s3 + $0x2f8] sm:$0xff] }
  0x5b   : > { %v10023_v38 = vsel %vm7903_vm11, 4294967295, %v10022_v38  ;;  %v1267_v1 = vsel %vm7879_vm1, %v1231_v21, %v7815_v11  ;;  %v7911_v6 = vsub.s32 %v7787_v18, %v855_v47  ;;  %v328_v24 = vmul.f32 %v7258_v60, %v285_v35  ;;  %v6919_v41 = vpop.eup %6918 }
  0x5c   : > { %10024 = vst [vmem:[#allocation11_spill] sm:$0xff] %v10023_v38  ;;  %v1408_v36 = vsel %vm7847_vm0, %v651_v61, 0.0  ;;  %v865_v25 = vshrl.u32 %v7885_v10, 4  ;;  %v4806_v19 = vmul.f32 -1.442695, %v405_v33  ;;  %v406_v49 = vmax.f32 %v7901_v4, 0.0 }
  0x5d   : > { %1452 = vst [vmem:[#allocation2 + $0x60] sm:$0xff] %v1408_v36  ;;  %v652_v18 = vmul.f32 %v6917_v31, %v400_v45  ;;  %6924 = vrcp.f32 %v546_v0  ;;  %vm1124_vm13 = vcmp.ne.s32.totalorder %v7911_v6, 0  ;;  %v7926_v11 = vadd.s32 120, %v7133_v14 }
  0x5e   : > { %v547_v21 = vadd.f32 1.0, %v6919_v41  ;;  %vm1160_vm15 = vcmp.lt.s32.totalorder %v7911_v6, 0  ;;  %v866_v44 = vmul.u32 18, %v865_v25  ;;  %6926 = vpow2.f32 %v4806_v19  ;;  %v286_v25 = vld [vmem:[%s7207_s8 + $0x88] sm:$0xff] }
  0x5f   : > { %v1409_v26 = vsel %vm7851_vm7, %v652_v18, 0.0  ;;  %v876_v10 = vshrl.u32 %v7895_v37, 4  ;;  %v4807_v51 = vmul.f32 -1.442695, %v406_v49  ;;  %v7935_v45 = vadd.f32 %v7276_v3, %v328_v24  ;;  %7035 = vmatmul.mubr.msk.f32.gmra.mrb[8].mxu0 %vm7851_vm7, %v652_v18  ;;  %vm7958_vm10 = vmand %vm1160_vm15, %vm1124_vm13 }
  0x60   : > { %1453 = vst [vmem:[#allocation2 + $0x68] sm:$0xff] %v1409_v26  ;;  %6928 = vrcp.f32 %v547_v21  ;;  %v1232_v35 = vadd.s32 18, %v7911_v6  ;;  %v867_v59 = vsub.s32 %v7860_v7, %v866_v44  ;;  %v7948_v54 = vadd.s32 128, %v7133_v14  ;;  %v287_v26 = vld [vmem:[%s7207_s8 + $0x90] sm:$0xff] }
  0x61   : > { %vm7950_vm9 = vcmp.lt.s32.totalorder %v1267_v1, 16  ;;  %v10025_v47 = vmov 0  ;;  %v877_v37 = vmul.u32 18, %v876_v10  ;;  %6930 = vpow2.f32 %v4807_v51 }
  0x62   : > { %v10026_v47 = vsel %vm7950_vm9, 4294967295, %v10025_v47  ;;  %v407_v7 = vmax.f32 %v7935_v45, 0.0  ;;  %vm1125_vm1 = vcmp.ne.s32.totalorder %v867_v59, 0  ;;  %vm1161_vm7 = vcmp.lt.s32.totalorder %v867_v59, 0  ;;  %v6921_v43 = vpop.eup %6920 }
  0x63   : > { %10027 = vst [vmem:[#allocation12_spill] sm:$0xff] %v10026_v47  ;;  %v1233_v39 = vadd.s32 18, %v867_v59  ;;  %v6388_v61 = vpack.c.bf16 %v4907_v32, %v4906_v30  ;;  %vm7963_vm0 = vmand %vm1161_vm7, %vm1125_vm1  ;;  %v7968_v1 = vsub.s32 %v7869_v52, %v877_v37  ;;  %v6923_v19 = vpop.eup %6922  ;;  %v653_v18 = vmul.f32 %v6921_v43, %v401_v53 }
  0x64   : > { %v7971_v24 = vmul.u32.u64.low 3817748708, %v7926_v11  ;;  %v7972_v31 = vmul.u32.u64.high 3817748708, %v7926_v11, %v7971_v24  ;;  %v4808_v36 = vmul.f32 -1.442695, %v407_v7  ;;  %v1542_v41 = vld [vmem:[#allocation2 + $0x5e] sm:$0xff]  ;;  %v1268_v21 = vsel %vm7958_vm10, %v1232_v35, %v7911_v6 }
  0x65   : > { %v7983_v52 = vmul.u32.u64.low 3817748708, %v7948_v54  ;;  %v7984_v44 = vmul.u32.u64.high 3817748708, %v7948_v54, %v7983_v52  ;;  %6389 = vmatprep.subr.bf16.mxu0 %v6388_v61  ;;  %5473 = vmatprep.mubr.f32.mxu1 %v1542_v41  ;;  %v548_v10 = vadd.f32 1.0, %v6923_v19  ;;  %v1269_v51 = vsel %vm7963_vm0, %v1233_v39, %v867_v59  ;;  %v1525_v19 = vld [vmem:[%s9847_s3 + $0x48] sm:$0xff] }
  0x66   : > { %vm1126_vm7 = vcmp.ne.s32.totalorder %v7968_v1, 0  ;;  %vm1162_vm13 = vcmp.lt.s32.totalorder %v7968_v1, 0  ;;  %6391 = vmatpush3.bf16.msra.mxu0 %v6388_v61  ;;  %v1410_v57 = vsel %vm7903_vm11, %v653_v18, 0.0  ;;  %v7998_v6 = vadd.s32 18, %v7968_v1  ;;  %7036 = vmatprep.mubr.msk.f32.mxu0 %vm7903_vm11, %v653_v18 }
  0x67   : > { %vm7993_vm15 = vmand %vm1162_vm13, %vm1126_vm7  ;;  %6932 = vpow2.f32 %v4808_v36  ;;  %v329_v30 = vmul.f32 %v7258_v60, %v286_v25  ;;  %v6925_v32 = vpop.eup %6924  ;;  %v1543_v35 = vld [vmem:[#allocation2 + $0x66] sm:$0xff]  ;;  %1454 = vst [vmem:[#allocation2 + $0x70] sm:$0xff] %v1410_v57  ;;  %vm8003_vm0 = vcmp.lt.s32.totalorder %v1268_v21, 16  ;;  %v10034_v59 = vmov 0 }
  0x68   : > { %v10035_v59 = vsel %vm8003_vm0, 4294967295, %v10034_v59  ;;  %6934 = vrcp.f32 %v548_v10  ;;  %v887_v62 = vshrl.u32 %v7972_v31, 4  ;;  %v330_v37 = vmul.f32 %v7258_v60, %v287_v26  ;;  %v6927_v39 = vpop.eup %6926  ;;  %5474 = vmatmul.mubr.f32.gmra.mrb[10].mxu1 %v1543_v35  ;;  %v1524_v25 = vld [vmem:[%s9847_s3 + $0x40] sm:$0xff] }
  0x69   : > { %10036 = vst [vmem:[#allocation13_spill] sm:$0xff] %v10035_v59  ;;  %v654_v61 = vmul.f32 %v6925_v32, %v402_v55  ;;  %v898_v43 = vshrl.u32 %v7984_v44, 4  ;;  %v8013_v0 = vadd.f32 %v7276_v3, %v329_v30  ;;  %v8016_v24 = vadd.s32 136, %v7133_v14 }
  0x6a   : > { %vm8018_vm10 = vcmp.lt.s32.totalorder %v1269_v51, 16  ;;  %v10037_v36 = vmov 0  ;;  %v549_v31 = vadd.f32 1.0, %v6927_v39  ;;  %v1270_v60 = vsel %vm7993_vm15, %v7998_v6, %v7968_v1  ;;  %v6929_v41 = vpop.eup %6928 }
  0x6b   : > { %v10038_v36 = vsel %vm8018_vm10, 4294967295, %v10037_v36  ;;  %v888_v13 = vmul.u32 18, %v887_v62  ;;  %v8027_v55 = vadd.f32 %v7276_v3, %v330_v37  ;;  %v1411_v18 = vsel %vm7950_vm9, %v654_v61, 0.0  ;;  %v6931_v3 = vpop.eup %6930  ;;  %7037 = vmatmul.mubr.msk.f32.gmra.mrb[10].mxu0 %vm7950_vm9, %v654_v61  ;;  %v288_v61 = vld [vmem:[%s7207_s8 + $0x98] sm:$0xff] }
  0x6c   : > { %10039 = vst [vmem:[#allocation14_spill] sm:$0xff] %v10038_v36  ;;  %v899_v21 = vmul.u32 18, %v898_v43  ;;  %v408_v52 = vmax.f32 %v8013_v0, 0.0  ;;  %v8039_v1 = vadd.s32 144, %v7133_v14  ;;  %1455 = vst [vmem:[#allocation2 + $0x78] sm:$0xff] %v1411_v18  ;;  %v655_v44 = vmul.f32 %v6929_v41, %v403_v50  ;;  %v4908_v50 = vld [vmem:[%s9847_s3 + $0x300] sm:$0xff] }
  0x6d   : > { %6936 = vrcp.f32 %v549_v31  ;;  %v889_v26 = vsub.s32 %v7926_v11, %v888_v13  ;;  %v9866_v10 = vmax.f32 %v8027_v55, 0.0  ;;  %v550_v51 = vadd.f32 1.0, %v6931_v3  ;;  %v4909_v11 = vld [vmem:[%s9847_s3 + $0x308] sm:$0xff]  ;;  %v289_v41 = vld [vmem:[%s7207_s8 + $0xa0] sm:$0xff] }
  0x6e   : > { %v8048_v57 = vsub.s32 %v7948_v54, %v899_v21  ;;  %v4809_v53 = vmul.f32 -1.442695, %v408_v52  ;;  %v6248_v6 = vpack.c.bf16 %v1525_v19, %v1524_v25  ;;  %v1412_v30 = vsel %vm8003_vm0, %v655_v44, 0.0  ;;  %v1544_v54 = vld [vmem:[#allocation2 + $0x6e] sm:$0xff]  ;;  %7038 = vmatprep.mubr.msk.f32.mxu0 %vm8003_vm0, %v655_v44 }
  0x6f   : > { %vm1127_vm1 = vcmp.ne.s32.totalorder %v889_v26, 0  ;;  %vm1163_vm7 = vcmp.lt.s32.totalorder %v889_v26, 0  ;;  %v1235_v28 = vadd.s32 18, %v889_v26  ;;  %1456 = vst [vmem:[#allocation2 + $0x80] sm:$0xff] %v1412_v30  ;;  %6938 = vrcp.f32 %v550_v51  ;;  %5476 = vmatprep.mubr.f32.mxu1 %v1544_v54  ;;  %v290_v30 = vld [vmem:[%s7207_s8 + $0xa8] sm:$0xff] }
  0x70   : > { %vm1199_vm13 = vmand %vm1163_vm7, %vm1127_vm1  ;;  %vm1128_vm15 = vcmp.ne.s32.totalorder %v8048_v57, 0  ;;  %vm1164_vm9 = vcmp.lt.s32.totalorder %v8048_v57, 0  ;;  %v1236_v32 = vadd.s32 18, %v8048_v57  ;;  %6249 = vmatprep.subr.bf16.mxu1 %v6248_v6  ;;  %6940 = vpow2.f32 %v4809_v53  ;;  %v8100_v53 = vld [vmem:[%s9845_s1] ss:$0 sm:$0xff] }
  0x71   : > { %v1271_v35 = vsel %vm1199_vm13, %v1235_v28, %v889_v26  ;;  %vm8065_vm11 = vmand %vm1164_vm9, %vm1128_vm15  ;;  %v8070_v37 = vmul.u32.u64.low 3817748708, %v8016_v24  ;;  %v8071_v39 = vmul.u32.u64.high 3817748708, %v8016_v24, %v8070_v37  ;;  %6251 = vmatpush3.bf16.msra.mxu1 %v6248_v6  ;;  %v6933_v43 = vpop.eup %6932  ;;  %vm8074_vm1 = vcmp.lt.s32.totalorder %v1270_v60, 16 }
  0x72   : > { %v10042_v31 = vmov 0  ;;  %vm8078_vm7 = vcmp.lt.s32.totalorder %v1271_v35, 16  ;;  %v10045_v13 = vmov 0  ;;  %v4810_v25 = vmul.f32 -1.442695, %v9866_v10  ;;  %v6935_v18 = vpop.eup %6934 }
  0x73   : > { %v10043_v31 = vsel %vm8074_vm1, 4294967295, %v10042_v31  ;;  %v10046_v13 = vsel %vm8078_vm7, 4294967295, %v10045_v13  ;;  %v8084_v19 = vpack.c.bf16 %v4909_v11, %v4908_v50  ;;  %v551_v21 = vadd.f32 1.0, %v6933_v43  ;;  %v1545_v26 = vld [vmem:[#allocation2 + $0x76] sm:$0xff]  ;;  %v8117_v11 = vld [vmem:[%s9846_s2] ss:$0 sm:$0xff] }
  0x74   : > { %10044 = vst [vmem:[#allocation15_spill] sm:$0xff] %v10043_v31  ;;  %10047 = vst [vmem:[#allocation16_spill] sm:$0xff] %v10046_v13  ;;  %v1272_v60 = vsel %vm8065_vm11, %v1236_v32, %v8048_v57  ;;  %v8091_v3 = vmul.u32.u64.low 3817748708, %v8039_v1  ;;  %v8092_v44 = vmul.u32.u64.high 3817748708, %v8039_v1, %v8091_v3  ;;  %v656_v51 = vmul.f32 %v6935_v18, %v404_v16  ;;  %5477 = vmatmul.mubr.f32.gmra.mrb[12].mxu1 %v1545_v26 }
  0x75   : > { %6942 = vpow2.f32 %v4810_v25  ;;  %6393 = vmatprep.subr.bf16.mxu0 %v8084_v19  ;;  %v331_v6 = vmul.f32 %v8100_v53, %v288_v61  ;;  %v8104_v57 = vadd.s32 152, %v7133_v14  ;;  %v909_v28 = vshrl.u32 %v8071_v39, 4 }
  0x76   : > { %6944 = vrcp.f32 %v551_v21  ;;  %v332_v34 = vmul.f32 %v8100_v53, %v289_v41  ;;  %v8110_v16 = vadd.s32 160, %v7133_v14  ;;  %v1413_v50 = vsel %vm8018_vm10, %v656_v51, 0.0  ;;  %v1546_v37 = vld [vmem:[#allocation2 + $0x7e] sm:$0xff]  ;;  %7039 = vmatmul.mubr.msk.f32.gmra.mrb[12].mxu0 %vm8018_vm10, %v656_v51 }
  0x77   : > { %v8120_v54 = vadd.f32 %v8117_v11, %v331_v6  ;;  %v8123_v32 = vmul.u32.u64.low 3817748708, %v8104_v57  ;;  %v8124_v35 = vmul.u32.u64.high 3817748708, %v8104_v57, %v8123_v32  ;;  %v6937_v62 = vpop.eup %6936  ;;  %1457 = vst [vmem:[#allocation2 + $0x88] sm:$0xff] %v1413_v50  ;;  %v910_v39 = vmul.u32 18, %v909_v28  ;;  %5479 = vmatprep.mubr.f32.mxu1 %v1546_v37 }
  0x78   : > { %v920_v61 = vshrl.u32 %v8092_v44, 4  ;;  %v8130_v43 = vadd.f32 %v8117_v11, %v332_v34  ;;  %v333_v25 = vmul.f32 %v8100_v53, %v290_v30  ;;  %v657_v41 = vmul.f32 %v6937_v62, %v405_v33 }
  0x79   : > { %v9865_v18 = vmax.f32 %v8120_v54, 0.0  ;;  %v8137_v21 = vmul.u32.u64.low 3817748708, %v8110_v16  ;;  %v8138_v3 = vmul.u32.u64.high 3817748708, %v8110_v16, %v8137_v21  ;;  %vm8140_vm11 = vcmp.lt.s32.totalorder %v1272_v60, 16  ;;  %v6939_v30 = vpop.eup %6938 }
  0x7a   : > { %v10048_v26 = vmov 0  ;;  %v8145_v44 = vsub.s32 %v8016_v24, %v910_v39  ;;  %v921_v51 = vmul.u32 18, %v920_v61  ;;  %v9864_v6 = vmax.f32 %v8130_v43, 0.0  ;;  %v6941_v34 = vpop.eup %6940  ;;  %7040 = vmatprep.mubr.msk.f32.mxu0 %vm8074_vm1, %v657_v41 }
  0x7b   : > { %v10049_v26 = vsel %vm8140_vm11, 4294967295, %v10048_v26  ;;  %v1414_v58 = vsel %vm8074_vm1, %v657_v41, 0.0  ;;  %v4811_v33 = vmul.f32 -1.442695, %v9865_v18  ;;  %v931_v28 = vshrl.u32 %v8124_v35, 4 }
  0x7c   : > { %10050 = vst [vmem:[#allocation17_spill] sm:$0xff] %v10049_v26  ;;  %v8154_v60 = vadd.f32 %v8117_v11, %v333_v25  ;;  %1458 = vst [vmem:[#allocation2 + $0x90] sm:$0xff] %v1414_v58  ;;  %v658_v24 = vmul.f32 %v6939_v30, %v406_v49  ;;  %vm1129_vm9 = vcmp.ne.s32.totalorder %v8145_v44, 0  ;;  %vm1165_vm13 = vcmp.lt.s32.totalorder %v8145_v44, 0  ;;  %v291_v25 = vld [vmem:[%s7207_s8 + $0xb0] sm:$0xff]  ;;  %v3077_v26 = vld [vmem:[#allocation2 + $0x21] sm:$0xff] }
  0x7d   : > { %v1237_v50 = vadd.s32 18, %v8145_v44  ;;  %v552_v32 = vadd.f32 1.0, %v6941_v34  ;;  %vm8163_vm15 = vmand %vm1165_vm13, %vm1129_vm9  ;;  %v922_v62 = vsub.s32 %v8039_v1, %v921_v51  ;;  %6946 = vpow2.f32 %v4811_v33 }
  0x7e   : > { %v932_v37 = vmul.u32 18, %v931_v28  ;;  %v1415_v39 = vsel %vm8078_vm7, %v658_v24, 0.0  ;;  %v4812_v4 = vmul.f32 -1.442695, %v9864_v6  ;;  %v942_v49 = vshrl.u32 %v8138_v3, 4  ;;  %v1547_v21 = vld [vmem:[#allocation2 + $0x86] sm:$0xff]  ;;  %7041 = vmatmul.mubr.msk.f32.gmra.mrb[14].mxu0 %vm8078_vm7, %v658_v24 }
  0x7f   : > { %v8174_v61 = vadd.s32 168, %v7133_v14  ;;  %v6943_v41 = vpop.eup %6942  ;;  %1459 = vst [vmem:[#allocation2 + $0x98] sm:$0xff] %v1415_v39  ;;  %6948 = vrcp.f32 %v552_v32  ;;  %v1273_v1 = vsel %vm8163_vm15, %v1237_v50, %v8145_v44  ;;  %vm1130_vm9 = vcmp.ne.s32.totalorder %v922_v62, 0  ;;  %5480 = vmatmul.mubr.f32.gmra.mrb[14].mxu1 %v1547_v21 }
  0x80   : > { %vm1166_vm13 = vcmp.lt.s32.totalorder %v922_v62, 0  ;;  %v6945_v51 = vpop.eup %6944  ;;  %v553_v3 = vadd.f32 1.0, %v6943_v41  ;;  %v1238_v58 = vadd.s32 18, %v922_v62  ;;  %v8187_v33 = vsub.s32 %v8104_v57, %v932_v37  ;;  %v292_v37 = vld [vmem:[%s7207_s8 + $0xb8] sm:$0xff] }
  0x81   : > { %vm8182_vm1 = vmand %vm1166_vm13, %vm1130_vm9  ;;  %6950 = vpow2.f32 %v4812_v4  ;;  %v659_v28 = vmul.f32 %v6945_v51, %v407_v7  ;;  %v943_v34 = vmul.u32 18, %v942_v49  ;;  %v9863_v44 = vmax.f32 %v8154_v60, 0.0 }
  0x82   : > { %v334_v24 = vmul.f32 %v8100_v53, %v291_v25  ;;  %6952 = vrcp.f32 %v553_v3  ;;  %v1274_v50 = vsel %vm8182_vm1, %v1238_v58, %v922_v62  ;;  %vm1131_vm15 = vcmp.ne.s32.totalorder %v8187_v33, 0  ;;  %v1527_v25 = vld [vmem:[%s9847_s3 + $0x58] sm:$0xff]  ;;  %v4910_v58 = vld [vmem:[%s9847_s3 + $0x310] sm:$0xff] }
  0x83   : > { %vm1167_vm9 = vcmp.lt.s32.totalorder %v8187_v33, 0  ;;  %v1548_v32 = vld [vmem:[#allocation2 + $0x8e] sm:$0xff]  ;;  %v1416_v57 = vsel %vm8140_vm11, %v659_v28, 0.0  ;;  %v8204_v7 = vadd.s32 18, %v8187_v33  ;;  %v8207_v35 = vsub.s32 %v8110_v16, %v943_v34  ;;  %7042 = vmatprep.mubr.msk.f32.mxu0 %vm8140_vm11, %v659_v28  ;;  %v4911_v28 = vld [vmem:[%s9847_s3 + $0x318] sm:$0xff] }
  0x84   : > { %vm8199_vm13 = vmand %vm1167_vm9, %vm1131_vm15  ;;  %5482 = vmatprep.mubr.f32.mxu1 %v1548_v32  ;;  %1460 = vst [vmem:[#allocation2 + $0xa0] sm:$0xff] %v1416_v57  ;;  %v4813_v62 = vmul.f32 -1.442695, %v9863_v44  ;;  %v8215_v39 = vmul.u32.u64.low 3817748708, %v8174_v61  ;;  %v8216_v4 = vmul.u32.u64.high 3817748708, %v8174_v61, %v8215_v39  ;;  %v8219_v49 = vadd.f32 %v8117_v11, %v334_v24  ;;  %v1526_v16 = vld [vmem:[%s9847_s3 + $0x50] sm:$0xff] }
  0x85   : > { %vm8227_vm1 = vcmp.lt.s32.totalorder %v1273_v1, 16  ;;  %v10057_v41 = vmov 0  ;;  %vm8231_vm15 = vcmp.lt.s32.totalorder %v1274_v50, 16  ;;  %v10060_v21 = vmov 0  ;;  %v293_v57 = vld [vmem:[%s7207_s8 + $0xc0] sm:$0xff] }
  0x86   : > { %v10058_v41 = vsel %vm8227_vm1, 4294967295, %v10057_v41  ;;  %v10061_v21 = vsel %vm8231_vm15, 4294967295, %v10060_v21  ;;  %v1549_v3 = vld [vmem:[#allocation2 + $0x96] sm:$0xff]  ;;  %vm1132_vm9 = vcmp.ne.s32.totalorder %v8207_v35, 0  ;;  %6954 = vpow2.f32 %v4813_v62 }
  0x87   : > { %10059 = vst [vmem:[#allocation18_spill] sm:$0xff] %v10058_v41  ;;  %10062 = vst [vmem:[#allocation19_spill] sm:$0xff] %v10061_v21  ;;  %v9867_v30 = vmax.f32 %v8219_v49, 0.0  ;;  %v8242_v1 = vadd.s32 176, %v7133_v14  ;;  %v6947_v34 = vpop.eup %6946  ;;  %5483 = vmatmul.mubr.f32.gmra.mrb[16].mxu1 %v1549_v3  ;;  %vm1168_vm11 = vcmp.lt.s32.totalorder %v8207_v35, 0  ;;  %v8252_v24 = vadd.s32 18, %v8207_v35 }
  0x88   : > { %v335_v50 = vmul.f32 %v8100_v53, %v292_v37  ;;  %v6252_v32 = vpack.c.bf16 %v1527_v25, %v1526_v16  ;;  %v554_v62 = vadd.f32 1.0, %v6947_v34  ;;  %v953_v39 = vshrl.u32 %v8216_v4, 4  ;;  %vm8294_vm7 = vmand %vm1168_vm11, %vm1132_vm9 }
  0x89   : > { %v4814_v44 = vmul.f32 -1.442695, %v9867_v30  ;;  %v8260_v6 = vadd.s32 184, %v7133_v14  ;;  %v6949_v18 = vpop.eup %6948  ;;  %v8263_v3 = vmul.u32.u64.low 3817748708, %v8242_v1  ;;  %v8264_v51 = vmul.u32.u64.high 3817748708, %v8242_v1, %v8263_v3 }
  0x8a   : > { %v8267_v10 = vadd.f32 %v8117_v11, %v335_v50  ;;  %6253 = vmatprep.subr.bf16.mxu1 %v6252_v32  ;;  %v8269_v37 = vpack.c.bf16 %v4911_v28, %v4910_v58  ;;  %v660_v4 = vmul.f32 %v6949_v18, %v408_v52  ;;  %6956 = vrcp.f32 %v554_v62 }
  0x8b   : > { %v6951_v16 = vpop.eup %6950  ;;  %v954_v25 = vmul.u32 18, %v953_v39  ;;  %6255 = vmatpush3.bf16.msra.mxu1 %v6252_v32  ;;  %v336_v34 = vmul.f32 %v8100_v53, %v293_v57  ;;  %v1550_v30 = vld [vmem:[#allocation2 + $0x9e] sm:$0xff]  ;;  %6958 = vpow2.f32 %v4814_v44  ;;  %v8276_v3 = vadd.s32 192, %v7133_v14  ;;  %v294_v32 = vld [vmem:[%s7207_s8 + $0xc8] sm:$0xff] }
  0x8c   : > { %v555_v13 = vadd.f32 1.0, %v6951_v16  ;;  %v9881_v50 = vmax.f32 %v8267_v10, 0.0  ;;  %v6953_v58 = vpop.eup %6952  ;;  %5485 = vmatprep.mubr.f32.mxu1 %v1550_v30  ;;  %v1417_v0 = vsel %vm8227_vm1, %v660_v4, 0.0  ;;  %7043 = vmatmul.mubr.msk.f32.gmra.mrb[16].mxu0 %vm8227_vm1, %v660_v4  ;;  %v10063_v44 = vmax.f32 %v8027_v55, 0.0  ;;  %v3078_v39 = vld [vmem:[#allocation2 + $0x29] sm:$0xff]  ;;  %v3079_v4 = vld [vmem:[#allocation2 + $0x31] sm:$0xff] }
  0x8d   : > { %v955_v52 = vsub.s32 %v8174_v61, %v954_v25  ;;  %v8282_v18 = vmul.u32.u64.low 3817748708, %v8260_v6  ;;  %v8283_v28 = vmul.u32.u64.high 3817748708, %v8260_v6, %v8282_v18  ;;  %1461 = vst [vmem:[#allocation2 + $0xa8] sm:$0xff] %v1417_v0  ;;  %v964_v61 = vshrl.u32 %v8264_v51, 4  ;;  %5888 = vmatprep.mubr.f32.mxu0 %v3077_v26  ;;  %v295_v30 = vld [vmem:[%s7207_s8 + $0xd0] sm:$0xff] }
  0x8e   : > { %v661_v57 = vmul.f32 %v6953_v58, %v10063_v44  ;;  %6960 = vrcp.f32 %v555_v13  ;;  %v4815_v62 = vmul.f32 -1.442695, %v9881_v50  ;;  %v8302_v13 = vadd.f32 %v8117_v11, %v336_v34 }
  0x8f   : > { %vm1133_vm1 = vcmp.ne.s32.totalorder %v955_v52, 0  ;;  %vm1169_vm10 = vcmp.lt.s32.totalorder %v955_v52, 0  ;;  %v1241_v55 = vadd.s32 18, %v955_v52  ;;  %v965_v51 = vmul.u32 18, %v964_v61 }
  0x90   : > { %v1418_v16 = vsel %vm8231_vm15, %v661_v57, 0.0  ;;  %vm8306_vm11 = vmand %vm1169_vm10, %vm1133_vm1  ;;  %6962 = vpow2.f32 %v4815_v62  ;;  %v337_v26 = vmul.f32 %v8100_v53, %v294_v32  ;;  %v6955_v58 = vpop.eup %6954  ;;  %v1276_v34 = vsel %vm8294_vm7, %v8252_v24, %v8207_v35  ;;  %5889 = vmatmul.mubr.f32.vlgmr.msra.gmra.mrb[0].mxu0 %v3078_v39  ;;  %v3080_v35 = vld [vmem:[#allocation2 + $0x39] sm:$0xff] }
  0x91   : > { %1462 = vst [vmem:[#allocation2 + $0xb0] sm:$0xff] %v1418_v16  ;;  %v1277_v0 = vsel %vm8306_vm11, %v1241_v55, %v955_v52  ;;  %v975_v18 = vshrl.u32 %v8283_v28, 4  ;;  %v9879_v44 = vmax.f32 %v8302_v13, 0.0  ;;  %v556_v57 = vadd.f32 1.0, %v6955_v58  ;;  %6395 = vmatpush3.bf16.msra.mxu0 %v8084_v19  ;;  %5891 = vmatprep.mubr.f32.mxu0 %v3079_v4  ;;  %v3081_v55 = vld [vmem:[#allocation2 + $0x41] sm:$0xff] }
  0x92   : > { %v8320_v61 = vsub.s32 %v8242_v1, %v965_v51  ;;  %v8323_v32 = vadd.f32 %v8117_v11, %v337_v26  ;;  %v8326_v62 = vadd.s32 200, %v7133_v14  ;;  %6397 = vmatprep.subr.bf16.mxu0 %v8269_v37  ;;  %v10068_v4 = vsel %vm8199_vm13, %v8204_v7, %v8187_v33 }
  0x93   : > { %v976_v24 = vmul.u32 18, %v975_v18  ;;  %v4816_v52 = vmul.f32 -1.442695, %v9879_v44  ;;  %v8333_v28 = vmul.u32.u64.low 3817748708, %v8276_v3  ;;  %v8334_v39 = vmul.u32.u64.high 3817748708, %v8276_v3, %v8333_v28 }
  0x94   : > { %6964 = vrcp.f32 %v556_v57  ;;  %vm1134_vm10 = vcmp.ne.s32.totalorder %v8320_v61, 0  ;;  %vm1170_vm7 = vcmp.lt.s32.totalorder %v8320_v61, 0  ;;  %v8339_v1 = vadd.s32 18, %v8320_v61  ;;  %v6957_v19 = vpop.eup %6956  ;;  %v1551_v16 = vld [vmem:[#allocation2 + $0xa6] sm:$0xff]  ;;  %5892 = vmatmul.mubr.f32.gmra.mrb[2].mxu0 %v3080_v35 }
  0x95   : > { %vm8347_vm1 = vcmp.lt.s32.totalorder %v10068_v4, 16  ;;  %v10069_v25 = vmov 0  ;;  %vm8351_vm9 = vmand %vm1170_vm7, %vm1134_vm10  ;;  %6966 = vpow2.f32 %v4816_v52  ;;  %v9878_v26 = vmax.f32 %v8323_v32, 0.0  ;;  %v6959_v18 = vpop.eup %6958  ;;  %5486 = vmatmul.mubr.f32.gmra.mrb[18].mxu1 %v1551_v16  ;;  %5894 = vmatprep.mubr.f32.mxu0 %v3081_v55 }
  0x96   : > { %v10070_v25 = vsel %vm8347_vm1, 4294967295, %v10069_v25  ;;  %v338_v58 = vmul.f32 %v8100_v53, %v295_v30  ;;  %v10074_v45 = vmax.f32 %v8120_v54, 0.0  ;;  %v8360_v33 = vsub.s32 %v8260_v6, %v976_v24  ;;  %v3082_v54 = vld [vmem:[#allocation2 + $0x49] sm:$0xff]  ;;  %6399 = vmatpush3.bf16.msra.mxu0 %v8269_v37 }
  0x97   : > { %10071 = vst [vmem:[#allocation20_spill] sm:$0xff] %v10070_v25  ;;  %v8363_v7 = vmul.u32.u64.low 3817748708, %v8326_v62  ;;  %v8364_v28 = vmul.u32.u64.high 3817748708, %v8326_v62, %v8363_v7  ;;  %vm8366_vm13 = vcmp.lt.s32.totalorder %v1276_v34, 16  ;;  %v10075_v4 = vmov 0  ;;  %v298_v34 = vld [vmem:[%s7207_s8 + $0xe8] sm:$0xff] }
  0x98   : > { %v662_v57 = vmul.f32 %v6957_v19, %v10074_v45  ;;  %v10076_v4 = vsel %vm8366_vm13, 4294967295, %v10075_v4  ;;  %vm8370_vm11 = vcmp.lt.s32.totalorder %v1277_v0, 16  ;;  %v10078_v52 = vmov 0  ;;  %v6961_v35 = vpop.eup %6960  ;;  %v1552_v6 = vld [vmem:[#allocation2 + $0xae] sm:$0xff]  ;;  %5895 = vmatmul.mubr.f32.gmra.mrb[4].mxu0 %v3082_v54 }
  0x99   : > { %10077 = vst [vmem:[#allocation21_spill] sm:$0xff] %v10076_v4  ;;  %v10079_v52 = vsel %vm8370_vm11, 4294967295, %v10078_v52  ;;  %v557_v30 = vadd.f32 1.0, %v6959_v18  ;;  %v986_v0 = vshrl.u32 %v8334_v39, 4  ;;  %v3083_v19 = vld [vmem:[#allocation2 + $0x51] sm:$0xff]  ;;  %5488 = vmatprep.mubr.f32.mxu1 %v1552_v6  ;;  %v10081_v37 = vmax.f32 %v8130_v43, 0.0 }
  0x9a   : > { %10080 = vst [vmem:[#allocation22_spill] sm:$0xff] %v10079_v52  ;;  %v1419_v24 = vsel %vm8347_vm1, %v662_v57, 0.0  ;;  %v4817_v55 = vmul.f32 -1.442695, %v9878_v26  ;;  %v8387_v18 = vadd.f32 %v8117_v11, %v338_v58  ;;  %v8390_v45 = vadd.s32 208, %v7133_v14  ;;  %v6963_v57 = vpop.eup %6962  ;;  %v296_v6 = vld [vmem:[%s7207_s8 + $0xd8] sm:$0xff]  ;;  %5897 = vmatprep.mubr.f32.mxu0 %v3083_v19 }
  0x9b   : > { %1463 = vst [vmem:[#allocation2 + $0xb8] sm:$0xff] %v1419_v24  ;;  %v663_v16 = vmul.f32 %v6961_v35, %v10081_v37  ;;  %6968 = vrcp.f32 %v557_v30  ;;  %v987_v39 = vmul.u32 18, %v986_v0  ;;  %v997_v7 = vshrl.u32 %v8364_v28, 4  ;;  %v3084_v58 = vld [vmem:[#allocation2 + $0x59] sm:$0xff]  ;;  %v1529_v19 = vld [vmem:[%s9847_s3 + $0x68] sm:$0xff] }
  0x9c   : > { %6970 = vpow2.f32 %v4817_v55  ;;  %v558_v35 = vadd.f32 1.0, %v6963_v57  ;;  %v9880_v30 = vmax.f32 %v8387_v18, 0.0  ;;  %v3085_v55 = vld [vmem:[#allocation2 + $0x61] sm:$0xff]  ;;  %v339_v57 = vmul.f32 %v8100_v53, %v296_v6  ;;  %5898 = vmatmul.mubr.f32.gmra.mrb[6].mxu0 %v3084_v58 }
  0x9d   : > { %v1420_v43 = vsel %vm8366_vm13, %v663_v16, 0.0  ;;  %v8400_v24 = vsub.s32 %v8276_v3, %v987_v39  ;;  %v998_v54 = vmul.u32 18, %v997_v7  ;;  %v1528_v37 = vld [vmem:[%s9847_s3 + $0x60] sm:$0xff]  ;;  %v8413_v16 = vadd.s32 18, %v8360_v33  ;;  %5900 = vmatprep.mubr.f32.mxu0 %v3085_v55  ;;  %v4913_v58 = vld [vmem:[%s9847_s3 + $0x328] sm:$0xff] }
  0x9e   : > { %1464 = vst [vmem:[#allocation2 + $0xc0] sm:$0xff] %v1420_v43  ;;  %v8403_v0 = vmul.u32.u64.low 3817748708, %v8390_v45  ;;  %v8404_v28 = vmul.u32.u64.high 3817748708, %v8390_v45, %v8403_v0  ;;  %6972 = vrcp.f32 %v558_v35  ;;  %v4818_v3 = vmul.f32 -1.442695, %v9880_v30  ;;  %v6965_v39 = vpop.eup %6964  ;;  %v297_v35 = vld [vmem:[%s7207_s8 + $0xe0] sm:$0xff] }
  0x9f   : > { %v8421_v7 = vsub.s32 %v8326_v62, %v998_v54  ;;  %v8424_v43 = vadd.s32 216, %v7133_v14  ;;  %v6967_v0 = vpop.eup %6966  ;;  %v10082_v26 = vmax.f32 %v8154_v60, 0.0  ;;  %v8430_v6 = vadd.f32 %v8117_v11, %v339_v57  ;;  %v8432_v30 = vld [vmem:[#allocation2 + $0x69] sm:$0xff]  ;;  %v4912_v62 = vld [vmem:[%s9847_s3 + $0x320] sm:$0xff] }
  0xa0   : > { %6974 = vpow2.f32 %v4818_v3  ;;  %v6256_v50 = vpack.c.bf16 %v1529_v19, %v1528_v37  ;;  %vm10083_vm10 = vcmp.ne.s32.totalorder %v8360_v33, 0  ;;  %vm10084_vm7 = vcmp.lt.s32.totalorder %v8360_v33, 0  ;;  %v8451_v37 = vld [vmem:[#allocation2 + $0x71] sm:$0xff]  ;;  %5901 = vmatmul.mubr.f32.gmra.mrb[8].mxu0 %v8432_v30 }
  0xa1   : > { %v664_v44 = vmul.f32 %v6965_v39, %v10082_v26  ;;  %vm8444_vm13 = vmand %vm10084_vm7, %vm10083_vm10  ;;  %v559_v26 = vadd.f32 1.0, %v6967_v0  ;;  %v1244_v55 = vadd.s32 18, %v8400_v24  ;;  %vm1137_vm1 = vcmp.ne.s32.totalorder %v8421_v7, 0  ;;  %5903 = vmatprep.mubr.f32.mxu0 %v8451_v37 }
  0xa2   : > { %v1553_v54 = vld [vmem:[#allocation2 + $0xb6] sm:$0xff]  ;;  %vm1173_vm15 = vcmp.lt.s32.totalorder %v8421_v7, 0  ;;  %vm10087_vm0 = vcmp.ne.s32.totalorder %v8400_v24, 0  ;;  %vm10088_vm10 = vcmp.lt.s32.totalorder %v8400_v24, 0  ;;  %v1245_v57 = vadd.s32 18, %v8421_v7  ;;  %6257 = vmatprep.subr.bf16.mxu1 %v6256_v50 }
  0xa3   : > { %5489 = vmatmul.mubr.f32.gmra.mrb[20].mxu1 %v1553_v54  ;;  %v1421_v19 = vsel %vm8370_vm11, %v664_v44, 0.0  ;;  %vm8459_vm7 = vmand %vm10088_vm10, %vm10087_vm0  ;;  %v1008_v39 = vshrl.u32 %v8404_v28, 4  ;;  %6976 = vrcp.f32 %v559_v26  ;;  %v10091_v28 = vsel %vm8351_vm9, %v8339_v1, %v8320_v61 }
  0xa4   : > { %1465 = vst [vmem:[#allocation2 + $0xc8] sm:$0xff] %v1421_v19  ;;  %v8467_v54 = vmul.u32.u64.low 3817748708, %v8424_v43  ;;  %v8468_v44 = vmul.u32.u64.high 3817748708, %v8424_v43, %v8467_v54  ;;  %6259 = vmatpush3.bf16.msra.mxu1 %v6256_v50  ;;  %vm8477_vm0 = vcmp.lt.s32.totalorder %v10091_v28, 16  ;;  %v10092_v19 = vmov 0  ;;  %vm8485_vm10 = vmand %vm1173_vm15, %vm1137_vm1 }
  0xa5   : > { %v6969_v52 = vpop.eup %6968  ;;  %v1554_v4 = vld [vmem:[#allocation2 + $0xbe] sm:$0xff]  ;;  %v10093_v19 = vsel %vm8477_vm0, 4294967295, %v10092_v19  ;;  %v1009_v50 = vmul.u32 18, %v1008_v39  ;;  %v6400_v54 = vpack.c.bf16 %v4913_v58, %v4912_v62  ;;  %v340_v0 = vmul.f32 %v8100_v53, %v297_v35 }
  0xa6   : > { %10094 = vst [vmem:[#allocation23_spill] sm:$0xff] %v10093_v19  ;;  %v6971_v51 = vpop.eup %6970  ;;  %5491 = vmatprep.mubr.f32.mxu1 %v1554_v4  ;;  %v10097_v61 = vmax.f32 %v8219_v49, 0.0  ;;  %v1279_v28 = vsel %vm8444_vm13, %v8413_v16, %v8360_v33  ;;  %v1280_v25 = vsel %vm8459_vm7, %v1244_v55, %v8400_v24  ;;  %v10098_v62 = vmax.f32 %v8430_v6, 0.0  ;;  %v8502_v35 = vld [vmem:[#allocation2 + $0x79] sm:$0xff] }
  0xa7   : > { %v560_v39 = vadd.f32 1.0, %v6971_v51  ;;  %6401 = vmatprep.subr.bf16.mxu0 %v6400_v54  ;;  %v8505_v4 = vadd.f32 %v8117_v11, %v340_v0  ;;  %v8508_v49 = vadd.s32 224, %v7133_v14  ;;  %v341_v33 = vmul.f32 %v8100_v53, %v298_v34  ;;  %5904 = vmatmul.mubr.f32.gmra.mrb[10].mxu0 %v8502_v35 }
  0xa8   : > { %v665_v1 = vmul.f32 %v6969_v52, %v10097_v61  ;;  %v4819_v58 = vmul.f32 -1.442695, %v10098_v62  ;;  %v8511_v52 = vld [vmem:[#allocation2 + $0x81] sm:$0xff]  ;;  %v1281_v16 = vsel %vm8485_vm10, %v1245_v57, %v8421_v7  ;;  %v1019_v60 = vshrl.u32 %v8468_v44, 4  ;;  %6403 = vmatpush3.bf16.msra.mxu0 %v6400_v54  ;;  %v6973_v55 = vpop.eup %6972  ;;  %v299_v7 = vld [vmem:[%s7207_s8 + $0xf0] sm:$0xff] }
  0xa9   : > { %vm8519_vm15 = vcmp.lt.s32.totalorder %v1279_v28, 16  ;;  %v10099_v3 = vmov 0  ;;  %v8524_v34 = vsub.s32 %v8390_v45, %v1009_v50  ;;  %v8527_v0 = vadd.s32 232, %v7133_v14  ;;  %5906 = vmatprep.mubr.f32.mxu0 %v8511_v52  ;;  %v8538_v61 = vld [vmem:[#allocation2 + $0x89] sm:$0xff] }
  0xaa   : > { %v1422_v24 = vsel %vm8477_vm0, %v665_v1, 0.0  ;;  %6978 = vpow2.f32 %v4819_v58  ;;  %v10100_v3 = vsel %vm8519_vm15, 4294967295, %v10099_v3  ;;  %v10102_v57 = vmax.f32 %v8267_v10, 0.0  ;;  %v6975_v45 = vpop.eup %6974  ;;  %v8552_v58 = vld [vmem:[#allocation2 + $0x91] sm:$0xff] }
  0xab   : > { %1466 = vst [vmem:[#allocation2 + $0xd0] sm:$0xff] %v1422_v24  ;;  %10101 = vst [vmem:[#allocation24_spill] sm:$0xff] %v10100_v3  ;;  %6980 = vrcp.f32 %v560_v39  ;;  %v1020_v26 = vmul.u32 18, %v1019_v60  ;;  %v9896_v54 = vmax.f32 %v8505_v4, 0.0  ;;  %v8535_v51 = vadd.f32 %v8117_v11, %v341_v33  ;;  %v1555_v50 = vld [vmem:[#allocation2 + $0xc6] sm:$0xff]  ;;  %5907 = vmatmul.mubr.f32.gmra.mrb[12].mxu0 %v8538_v61 }
  0xac   : > { %v666_v44 = vmul.f32 %v6973_v55, %v10102_v57  ;;  %vm8540_vm1 = vcmp.lt.s32.totalorder %v1280_v25, 16  ;;  %v10103_v1 = vmov 0  ;;  %vm8544_vm9 = vcmp.lt.s32.totalorder %v1281_v16, 16  ;;  %5492 = vmatmul.mubr.f32.gmra.mrb[22].mxu1 %v1555_v50  ;;  %v300_v50 = vld [vmem:[%s7207_s8 + $0xf8] sm:$0xff]  ;;  %5909 = vmatprep.mubr.f32.mxu0 %v8552_v58 }
  0xad   : > { %v10104_v1 = vsel %vm8540_vm1, 4294967295, %v10103_v1  ;;  %v10106_v10 = vmov 0  ;;  %v8549_v28 = vmul.u32.u64.low 3817748708, %v8508_v49  ;;  %v8550_v62 = vmul.u32.u64.high 3817748708, %v8508_v49, %v8549_v28 }
  0xae   : > { %10105 = vst [vmem:[#allocation25_spill] sm:$0xff] %v10104_v1  ;;  %v10107_v10 = vsel %vm8544_vm9, 4294967295, %v10106_v10  ;;  %v1423_v39 = vsel %vm8519_vm15, %v666_v44, 0.0  ;;  %v561_v33 = vadd.f32 1.0, %v6975_v45  ;;  %v8557_v25 = vsub.s32 %v8424_v43, %v1020_v26  ;;  %v6977_v44 = vpop.eup %6976 }
  0xaf   : > { %10108 = vst [vmem:[#allocation26_spill] sm:$0xff] %v10107_v10  ;;  %v342_v24 = vmul.f32 %v8100_v53, %v299_v7  ;;  %1467 = vst [vmem:[#allocation2 + $0xd8] sm:$0xff] %v1423_v39  ;;  %v4820_v16 = vmul.f32 -1.442695, %v9896_v54  ;;  %v9901_v60 = vmax.f32 %v8535_v51, 0.0  ;;  %vm1138_vm13 = vcmp.ne.s32.totalorder %v8524_v34, 0 }
  0xb0   : > { %v8564_v55 = vmul.u32.u64.low 3817748708, %v8527_v0  ;;  %v8565_v57 = vmul.u32.u64.high 3817748708, %v8527_v0, %v8564_v55  ;;  %6982 = vrcp.f32 %v561_v33  ;;  %v8572_v43 = vadd.s32 18, %v8524_v34  ;;  %v8575_v7 = vld [vmem:[#allocation2 + $0x99] sm:$0xff]  ;;  %v8582_v33 = vld [vmem:[#allocation2 + $0xa1] sm:$0xff] }
  0xb1   : > { %v10109_v26 = vmax.f32 %v8302_v13, 0.0  ;;  %6984 = vpow2.f32 %v4820_v16  ;;  %v1030_v28 = vshrl.u32 %v8550_v62, 4  ;;  %v4821_v39 = vmul.f32 -1.442695, %v9901_v60  ;;  %5910 = vmatmul.mubr.f32.gmra.mrb[14].mxu0 %v8575_v7  ;;  %v8617_v60 = vld [vmem:[#allocation2 + $0xa9] sm:$0xff] }
  0xb2   : > { %v1556_v55 = vld [vmem:[#allocation2 + $0xce] sm:$0xff]  ;;  %v8586_v54 = vadd.f32 %v8117_v11, %v342_v24  ;;  %v8589_v3 = vadd.s32 240, %v7133_v14  ;;  %v343_v13 = vmul.f32 %v8100_v53, %v300_v50  ;;  %vm1175_vm7 = vcmp.lt.s32.totalorder %v8557_v25, 0  ;;  %v1531_v24 = vld [vmem:[%s9847_s3 + $0x78] sm:$0xff]  ;;  %5912 = vmatprep.mubr.f32.mxu0 %v8582_v33 }
  0xb3   : > { %v667_v45 = vmul.f32 %v6977_v44, %v10109_v26  ;;  %5494 = vmatprep.mubr.f32.mxu1 %v1556_v55  ;;  %v1031_v16 = vmul.u32 18, %v1030_v28  ;;  %6986 = vpow2.f32 %v4821_v39  ;;  %v1530_v44 = vld [vmem:[%s9847_s3 + $0x70] sm:$0xff]  ;;  %vm10110_vm10 = vcmp.lt.s32.totalorder %v8524_v34, 0 }
  0xb4   : > { %v6979_v26 = vpop.eup %6978  ;;  %v8613_v39 = vmul.u32.u64.low 3817748708, %v8589_v3  ;;  %v8614_v55 = vmul.u32.u64.high 3817748708, %v8589_v3, %v8613_v39  ;;  %v8620_v19 = vadd.s32 18, %v8557_v25  ;;  %v8623_v21 = vadd.f32 %v8117_v11, %v343_v13  ;;  %v8628_v28 = vld [vmem:[#allocation2 + $0xb1] sm:$0xff] }
  0xb5   : > { %v1424_v62 = vsel %vm8540_vm1, %v667_v45, 0.0  ;;  %vm8606_vm1 = vmand %vm10110_vm10, %vm1138_vm13  ;;  %v1041_v45 = vshrl.u32 %v8565_v57, 4  ;;  %v562_v1 = vadd.f32 1.0, %v6979_v26  ;;  %v8626_v57 = vadd.s32 248, %v7133_v14  ;;  %5913 = vmatmul.mubr.f32.gmra.mrb[16].mxu0 %v8617_v60 }
  0xb6   : > { %1468 = vst [vmem:[#allocation2 + $0xe0] sm:$0xff] %v1424_v62  ;;  %v6981_v62 = vpop.eup %6980  ;;  %v1557_v41 = vld [vmem:[#allocation2 + $0xd6] sm:$0xff]  ;;  %v10113_v39 = vmax.f32 %v8323_v32, 0.0  ;;  %v10114_v59 = vmax.f32 %v8586_v54, 0.0  ;;  %v6260_v26 = vpack.c.bf16 %v1531_v24, %v1530_v44  ;;  %v1282_v13 = vsel %vm8606_vm1, %v8572_v43, %v8524_v34  ;;  %5915 = vmatprep.mubr.f32.mxu0 %v8628_v28  ;;  %v8668_v24 = vld [vmem:[#allocation2 + $0xc1] sm:$0xff] }
  0xb7   : > { %v1042_v36 = vmul.u32 18, %v1041_v45  ;;  %5495 = vmatmul.mubr.f32.gmra.mrb[24].mxu1 %v1557_v41  ;;  %6988 = vrcp.f32 %v562_v1  ;;  %vm10115_vm13 = vcmp.ne.s32.totalorder %v8557_v25, 0  ;;  %v8650_v41 = vsub.s32 %v8508_v49, %v1031_v16  ;;  %v4914_v1 = vld [vmem:[%s9847_s3 + $0x330] sm:$0xff]  ;;  %v4915_v43 = vld [vmem:[%s9847_s3 + $0x338] sm:$0xff]  ;;  %v301_v16 = vld [vmem:[%s7207_s8 + $0x100] sm:$0xff] }
  0xb8   : > { %v668_v31 = vmul.f32 %v6981_v62, %v10113_v39  ;;  %v4822_v47 = vmul.f32 -1.442695, %v10114_v59  ;;  %vm8642_vm10 = vmand %vm1175_vm7, %vm10115_vm13  ;;  %v1052_v34 = vshrl.u32 %v8614_v55, 4  ;;  %6261 = vmatprep.subr.bf16.mxu1 %v6260_v26  ;;  %v8660_v44 = vld [vmem:[#allocation2 + $0xb9] sm:$0xff]  ;;  %vm8670_vm1 = vcmp.lt.s32.totalorder %v1282_v13, 16 }
  0xb9   : > { %6263 = vmatpush3.bf16.msra.mxu1 %v6260_v26  ;;  %v10118_v45 = vmov 0  ;;  %v1283_v55 = vsel %vm8642_vm10, %v8620_v19, %v8557_v25  ;;  %v8679_v62 = vsub.s32 %v8527_v0, %v1042_v36  ;;  %v10121_v26 = vmax.f32 %v8387_v18, 0.0  ;;  %5916 = vmatmul.mubr.f32.gmra.mrb[18].mxu0 %v8660_v44  ;;  %v302_v19 = vld [vmem:[%s7207_s8 + $0x108] sm:$0xff] }
  0xba   : > { %v1425_v59 = vsel %vm8544_vm9, %v668_v31, 0.0  ;;  %6990 = vpow2.f32 %v4822_v47  ;;  %v8664_v47 = vmul.u32.u64.low 3817748708, %v8626_v57  ;;  %v8665_v49 = vmul.u32.u64.high 3817748708, %v8626_v57, %v8664_v47  ;;  %v6983_v50 = vpop.eup %6982  ;;  %5918 = vmatprep.mubr.f32.mxu0 %v8668_v24  ;;  %v8691_v18 = vld [vmem:[#allocation2 + $0xc9] sm:$0xff] }
  0xbb   : > { %1469 = vst [vmem:[#allocation2 + $0xe8] sm:$0xff] %v1425_v59  ;;  %v10119_v45 = vsel %vm8670_vm1, 4294967295, %v10118_v45  ;;  %v6985_v39 = vpop.eup %6984  ;;  %v669_v47 = vmul.f32 %v6983_v50, %v10121_v26  ;;  %v1053_v31 = vmul.u32 18, %v1052_v34  ;;  %v10122_v10 = vmax.f32 %v8623_v21, 0.0  ;;  %v8701_v34 = vld [vmem:[#allocation2 + $0xd1] sm:$0xff] }
  0xbc   : > { %10120 = vst [vmem:[#allocation27_spill] sm:$0xff] %v10119_v45  ;;  %v6404_v38 = vpack.c.bf16 %v4915_v43, %v4914_v1  ;;  %v563_v8 = vadd.f32 1.0, %v6985_v39  ;;  %vm1140_vm7 = vcmp.ne.s32.totalorder %v8650_v41, 0  ;;  %v344_v36 = vmul.f32 %v8100_v53, %v301_v16 }
  0xbd   : > { %v1558_v59 = vld [vmem:[#allocation2 + $0xde] sm:$0xff]  ;;  %v4823_v13 = vmul.f32 -1.442695, %v10122_v10  ;;  %v6987_v0 = vpop.eup %6986  ;;  %v1426_v10 = vsel %vm8670_vm1, %v669_v47, 0.0  ;;  %v8696_v25 = vadd.s32 18, %v8650_v41  ;;  %v8699_v32 = vadd.s32 256, %v7133_v14  ;;  %5919 = vmatmul.mubr.f32.gmra.mrb[20].mxu0 %v8691_v18 }
  0xbe   : > { %5497 = vmatprep.mubr.f32.mxu1 %v1558_v59  ;;  %6405 = vmatprep.subr.bf16.mxu0 %v6404_v38  ;;  %1470 = vst [vmem:[#allocation2 + $0xf0] sm:$0xff] %v1426_v10  ;;  %v564_v1 = vadd.f32 1.0, %v6987_v0  ;;  %v1063_v43 = vshrl.u32 %v8665_v49, 4  ;;  %v8705_v16 = vadd.f32 %v8117_v11, %v344_v36  ;;  %v8710_v50 = vsub.s32 %v8589_v3, %v1053_v31 }
  0xbf   : > { %6992 = vpow2.f32 %v4823_v13  ;;  %6407 = vmatpush3.bf16.msra.mxu0 %v6404_v38  ;;  %v345_v39 = vmul.f32 %v8100_v53, %v302_v19  ;;  %v8716_v26 = vadd.s32 264, %v7133_v14  ;;  %5921 = vmatprep.mubr.f32.mxu0 %v8701_v34  ;;  %v8719_v38 = vld [vmem:[#allocation2 + $0xd9] sm:$0xff]  ;;  %vm8721_vm13 = vcmp.lt.s32.totalorder %v1283_v55, 16 }
  0xc0   : > { %6994 = vrcp.f32 %v563_v8  ;;  %v1064_v8 = vmul.u32 18, %v1063_v43  ;;  %v9930_v49 = vmax.f32 %v8705_v16, 0.0  ;;  %v10123_v3 = vmov 0 }
  0xc1   : > { %6996 = vrcp.f32 %v564_v1  ;;  %v6989_v47 = vpop.eup %6988  ;;  %v10124_v3 = vsel %vm8721_vm13, 4294967295, %v10123_v3  ;;  %vm10126_vm10 = vcmp.lt.s32.totalorder %v8650_v41, 0  ;;  %v8738_v19 = vadd.f32 %v8117_v11, %v345_v39  ;;  %v4845_v11 = vld [vmem:[%s9847_s3 + $0x108] sm:$0xff]  ;;  %5922 = vmatmul.mubr.f32.gmra.mrb[22].mxu0 %v8719_v38 }
  0xc2   : > { %v1559_v59 = vld [vmem:[#allocation2 + $0xe6] sm:$0xff]  ;;  %10125 = vst [vmem:[#allocation28_spill] sm:$0xff] %v10124_v3  ;;  %vm8729_vm1 = vmand %vm10126_vm10, %vm1140_vm7  ;;  %v8734_v13 = vmul.u32.u64.low 3817748708, %v8699_v32  ;;  %v8735_v36 = vmul.u32.u64.high 3817748708, %v8699_v32, %v8734_v13  ;;  %v10129_v10 = vmax.f32 %v8430_v6, 0.0  ;;  %v1249_v43 = vadd.s32 18, %v8679_v62 }
  0xc3   : > { %5498 = vmatmul.mubr.f32.gmra.mrb[26].mxu1 %v1559_v59  ;;  %v8740_v0 = vld [vmem:[#allocation2 + $0xe1] sm:$0xff]  ;;  %v8746_v59 = vsub.s32 %v8626_v57, %v1064_v8  ;;  %v4824_v45 = vmul.f32 -1.442695, %v9930_v49  ;;  %vm10130_vm7 = vcmp.ne.s32.totalorder %v8679_v62, 0  ;;  %vm10131_vm10 = vcmp.lt.s32.totalorder %v8679_v62, 0 }
  0xc4   : > { %v6991_v55 = vpop.eup %6990  ;;  %v670_v1 = vmul.f32 %v6989_v47, %v10129_v10  ;;  %v4844_v13 = vld [vmem:[%s9847_s3 + $0x100] sm:$0xff]  ;;  %vm8760_vm9 = vmand %vm10131_vm10, %vm10130_vm7  ;;  %v8766_v8 = vmul.u32.u64.low 3817748708, %v8716_v26  ;;  %v8767_v47 = vmul.u32.u64.high 3817748708, %v8716_v26, %v8766_v8  ;;  %v4917_v49 = vld [vmem:[%s9847_s3 + $0x348] sm:$0xff]  ;;  %vm1142_vm7 = vcmp.ne.s32.totalorder %v8710_v50, 0  ;;  %5924 = vmatprep.mubr.f32.mxu0 %v8740_v0 }
  0xc5   : > { %v565_v57 = vadd.f32 1.0, %v6991_v55  ;;  %v4916_v10 = vld [vmem:[%s9847_s3 + $0x340] sm:$0xff]  ;;  %v1284_v55 = vsel %vm8729_vm1, %v8696_v25, %v8650_v41  ;;  %v4918_v8 = vld [vmem:[%s9847_s3 + $0x350] sm:$0xff]  ;;  %v8790_v17 = vpack.c.bf16 %v4845_v11, %v4844_v13  ;;  %v4919_v41 = vld [vmem:[%s9847_s3 + $0x358] sm:$0xff]  ;;  %v10135_v48 = vmov 0 }
  0xc6   : > { %v1427_v22 = vsel %vm8721_vm13, %v670_v1, 0.0  ;;  %v1560_v39 = vld [vmem:[#allocation2 + $0xee] sm:$0xff]  ;;  %v10134_v1 = vmax.f32 %v8738_v19, 0.0  ;;  %v6408_v31 = vpack.c.bf16 %v4917_v49, %v4916_v10  ;;  %vm8800_vm1 = vcmp.lt.s32.totalorder %v1284_v55, 16 }
  0xc7   : > { %1471 = vst [vmem:[#allocation2 + $0xf8] sm:$0xff] %v1427_v22  ;;  %6998 = vrcp.f32 %v565_v57  ;;  %v8795_v25 = vld [vmem:[#allocation2 + $0xe9] sm:$0xff]  ;;  %5500 = vmatprep.mubr.f32.mxu1 %v1560_v39  ;;  %v1285_v22 = vsel %vm8760_vm9, %v1249_v43, %v8679_v62  ;;  %v10136_v48 = vsel %vm8800_vm1, 4294967295, %v10135_v48  ;;  %v1250_v13 = vadd.s32 18, %v8710_v50  ;;  %6265 = vmatprep.subr.bf16.mxu1 %v8790_v17 }
  0xc8   : > { %v4825_v3 = vmul.f32 -1.442695, %v10134_v1  ;;  %7000 = vpow2.f32 %v4824_v45  ;;  %5925 = vmatmul.mubr.f32.gmra.mrb[24].mxu0 %v8795_v25  ;;  %v4920_v45 = vld [vmem:[%s9847_s3 + $0x360] sm:$0xff]  ;;  %v4921_v62 = vld [vmem:[%s9847_s3 + $0x368] sm:$0xff]  ;;  %v303_v49 = vld [vmem:[%s7207_s8 + $0x110] sm:$0xff]  ;;  %vm10137_vm9 = vcmp.lt.s32.totalorder %v8710_v50, 0  ;;  %6409 = vmatprep.subr.bf16.mxu0 %v6408_v31  ;;  %v6412_v39 = vpack.c.bf16 %v4919_v41, %v4918_v8 }
  0xc9   : > { %v6993_v57 = vpop.eup %6992  ;;  %vm8819_vm10 = vmand %vm10137_vm9, %vm1142_vm7  ;;  %vm1179_vm13 = vcmp.lt.s32.totalorder %v8746_v59, 0  ;;  %v1074_v6 = vshrl.u32 %v8735_v36, 4  ;;  %v10140_v10 = vmax.f32 %v8505_v4, 0.0  ;;  %vm8827_vm15 = vcmp.lt.s32.totalorder %v1285_v22, 16  ;;  %6411 = vmatpush3.bf16.msra.mxu0 %v6408_v31 }
  0xca   : > { %7002 = vpow2.f32 %v4825_v3  ;;  %v6995_v43 = vpop.eup %6994  ;;  %v566_v11 = vadd.f32 1.0, %v6993_v57  ;;  %v10141_v1 = vmov 0  ;;  %v1085_v46 = vshrl.u32 %v8767_v47, 4  ;;  %6413 = vmatprep.subr.bf16.mxu0 %v6412_v39 }
  0xcb   : > { %v671_v55 = vmul.f32 %v6995_v43, %v10140_v10  ;;  %v10142_v1 = vsel %vm8827_vm15, 4294967295, %v10141_v1  ;;  %v6997_v40 = vpop.eup %6996  ;;  %v1251_v57 = vadd.s32 18, %v8746_v59  ;;  %v6416_v5 = vpack.c.bf16 %v4921_v62, %v4920_v45  ;;  %v7020_v45 = vld [vmem:[%s9846_s2] ss:$0 sm:$0xff] }
  0xcc   : > { %7004 = vrcp.f32 %v566_v11  ;;  %v346_v36 = vmul.f32 %v8100_v53, %v303_v49  ;;  %v10143_v8 = vmax.f32 %v8535_v51, 0.0  ;;  %v1286_v47 = vsel %vm8819_vm10, %v1250_v13, %v8710_v50  ;;  %v4922_v53 = vld [vmem:[%s9847_s3 + $0x370] sm:$0xff]  ;;  %v7021_v49 = vld [vmem:[%s9845_s1] ss:$0 sm:$0xff] }
  0xcd   : > { %v1428_v4 = vsel %vm8800_vm1, %v671_v55, 0.0  ;;  %vm10144_vm7 = vcmp.ne.s32.totalorder %v8746_v59, 0  ;;  %v8857_v51 = vadd.s32 272, %v7133_v14  ;;  %v1075_v31 = vmul.u32 18, %v1074_v6  ;;  %6415 = vmatpush3.bf16.msra.mxu0 %v6412_v39 }
  0xce   : > { %v672_v41 = vmul.f32 %v6997_v40, %v10143_v8  ;;  %vm8846_vm9 = vmand %vm1179_vm13, %vm10144_vm7  ;;  %v4923_v40 = vld [vmem:[%s9847_s3 + $0x378] sm:$0xff]  ;;  %1472 = vst [vmem:[#allocation2 + $0x100] sm:$0xff] %v1428_v4  ;;  %v8864_v62 = vadd.f32 %v7020_v45, %v346_v36  ;;  %v347_v43 = vmul.f32 %v7021_v49, %v304_v29  ;;  %v1086_v11 = vmul.u32 18, %v1085_v46  ;;  %6417 = vmatprep.subr.bf16.mxu0 %v6416_v5 }
  0xcf   : > { %v1561_v50 = vld [vmem:[#allocation2 + $0xf6] sm:$0xff]  ;;  %v8872_v6 = vadd.s32 280, %v7133_v14  ;;  %vm8874_vm13 = vcmp.lt.s32.totalorder %v1286_v47, 16  ;;  %v10147_v10 = vmov 0  ;;  %v1287_v55 = vsel %vm8846_vm9, %v1251_v57, %v8746_v59 }
  0xd0   : > { %v8859_v13 = vld [vmem:[#allocation2 + $0xf1] sm:$0xff]  ;;  %5501 = vmatmul.mubr.f32.gmra.mrb[28].mxu1 %v1561_v50  ;;  %v1429_v3 = vsel %vm8827_vm15, %v672_v41, 0.0  ;;  %v10148_v10 = vsel %vm8874_vm13, 4294967295, %v10147_v10  ;;  %v6420_v29 = vpack.c.bf16 %v4923_v40, %v4922_v53  ;;  %v425_v46 = vmax.f32 %v8864_v62, 0.0  ;;  %v4924_v53 = vld [vmem:[%s9847_s3 + $0x380] sm:$0xff]  ;;  %v4925_v40 = vld [vmem:[%s9847_s3 + $0x388] sm:$0xff] }
  0xd1   : > { %1473 = vst [vmem:[#allocation2 + $0x108] sm:$0xff] %v1429_v3  ;;  %5927 = vmatprep.mubr.f32.mxu0 %v8859_v13  ;;  %v6999_v36 = vpop.eup %6998  ;;  %v8884_v39 = vmul.u32.u64.low 3817748708, %v8857_v51  ;;  %v8885_v14 = vmul.u32.u64.high 3817748708, %v8857_v51, %v8884_v39  ;;  %v8887_v4 = vadd.f32 %v7020_v45, %v347_v43  ;;  %v10149_v41 = vmax.f32 %v8586_v54, 0.0  ;;  %6419 = vmatpush3.bf16.msra.mxu0 %v6416_v5 }
  0xd2   : > { %v7001_v8 = vpop.eup %7000  ;;  %v1076_v22 = vsub.s32 %v8699_v32, %v1075_v31  ;;  %v8893_v59 = vmul.u32.u64.low 3817748708, %v8872_v6  ;;  %v8894_v57 = vmul.u32.u64.high 3817748708, %v8872_v6, %v8893_v59  ;;  %v1087_v49 = vsub.s32 %v8716_v26, %v1086_v11  ;;  %6421 = vmatprep.subr.bf16.mxu0 %v6420_v29 }
  0xd3   : > { %v673_v47 = vmul.f32 %v6999_v36, %v10149_v41  ;;  %v567_v45 = vadd.f32 1.0, %v7001_v8  ;;  %v4826_v54 = vmul.f32 -1.442695, %v425_v46  ;;  %v426_v43 = vmax.f32 %v8887_v4, 0.0  ;;  %v4851_v4 = vld [vmem:[%s9847_s3 + $0x138] sm:$0xff] }
  0xd4   : > { %v7003_v50 = vpop.eup %7002  ;;  %vm8908_vm10 = vcmp.lt.s32.totalorder %v1287_v55, 16  ;;  %v10150_v36 = vmov 0  ;;  %v8914_v5 = vpack.c.bf16 %v4925_v40, %v4924_v53  ;;  %vm1144_vm7 = vcmp.ne.s32.totalorder %v1076_v22, 0 }
  0xd5   : > { %v1430_v32 = vsel %vm8874_vm13, %v673_v47, 0.0  ;;  %v568_v31 = vadd.f32 1.0, %v7003_v50  ;;  %v1562_v3 = vld [vmem:[#allocation2 + $0xfe] sm:$0xff]  ;;  %v10151_v36 = vsel %vm8908_vm10, 4294967295, %v10150_v36  ;;  %7006 = vrcp.f32 %v567_v45  ;;  %6423 = vmatpush3.bf16.msra.mxu0 %v6420_v29 }
  0xd6   : > { %1474 = vst [vmem:[#allocation2 + $0x110] sm:$0xff] %v1430_v32  ;;  %v8912_v39 = vld [vmem:[#allocation2 + $0xf9] sm:$0xff]  ;;  %v7005_v26 = vpop.eup %7004  ;;  %5503 = vmatprep.mubr.f32.mxu1 %v1562_v3  ;;  %vm1180_vm9 = vcmp.lt.s32.totalorder %v1076_v22, 0  ;;  %v4827_v11 = vmul.f32 -1.442695, %v426_v43  ;;  %v10152_v55 = vmax.f32 %v8623_v21, 0.0  ;;  %6425 = vmatprep.subr.bf16.mxu0 %v8914_v5 }
  0xd7   : > { %7008 = vrcp.f32 %v568_v31  ;;  %5928 = vmatmul.mubr.f32.gmra.mrb[26].mxu0 %v8912_v39  ;;  %vm1145_vm13 = vcmp.ne.s32.totalorder %v1087_v49, 0  ;;  %vm1181_vm15 = vcmp.lt.s32.totalorder %v1087_v49, 0  ;;  %v1252_v59 = vadd.s32 18, %v1076_v22  ;;  %vm8928_vm1 = vmand %vm1180_vm9, %vm1144_vm7 }
  0xd8   : > { %v1563_v8 = vld [vmem:[#allocation2 + $0x106] sm:$0xff]  ;;  %v674_v41 = vmul.f32 %v7005_v26, %v10152_v55  ;;  %7010 = vpow2.f32 %v4826_v54  ;;  %v1253_v21 = vadd.s32 18, %v1087_v49  ;;  %v1096_v50 = vshrl.u32 %v8885_v14, 4  ;;  %vm1217_vm0 = vmand %vm1181_vm15, %vm1145_vm13 }
  0xd9   : > { %v8921_v47 = vld [vmem:[#allocation2 + $0x101] sm:$0xff]  ;;  %5504 = vmatmul.mubr.f32.gmra.mrb[30].mxu1 %v1563_v8  ;;  %7012 = vpow2.f32 %v4827_v11  ;;  %v1107_v29 = vshrl.u32 %v8894_v57, 4  ;;  %v1288_v54 = vsel %vm8928_vm1, %v1252_v59, %v1076_v22  ;;  %v10155_v11 = vmov 0 }
  0xda   : > { %5930 = vmatprep.mubr.f32.mxu0 %v8921_v47  ;;  %v1431_v53 = vsel %vm8908_vm10, %v674_v41, 0.0  ;;  %v1289_v31 = vsel %vm1217_vm0, %v1253_v21, %v1087_v49  ;;  %v1097_v3 = vmul.u32 18, %v1096_v50  ;;  %vm8941_vm7 = vcmp.lt.s32.totalorder %v1288_v54, 16 }
  0xdb   : > { %1475 = vst [vmem:[#allocation2 + $0x118] sm:$0xff] %v1431_v53  ;;  %v1108_v26 = vmul.u32 18, %v1107_v29  ;;  %v10156_v11 = vsel %vm8941_vm7, 4294967295, %v10155_v11  ;;  %v10157_v57 = vmax.f32 %v8705_v16, 0.0  ;;  %vm8947_vm15 = vcmp.lt.s32.totalorder %v1289_v31, 16 }
  0xdc   : > { %v10158_v41 = vmov 0  ;;  %v10161_v49 = vmax.f32 %v8738_v19, 0.0  ;;  %v1098_v21 = vsub.s32 %v8857_v51, %v1097_v3 }
  0xdd   : > { %v1564_v45 = vld [vmem:[#allocation2 + $0x10e] sm:$0xff]  ;;  %v10159_v41 = vsel %vm8947_vm15, 4294967295, %v10158_v41 }
  0xde   : > { %v8938_v32 = vld [vmem:[#allocation2 + $0x109] sm:$0xff]  ;;  %5506 = vmatprep.mubr.f32.mxu1 %v1564_v45  ;;  %10160 = vst [vmem:[#allocation29_spill] sm:$0xff] %v10159_v41  ;;  %v1109_v45 = vsub.s32 %v8872_v6, %v1108_v26  ;;  %vm1146_vm0 = vcmp.ne.s32.totalorder %v1098_v21, 0  ;;  %vm1182_vm1 = vcmp.lt.s32.totalorder %v1098_v21, 0  ;;  %v1254_v51 = vadd.s32 18, %v1098_v21 }
  0xdf   : > { %5931 = vmatmul.mubr.f32.gmra.mrb[28].mxu0 %v8938_v32  ;;  %v7007_v14 = vpop.eup %7006  ;;  %vm8962_vm10 = vmand %vm1182_vm1, %vm1146_vm0 }
  0xe0   : > { %v675_v55 = vmul.f32 %v7007_v14, %v10157_v57  ;;  %vm1147_vm13 = vcmp.ne.s32.totalorder %v1109_v45, 0  ;;  %vm1183_vm9 = vcmp.lt.s32.totalorder %v1109_v45, 0  ;;  %v1255_v3 = vadd.s32 18, %v1109_v45  ;;  %v1480_v14 = vld [vmem:[#allocation2 + $0xd] sm:$0xff] }
  0xe1   : > { %v7009_v8 = vpop.eup %7008 }
  0xe2   : > { %v7011_v22 = vpop.eup %7010  ;;  %v1565_v59 = vld [vmem:[#allocation2 + $0x116] sm:$0xff]  ;;  %v676_v53 = vmul.f32 %v7009_v8, %v10161_v49  ;;  %v1432_v29 = vsel %vm8941_vm7, %v675_v55, 0.0  ;;  %vm8966_vm7 = vmand %vm1183_vm9, %vm1147_vm13  ;;  %v1290_v49 = vsel %vm8962_vm10, %v1254_v51, %v1098_v21  ;;  %v4848_v21 = vld [vmem:[%s9847_s3 + $0x120] sm:$0xff] }
  0xe3   : > { %v8953_v40 = vld [vmem:[#allocation2 + $0x111] sm:$0xff]  ;;  %v7013_v50 = vpop.eup %7012  ;;  %5507 = vmatmul.mubr.f32.gmra.mrb[32].mxu1 %v1565_v59  ;;  %v569_v16 = vadd.f32 1.0, %v7011_v22  ;;  %1476 = vst [vmem:[#allocation2 + $0x120] sm:$0xff] %v1432_v29  ;;  %vm8986_vm0 = vcmp.lt.s32.totalorder %v1290_v49, 16  ;;  %v4849_v51 = vld [vmem:[%s9847_s3 + $0x128] sm:$0xff]  ;;  %v4852_v49 = vld [vmem:[%s9847_s3 + $0x140] sm:$0xff] }
  0xe4   : > { %5933 = vmatprep.mubr.f32.mxu0 %v8953_v40  ;;  %v1433_v54 = vsel %vm8947_vm15, %v676_v53, 0.0  ;;  %v570_v19 = vadd.f32 1.0, %v7013_v50  ;;  %v4846_v8 = vld [vmem:[%s9847_s3 + $0x110] sm:$0xff]  ;;  %v4847_v22 = vld [vmem:[%s9847_s3 + $0x118] sm:$0xff]  ;;  %v1291_v53 = vsel %vm8966_vm7, %v1255_v3, %v1109_v45 }
  0xe5   : > { %1477 = vst [vmem:[#allocation2 + $0x128] sm:$0xff] %v1433_v54  ;;  %7014 = vrcp.f32 %v569_v16  ;;  %v1481_v50 = vld [vmem:[#allocation2 + $0x15] sm:$0xff]  ;;  %v1482_v16 = vld [vmem:[#allocation2 + $0x1d] sm:$0xff]  ;;  %v6268_v54 = vpack.c.bf16 %v4847_v22, %v4846_v8  ;;  %vm8998_vm10 = vcmp.lt.s32.totalorder %v1291_v53, 16  ;;  %v1484_v8 = vld [vmem:[#allocation2 + $0x2d] sm:$0xff] }
  0xe6   : > { %7016 = vrcp.f32 %v570_v19  ;;  %v4853_v53 = vld [vmem:[%s9847_s3 + $0x148] sm:$0xff] }
  0xea   : > { %v1566_v26 = vld [vmem:[#allocation2 + $0x11e] sm:$0xff] }
  0xeb   : > { %v8973_v57 = vld [vmem:[#allocation2 + $0x119] sm:$0xff]  ;;  %5509 = vmatprep.mubr.f32.mxu1 %v1566_v26 }
  0xec   : > { %v1567_v55 = vld [vmem:[#allocation2 + $0x126] sm:$0xff]  ;;  %5934 = vmatmul.mubr.f32.gmra.mrb[30].mxu0 %v8973_v57 }
  0xed   : > { %v8979_v59 = vld [vmem:[#allocation2 + $0x121] sm:$0xff]  ;;  %5510 = vmatmul.mubr.f32.gmra.mrb[34].mxu1 %v1567_v55  ;;  %v6272_v55 = vpack.c.bf16 %v4849_v51, %v4848_v21  ;;  %v4854_v51 = vld [vmem:[%s9847_s3 + $0x150] sm:$0xff] }
  0xee   : > { %5936 = vmatprep.mubr.f32.mxu0 %v8979_v59  ;;  %5544 = vmatprep.mubr.f32.mxu1 %v1480_v14  ;;  %v1483_v14 = vld [vmem:[#allocation2 + $0x25] sm:$0xff] }
  0xef   : > { %v7015_v29 = vpop.eup %7014 }
  0xf0   : > { %v7017_v26 = vpop.eup %7016  ;;  %v677_v45 = vmul.f32 %v7015_v29, %v425_v46  ;;  %v4850_v46 = vld [vmem:[%s9847_s3 + $0x130] sm:$0xff] }
  0xf1   : > { %5545 = vmatmul.mubr.f32.vlgmr.msra.gmra.mrb[0].mxu1 %v1481_v50  ;;  %v678_v3 = vmul.f32 %v7017_v26, %v426_v43  ;;  %v1486_v43 = vld [vmem:[#allocation2 + $0x3d] sm:$0xff]  ;;  %v6276_v22 = vpack.c.bf16 %v4851_v4, %v4850_v46  ;;  %v1487_v50 = vld [vmem:[#allocation2 + $0x45] sm:$0xff]  ;;  %v6280_v26 = vpack.c.bf16 %v4853_v53, %v4852_v49 }
  0xf2   : > { %5547 = vmatprep.mubr.f32.mxu1 %v1482_v16  ;;  %6267 = vmatpush3.bf16.msra.mxu1 %v8790_v17  ;;  %v1434_v6 = vsel %vm8986_vm0, %v677_v45, 0.0  ;;  %v1485_v17 = vld [vmem:[#allocation2 + $0x35] sm:$0xff]  ;;  %v1488_v16 = vld [vmem:[#allocation2 + $0x4d] sm:$0xff]  ;;  %v4856_v4 = vld [vmem:[%s9847_s3 + $0x160] sm:$0xff] }
  0xf3   : > { %6269 = vmatprep.subr.bf16.mxu1 %v6268_v54  ;;  %1478 = vst [vmem:[#allocation2 + $0x130] sm:$0xff] %v1434_v6  ;;  %v1435_v62 = vsel %vm8998_vm10, %v678_v3, 0.0  ;;  %v4855_v45 = vld [vmem:[%s9847_s3 + $0x158] sm:$0xff]  ;;  %v4926_v6 = vld [vmem:[%s9847_s3 + $0x390] sm:$0xff]  ;;  %v1491_v49 = vld [vmem:[#allocation2 + $0x65] sm:$0xff] }
  0xf4   : > { %1479 = vst [vmem:[#allocation2 + $0x138] sm:$0xff] %v1435_v62  ;;  %v3411_v3 = vld [vmem:[#allocation2 + $0x31] sm:$0xff]  ;;  %v6284_v62 = vpack.c.bf16 %v4855_v45, %v4854_v51  ;;  %v3412_v46 = vld [vmem:[#allocation2 + $0x39] sm:$0xff] }
  0xf5   : > { %5548 = vmatmul.mubr.f32.gmra.mrb[2].mxu1 %v1483_v14  ;;  %v1489_v14 = vld [vmem:[#allocation2 + $0x55] sm:$0xff]  ;;  %v4928_v53 = vld [vmem:[%s9847_s3 + $0x3a0] sm:$0xff] }
  0xf6   : > { %5550 = vmatprep.mubr.f32.mxu1 %v1484_v8  ;;  %6271 = vmatpush3.bf16.msra.mxu1 %v6268_v54  ;;  %v4927_v8 = vld [vmem:[%s9847_s3 + $0x398] sm:$0xff]  ;;  %v4858_v45 = vld [vmem:[%s9847_s3 + $0x170] sm:$0xff] }
  0xf7   : > { %6273 = vmatprep.subr.bf16.mxu1 %v6272_v55 }
  0xf9   : > { %5551 = vmatmul.mubr.f32.gmra.mrb[4].mxu1 %v1485_v17  ;;  %v4857_v17 = vld [vmem:[%s9847_s3 + $0x168] sm:$0xff] }
  0xfa   : > { %5553 = vmatprep.mubr.f32.mxu1 %v1486_v43  ;;  %6275 = vmatpush3.bf16.msra.mxu1 %v6272_v55  ;;  %v9021_v29 = vld [vmem:[#allocation2 + $0x129] sm:$0xff]  ;;  %v1490_v55 = vld [vmem:[#allocation2 + $0x5d] sm:$0xff]  ;;  %v6288_v51 = vpack.c.bf16 %v4857_v17, %v4856_v4  ;;  %v7023_v4 = vld [vmem:[#allocation2 + $0x51] sm:$0xff] }
  0xfb   : > { %6277 = vmatprep.subr.bf16.mxu1 %v6276_v22  ;;  %5937 = vmatmul.mubr.f32.gmra.mrb[32].mxu0 %v9021_v29  ;;  %v9024_v54 = vld [vmem:[#allocation2 + $0x131] sm:$0xff]  ;;  %v9027_v21 = vld [vmem:[#allocation2 + $0x139] sm:$0xff]  ;;  %v3413_v43 = vld [vmem:[#allocation2 + $0x41] sm:$0xff] }
  0xfc   : > { %5939 = vmatprep.mubr.f32.mxu0 %v9024_v54  ;;  %v4861_v17 = vld [vmem:[%s9847_s3 + $0x188] sm:$0xff] }
  0xfd   : > { %5554 = vmatmul.mubr.f32.gmra.mrb[6].mxu1 %v1487_v50  ;;  %v4929_v50 = vld [vmem:[%s9847_s3 + $0x3a8] sm:$0xff] }
  0xfe   : > { %5556 = vmatprep.mubr.f32.mxu1 %v1488_v16  ;;  %6279 = vmatpush3.bf16.msra.mxu1 %v6276_v22  ;;  %v6428_v22 = vpack.c.bf16 %v4927_v8, %v4926_v6  ;;  %v1492_v16 = vld [vmem:[#allocation2 + $0x6d] sm:$0xff]  ;;  %v1494_v8 = vld [vmem:[#allocation2 + $0x7d] sm:$0xff] }
  0xff   : > { %5940 = vmatmul.mubr.f32.gmra.mrb[34].mxu0 %v9027_v21  ;;  %6281 = vmatprep.subr.bf16.mxu1 %v6280_v26  ;;  %v4930_v6 = vld [vmem:[%s9847_s3 + $0x3b0] sm:$0xff] }
 0x100   : > { %5974 = vmatprep.mubr.f32.mxu0 %v3411_v3  ;;  %v6432_v3 = vpack.c.bf16 %v4929_v50, %v4928_v53  ;;  %v4932_v53 = vld [vmem:[%s9847_s3 + $0x3c0] sm:$0xff]  ;;  %v1496_v50 = vld [vmem:[#allocation2 + $0x8d] sm:$0xff] }
 0x101   : > { %5557 = vmatmul.mubr.f32.gmra.mrb[8].mxu1 %v1489_v14  ;;  %v1493_v14 = vld [vmem:[#allocation2 + $0x75] sm:$0xff] }
 0x102   : > { %5559 = vmatprep.mubr.f32.mxu1 %v1490_v55  ;;  %6283 = vmatpush3.bf16.msra.mxu1 %v6280_v26  ;;  %v4859_v26 = vld [vmem:[%s9847_s3 + $0x178] sm:$0xff]  ;;  %v7022_v55 = vld [vmem:[#allocation2 + $0x49] sm:$0xff] }
 0x103   : > { %5975 = vmatmul.mubr.f32.vlgmr.msra.gmra.mrb[0].mxu0 %v3412_v46  ;;  %6285 = vmatprep.subr.bf16.mxu1 %v6284_v62  ;;  %v6292_v46 = vpack.c.bf16 %v4859_v26, %v4858_v45  ;;  %v7025_v26 = vld [vmem:[#allocation2 + $0x61] sm:$0xff] }
 0x104   : > { %6427 = vmatpush3.bf16.msra.mxu0 %v8914_v5  ;;  %5977 = vmatprep.mubr.f32.mxu0 %v3413_v43  ;;  %v4931_v5 = vld [vmem:[%s9847_s3 + $0x3b8] sm:$0xff] }
 0x105   : > { %5560 = vmatmul.mubr.f32.gmra.mrb[10].mxu1 %v1491_v49  ;;  %6429 = vmatprep.subr.bf16.mxu0 %v6428_v22  ;;  %v6436_v43 = vpack.c.bf16 %v4931_v5, %v4930_v6  ;;  %v1495_v49 = vld [vmem:[#allocation2 + $0x85] sm:$0xff]  ;;  %v4934_v6 = vld [vmem:[%s9847_s3 + $0x3d0] sm:$0xff]  ;;  %v4935_v5 = vld [vmem:[%s9847_s3 + $0x3d8] sm:$0xff] }
 0x106   : > { %5562 = vmatprep.mubr.f32.mxu1 %v1492_v16  ;;  %6287 = vmatpush3.bf16.msra.mxu1 %v6284_v62  ;;  %v4860_v62 = vld [vmem:[%s9847_s3 + $0x180] sm:$0xff] }
 0x107   : > { %5978 = vmatmul.mubr.f32.gmra.mrb[2].mxu0 %v7022_v55  ;;  %6289 = vmatprep.subr.bf16.mxu1 %v6288_v51  ;;  %v7024_v16 = vld [vmem:[#allocation2 + $0x59] sm:$0xff]  ;;  %v9079_v45 = vpack.c.bf16 %v4861_v17, %v4860_v62  ;;  %v1499_v55 = vld [vmem:[#allocation2 + $0xa5] sm:$0xff]  ;;  %v1500_v62 = vld [vmem:[#allocation2 + $0xad] sm:$0xff] }
 0x108   : > { %5980 = vmatprep.mubr.f32.mxu0 %v7023_v4  ;;  %6431 = vmatpush3.bf16.msra.mxu0 %v6428_v22  ;;  %v4933_v22 = vld [vmem:[%s9847_s3 + $0x3c8] sm:$0xff]  ;;  %v4938_v17 = vld [vmem:[%s9847_s3 + $0x3f0] sm:$0xff] }
 0x109   : > { %5563 = vmatmul.mubr.f32.gmra.mrb[12].mxu1 %v1493_v14  ;;  %6433 = vmatprep.subr.bf16.mxu0 %v6432_v3  ;;  %v1497_v14 = vld [vmem:[#allocation2 + $0x95] sm:$0xff]  ;;  %v4937_v4 = vld [vmem:[%s9847_s3 + $0x3e8] sm:$0xff] }
 0x10a   : > { %5565 = vmatprep.mubr.f32.mxu1 %v1494_v8  ;;  %6291 = vmatpush3.bf16.msra.mxu1 %v6288_v51  ;;  %v6440_v51 = vpack.c.bf16 %v4933_v22, %v4932_v53  ;;  %v1498_v8 = vld [vmem:[#allocation2 + $0x9d] sm:$0xff]  ;;  %v4941_v22 = vld [vmem:[%s9847_s3 + $0x408] sm:$0xff] }
 0x10b   : > { %5981 = vmatmul.mubr.f32.gmra.mrb[4].mxu0 %v7024_v16  ;;  %6293 = vmatprep.subr.bf16.mxu1 %v6292_v46  ;;  %v4940_v53 = vld [vmem:[%s9847_s3 + $0x400] sm:$0xff] }
 0x10c   : > { %5983 = vmatprep.mubr.f32.mxu0 %v7025_v26  ;;  %6435 = vmatpush3.bf16.msra.mxu0 %v6432_v3  ;;  %v6444_v3 = vpack.c.bf16 %v4935_v5, %v4934_v6  ;;  %v1506_v16 = vld [vmem:[#allocation2 + $0xdd] sm:$0xff]  ;;  %v1508_v26 = vld [vmem:[#allocation2 + $0xed] sm:$0xff] }
 0x10d   : > { %5566 = vmatmul.mubr.f32.gmra.mrb[14].mxu1 %v1495_v49  ;;  %6437 = vmatprep.subr.bf16.mxu0 %v6436_v43  ;;  %v1502_v49 = vld [vmem:[#allocation2 + $0xbd] sm:$0xff]  ;;  %v4865_v6 = vld [vmem:[%s9847_s3 + $0x1a8] sm:$0xff] }
 0x10e   : > { %5568 = vmatprep.mubr.f32.mxu1 %v1496_v50  ;;  %6295 = vmatpush3.bf16.msra.mxu1 %v6292_v46  ;;  %v4936_v46 = vld [vmem:[%s9847_s3 + $0x3e0] sm:$0xff]  ;;  %v1504_v50 = vld [vmem:[#allocation2 + $0xcd] sm:$0xff] }
 0x10f   : > { %5984 = vmatmul.mubr.f32.gmra.mrb[6].mxu0 %v8432_v30  ;;  %6297 = vmatprep.subr.bf16.mxu1 %v9079_v45  ;;  %v6448_v30 = vpack.c.bf16 %v4937_v4, %v4936_v46  ;;  %v9149_v5 = vld [vmem:[#allocation2 + $0x2f] sm:$0xff]  ;;  %v3445_v46 = vld [vmem:[#allocation2 + $0x141] sm:$0xff] }
 0x110   : > { %5986 = vmatprep.mubr.f32.mxu0 %v8451_v37  ;;  %6439 = vmatpush3.bf16.msra.mxu0 %v6436_v43  ;;  %v1501_v37 = vld [vmem:[#allocation2 + $0xb5] sm:$0xff]  ;;  %v9175_v4 = vld [vmem:[#allocation2 + $0x47] sm:$0xff] }
 0x111   : > { %5569 = vmatmul.mubr.f32.gmra.mrb[16].mxu1 %v1497_v14  ;;  %6441 = vmatprep.subr.bf16.mxu0 %v6440_v51  ;;  %v4939_v43 = vld [vmem:[%s9847_s3 + $0x3f8] sm:$0xff] }
 0x112   : > { %5571 = vmatprep.mubr.f32.mxu1 %v1498_v8  ;;  %v4866_v8 = vld [vmem:[%s9847_s3 + $0x1b0] sm:$0xff] }
 0x113   : > { %5987 = vmatmul.mubr.f32.gmra.mrb[8].mxu0 %v8502_v35  ;;  %v6452_v35 = vpack.c.bf16 %v4939_v43, %v4938_v17  ;;  %v3745_v17 = vld [vmem:[#allocation2 + $0x32] sm:$0xff] }
 0x114   : > { %5989 = vmatprep.mubr.f32.mxu0 %v8511_v52  ;;  %6443 = vmatpush3.bf16.msra.mxu0 %v6440_v51  ;;  %v1503_v52 = vld [vmem:[#allocation2 + $0xc5] sm:$0xff]  ;;  %v1510_v51 = vld [vmem:[#allocation2 + $0xfd] sm:$0xff] }
 0x115   : > { %5572 = vmatmul.mubr.f32.gmra.mrb[18].mxu1 %v1499_v55  ;;  %6445 = vmatprep.subr.bf16.mxu0 %v6444_v3  ;;  %v4869_v55 = vld [vmem:[%s9847_s3 + $0x1c8] sm:$0xff]  ;;  %v9188_v43 = vld [vmem:[#allocation2 + $0x57] sm:$0xff] }
 0x116   : > { %5574 = vmatprep.mubr.f32.mxu1 %v1500_v62  ;;  %v3446_v62 = vld [vmem:[#allocation2 + $0x149] sm:$0xff] }
 0x117   : > { %5990 = vmatmul.mubr.f32.gmra.mrb[10].mxu0 %v8538_v61  ;;  %v9114_v61 = vpack.c.bf16 %v4941_v22, %v4940_v53  ;;  %v3746_v53 = vld [vmem:[#allocation2 + $0x3a] sm:$0xff] }
 0x118   : > { %5992 = vmatprep.mubr.f32.mxu0 %v8552_v58  ;;  %6447 = vmatpush3.bf16.msra.mxu0 %v6444_v3  ;;  %v1505_v58 = vld [vmem:[#allocation2 + $0xd5] sm:$0xff]  ;;  %v9163_v3 = vld [vmem:[#allocation2 + $0x3f] sm:$0xff] }
 0x119   : > { %5575 = vmatmul.mubr.f32.gmra.mrb[20].mxu1 %v1501_v37  ;;  %6449 = vmatprep.subr.bf16.mxu0 %v6448_v30  ;;  %v4871_v37 = vld [vmem:[%s9847_s3 + $0x1d8] sm:$0xff]  ;;  %v4872_v22 = vld [vmem:[%s9847_s3 + $0x1e0] sm:$0xff] }
 0x11a   : > { %5577 = vmatprep.mubr.f32.mxu1 %v1502_v49  ;;  %v4943_v49 = vld [vmem:[%s9847_s3 + $0x418] sm:$0xff] }
 0x11b   : > { %5993 = vmatmul.mubr.f32.gmra.mrb[12].mxu0 %v8575_v7  ;;  %v1507_v7 = vld [vmem:[#allocation2 + $0xe5] sm:$0xff] }
 0x11c   : > { %5995 = vmatprep.mubr.f32.mxu0 %v8582_v33  ;;  %6451 = vmatpush3.bf16.msra.mxu0 %v6448_v30  ;;  %v1509_v33 = vld [vmem:[#allocation2 + $0xf5] sm:$0xff] }
 0x11d   : > { %5578 = vmatmul.mubr.f32.gmra.mrb[22].mxu1 %v1503_v52  ;;  %6453 = vmatprep.subr.bf16.mxu0 %v6452_v35  ;;  %v4870_v30 = vld [vmem:[%s9847_s3 + $0x1d0] sm:$0xff] }
 0x11e   : > { %5580 = vmatprep.mubr.f32.mxu1 %v1504_v50  ;;  %v6316_v52 = vpack.c.bf16 %v4871_v37, %v4870_v30  ;;  %v4873_v50 = vld [vmem:[%s9847_s3 + $0x1e8] sm:$0xff]  ;;  %v4950_v30 = vld [vmem:[%s9847_s3 + $0x450] sm:$0xff]  ;;  %v4951_v37 = vld [vmem:[%s9847_s3 + $0x458] sm:$0xff] }
 0x11f   : > { %5996 = vmatmul.mubr.f32.gmra.mrb[14].mxu0 %v8617_v60  ;;  %v1511_v60 = vld [vmem:[#allocation2 + $0x105] sm:$0xff] }
 0x120   : > { %5998 = vmatprep.mubr.f32.mxu0 %v8628_v28  ;;  %6455 = vmatpush3.bf16.msra.mxu0 %v6452_v35  ;;  %v1512_v28 = vld [vmem:[#allocation2 + $0x10d] sm:$0xff]  ;;  %v9196_v35 = vld [vmem:[#allocation2 + $0x5f] sm:$0xff] }
 0x121   : > { %5581 = vmatmul.mubr.f32.gmra.mrb[24].mxu1 %v1505_v58  ;;  %6457 = vmatprep.subr.bf16.mxu0 %v9114_v61  ;;  %v3747_v58 = vld [vmem:[#allocation2 + $0x42] sm:$0xff] }
 0x122   : > { %5583 = vmatprep.mubr.f32.mxu1 %v1506_v16 }
 0x123   : > { %5999 = vmatmul.mubr.f32.gmra.mrb[16].mxu0 %v8660_v44  ;;  %v1513_v44 = vld [vmem:[#allocation2 + $0x115] sm:$0xff] }
 0x124   : > { %6001 = vmatprep.mubr.f32.mxu0 %v8668_v24  ;;  %v1514_v24 = vld [vmem:[#allocation2 + $0x11d] sm:$0xff] }
 0x125   : > { %5584 = vmatmul.mubr.f32.gmra.mrb[26].mxu1 %v1507_v7  ;;  %v9206_v7 = vld [vmem:[#allocation2 + $0x67] sm:$0xff] }
 0x126   : > { %5586 = vmatprep.mubr.f32.mxu1 %v1508_v26  ;;  %v4944_v26 = vld [vmem:[%s9847_s3 + $0x420] sm:$0xff] }
 0x127   : > { %6002 = vmatmul.mubr.f32.gmra.mrb[18].mxu0 %v8691_v18  ;;  %v1515_v18 = vld [vmem:[#allocation2 + $0x125] sm:$0xff] }
 0x128   : > { %6004 = vmatprep.mubr.f32.mxu0 %v8701_v34  ;;  %v2075_v34 = vld [vmem:[#allocation2 + $0xf] sm:$0xff] }
 0x129   : > { %5587 = vmatmul.mubr.f32.gmra.mrb[28].mxu1 %v1509_v33  ;;  %v4945_v33 = vld [vmem:[%s9847_s3 + $0x428] sm:$0xff] }
 0x12a   : > { %5589 = vmatprep.mubr.f32.mxu1 %v1510_v51  ;;  %v9214_v51 = vld [vmem:[#allocation2 + $0x6f] sm:$0xff] }
 0x12b   : > { %6005 = vmatmul.mubr.f32.gmra.mrb[20].mxu0 %v8719_v38  ;;  %v4862_v38 = vld [vmem:[%s9847_s3 + $0x190] sm:$0xff] }
 0x12c   : > { %6007 = vmatprep.mubr.f32.mxu0 %v8740_v0  ;;  %v4863_v0 = vld [vmem:[%s9847_s3 + $0x198] sm:$0xff] }
 0x12d   : > { %5590 = vmatmul.mubr.f32.gmra.mrb[30].mxu1 %v1511_v60  ;;  %v6300_v14 = vpack.c.bf16 %v4863_v0, %v4862_v38  ;;  %v6320_v60 = vpack.c.bf16 %v4873_v50, %v4872_v22  ;;  %v9225_v38 = vld [vmem:[#allocation2 + $0x77] sm:$0xff]  ;;  %v4952_v22 = vld [vmem:[%s9847_s3 + $0x460] sm:$0xff]  ;;  %v4953_v50 = vld [vmem:[%s9847_s3 + $0x468] sm:$0xff] }
 0x12e   : > { %5592 = vmatprep.mubr.f32.mxu1 %v1512_v28  ;;  %v3748_v28 = vld [vmem:[#allocation2 + $0x4a] sm:$0xff]  ;;  %v4947_v0 = vld [vmem:[%s9847_s3 + $0x438] sm:$0xff] }
 0x12f   : > { %6008 = vmatmul.mubr.f32.gmra.mrb[22].mxu0 %v8795_v25  ;;  %v2076_v25 = vld [vmem:[#allocation2 + $0x17] sm:$0xff] }
 0x130   : > { %6010 = vmatprep.mubr.f32.mxu0 %v8859_v13  ;;  %v9135_v13 = vld [vmem:[#allocation2 + $0x1f] sm:$0xff] }
 0x131   : > { %5593 = vmatmul.mubr.f32.gmra.mrb[32].mxu1 %v1513_v44  ;;  %v4874_v44 = vld [vmem:[%s9847_s3 + $0x1f0] sm:$0xff] }
 0x132   : > { %5595 = vmatprep.mubr.f32.mxu1 %v1514_v24  ;;  %v4875_v24 = vld [vmem:[%s9847_s3 + $0x1f8] sm:$0xff] }
 0x133   : > { %6011 = vmatmul.mubr.f32.gmra.mrb[24].mxu0 %v8912_v39  ;;  %v4864_v39 = vld [vmem:[%s9847_s3 + $0x1a0] sm:$0xff] }
 0x134   : > { %6013 = vmatprep.mubr.f32.mxu0 %v8921_v47  ;;  %v9146_v47 = vld [vmem:[#allocation2 + $0x27] sm:$0xff] }
 0x135   : > { %5596 = vmatmul.mubr.f32.gmra.mrb[34].mxu1 %v1515_v18  ;;  %v3749_v18 = vld [vmem:[#allocation2 + $0x52] sm:$0xff] }
 0x136   : > { %5630 = vmatprep.mubr.f32.mxu1 %v2075_v34  ;;  %v6464_v34 = vpack.c.bf16 %v4945_v33, %v4944_v26  ;;  %v3757_v26 = vld [vmem:[#allocation2 + $0x92] sm:$0xff]  ;;  %v6480_v33 = vpack.c.bf16 %v4953_v50, %v4952_v22  ;;  %v3767_v22 = vld [vmem:[#allocation2 + $0xe2] sm:$0xff] }
 0x137   : > { %6014 = vmatmul.mubr.f32.gmra.mrb[26].mxu0 %v8938_v32  ;;  %v6304_v32 = vpack.c.bf16 %v4865_v6, %v4864_v39  ;;  %v3750_v39 = vld [vmem:[#allocation2 + $0x5a] sm:$0xff]  ;;  %v3751_v6 = vld [vmem:[#allocation2 + $0x62] sm:$0xff] }
 0x138   : > { %6016 = vmatprep.mubr.f32.mxu0 %v8953_v40  ;;  %v4867_v40 = vld [vmem:[%s9847_s3 + $0x1b8] sm:$0xff]  ;;  %v9310_v50 = vld [vmem:[#allocation2 + $0x107] sm:$0xff] }
 0x139   : > { %5631 = vmatmul.mubr.f32.vlgmr.msra.gmra.mrb[0].mxu1 %v2076_v25  ;;  %v9233_v25 = vld [vmem:[#allocation2 + $0x7f] sm:$0xff] }
 0x13a   : > { %5633 = vmatprep.mubr.f32.mxu1 %v9135_v13  ;;  %6299 = vmatpush3.bf16.msra.mxu1 %v9079_v45  ;;  %v9161_v45 = vld [vmem:[#allocation2 + $0x37] sm:$0xff] }
 0x13b   : > { %6301 = vmatprep.subr.bf16.mxu1 %v6300_v14  ;;  %6017 = vmatmul.mubr.f32.gmra.mrb[28].mxu0 %v8973_v57  ;;  %v6308_v57 = vpack.c.bf16 %v4867_v40, %v4866_v8  ;;  %v9237_v8 = vld [vmem:[#allocation2 + $0x87] sm:$0xff] }
 0x13c   : > { %6019 = vmatprep.mubr.f32.mxu0 %v8979_v59  ;;  %v4868_v59 = vld [vmem:[%s9847_s3 + $0x1c0] sm:$0xff] }
 0x13d   : > { %5634 = vmatmul.mubr.f32.gmra.mrb[2].mxu1 %v9146_v47  ;;  %v4948_v40 = vld [vmem:[%s9847_s3 + $0x440] sm:$0xff] }
 0x13e   : > { %5636 = vmatprep.mubr.f32.mxu1 %v9149_v5  ;;  %6303 = vmatpush3.bf16.msra.mxu1 %v6300_v14  ;;  %v6324_v14 = vpack.c.bf16 %v4875_v24, %v4874_v44  ;;  %v4955_v44 = vld [vmem:[%s9847_s3 + $0x478] sm:$0xff] }
 0x13f   : > { %6305 = vmatprep.subr.bf16.mxu1 %v6304_v32  ;;  %6020 = vmatmul.mubr.f32.gmra.mrb[30].mxu0 %v9021_v29  ;;  %v9177_v29 = vld [vmem:[#allocation2 + $0x4f] sm:$0xff]  ;;  %v9282_v24 = vld [vmem:[#allocation2 + $0xbf] sm:$0xff] }
 0x140   : > { %6022 = vmatprep.mubr.f32.mxu0 %v9024_v54  ;;  %v6312_v54 = vpack.c.bf16 %v4869_v55, %v4868_v59  ;;  %v9245_v59 = vld [vmem:[#allocation2 + $0x8f] sm:$0xff] }
 0x141   : > { %5637 = vmatmul.mubr.f32.gmra.mrb[4].mxu1 %v9161_v45  ;;  %v3752_v55 = vld [vmem:[#allocation2 + $0x6a] sm:$0xff] }
 0x142   : > { %5639 = vmatprep.mubr.f32.mxu1 %v9163_v3  ;;  %6307 = vmatpush3.bf16.msra.mxu1 %v6304_v32 }
 0x143   : > { %6309 = vmatprep.subr.bf16.mxu1 %v6308_v57  ;;  %6023 = vmatmul.mubr.f32.gmra.mrb[32].mxu0 %v9027_v21  ;;  %v4942_v21 = vld [vmem:[%s9847_s3 + $0x410] sm:$0xff] }
 0x144   : > { %6025 = vmatprep.mubr.f32.mxu0 %v3445_v46  ;;  %v6460_v16 = vpack.c.bf16 %v4943_v49, %v4942_v21  ;;  %v3753_v46 = vld [vmem:[#allocation2 + $0x72] sm:$0xff]  ;;  %v3754_v21 = vld [vmem:[#allocation2 + $0x7a] sm:$0xff]  ;;  %v3755_v49 = vld [vmem:[#allocation2 + $0x82] sm:$0xff] }
 0x145   : > { %5640 = vmatmul.mubr.f32.gmra.mrb[6].mxu1 %v9175_v4 }
 0x146   : > { %5642 = vmatprep.mubr.f32.mxu1 %v9177_v29  ;;  %6311 = vmatpush3.bf16.msra.mxu1 %v6308_v57  ;;  %v4949_v57 = vld [vmem:[%s9847_s3 + $0x448] sm:$0xff] }
 0x147   : > { %6026 = vmatmul.mubr.f32.gmra.mrb[34].mxu0 %v3446_v62  ;;  %6313 = vmatprep.subr.bf16.mxu1 %v6312_v54  ;;  %v9249_v62 = vld [vmem:[#allocation2 + $0x97] sm:$0xff] }
 0x148   : > { %6060 = vmatprep.mubr.f32.mxu0 %v3745_v17  ;;  %v9257_v17 = vld [vmem:[#allocation2 + $0x9f] sm:$0xff] }
 0x149   : > { %5643 = vmatmul.mubr.f32.gmra.mrb[8].mxu1 %v9188_v43 }
 0x14a   : > { %5645 = vmatprep.mubr.f32.mxu1 %v9196_v35  ;;  %6315 = vmatpush3.bf16.msra.mxu1 %v6312_v54  ;;  %v6472_v54 = vpack.c.bf16 %v4949_v57, %v4948_v40  ;;  %v9294_v40 = vld [vmem:[#allocation2 + $0xdf] sm:$0xff] }
 0x14b   : > { %6061 = vmatmul.mubr.f32.vlgmr.msra.gmra.mrb[0].mxu0 %v3746_v53  ;;  %6317 = vmatprep.subr.bf16.mxu1 %v6316_v52  ;;  %v9262_v53 = vld [vmem:[#allocation2 + $0xa7] sm:$0xff]  ;;  %v3762_v57 = vld [vmem:[#allocation2 + $0xba] sm:$0xff] }
 0x14c   : > { %6459 = vmatpush3.bf16.msra.mxu0 %v9114_v61  ;;  %6063 = vmatprep.mubr.f32.mxu0 %v3747_v58  ;;  %v4946_v61 = vld [vmem:[%s9847_s3 + $0x430] sm:$0xff] }
 0x14d   : > { %5646 = vmatmul.mubr.f32.gmra.mrb[10].mxu1 %v9206_v7  ;;  %6461 = vmatprep.subr.bf16.mxu0 %v6460_v16  ;;  %v6468_v32 = vpack.c.bf16 %v4947_v0, %v4946_v61  ;;  %v9270_v58 = vld [vmem:[#allocation2 + $0xaf] sm:$0xff]  ;;  %v9286_v0 = vld [vmem:[#allocation2 + $0xc7] sm:$0xff] }
 0x14e   : > { %5648 = vmatprep.mubr.f32.mxu1 %v9214_v51  ;;  %6319 = vmatpush3.bf16.msra.mxu1 %v6316_v52  ;;  %v6476_v52 = vpack.c.bf16 %v4951_v37, %v4950_v30  ;;  %v3764_v30 = vld [vmem:[#allocation2 + $0xca] sm:$0xff]  ;;  %v3765_v37 = vld [vmem:[#allocation2 + $0xd2] sm:$0xff] }
 0x14f   : > { %6064 = vmatmul.mubr.f32.gmra.mrb[2].mxu0 %v3748_v28  ;;  %6321 = vmatprep.subr.bf16.mxu1 %v6320_v60  ;;  %v4954_v28 = vld [vmem:[%s9847_s3 + $0x470] sm:$0xff] }
 0x150   : > { %6066 = vmatprep.mubr.f32.mxu0 %v3749_v18  ;;  %6463 = vmatpush3.bf16.msra.mxu0 %v6460_v16  ;;  %v3756_v16 = vld [vmem:[#allocation2 + $0x8a] sm:$0xff]  ;;  %v3758_v18 = vld [vmem:[#allocation2 + $0x9a] sm:$0xff]  ;;  %v6484_v61 = vpack.c.bf16 %v4955_v44, %v4954_v28 }
 0x151   : > { %5649 = vmatmul.mubr.f32.gmra.mrb[12].mxu1 %v9225_v38  ;;  %6465 = vmatprep.subr.bf16.mxu0 %v6464_v34  ;;  %v9316_v28 = vld [vmem:[#allocation2 + $0x117] sm:$0xff]  ;;  %v9318_v44 = vld [vmem:[#allocation2 + $0x11f] sm:$0xff] }
 0x152   : > { %5651 = vmatprep.mubr.f32.mxu1 %v9233_v25  ;;  %6323 = vmatpush3.bf16.msra.mxu1 %v6320_v60  ;;  %v9274_v60 = vld [vmem:[#allocation2 + $0xb7] sm:$0xff] }
 0x153   : > { %6067 = vmatmul.mubr.f32.gmra.mrb[4].mxu0 %v3750_v39  ;;  %6325 = vmatprep.subr.bf16.mxu1 %v6324_v14  ;;  %v3760_v39 = vld [vmem:[#allocation2 + $0xaa] sm:$0xff] }
 0x154   : > { %6069 = vmatprep.mubr.f32.mxu0 %v3751_v6  ;;  %6467 = vmatpush3.bf16.msra.mxu0 %v6464_v34  ;;  %v3759_v34 = vld [vmem:[#allocation2 + $0xa2] sm:$0xff]  ;;  %v3761_v6 = vld [vmem:[#allocation2 + $0xb2] sm:$0xff] }
 0x155   : > { %5652 = vmatmul.mubr.f32.gmra.mrb[14].mxu1 %v9237_v8  ;;  %6469 = vmatprep.subr.bf16.mxu0 %v6468_v32 }
 0x156   : > { %5654 = vmatprep.mubr.f32.mxu1 %v9245_v59  ;;  %6327 = vmatpush3.bf16.msra.mxu1 %v6324_v14  ;;  %v9288_v14 = vld [vmem:[#allocation2 + $0xcf] sm:$0xff] }
 0x157   : > { %6070 = vmatmul.mubr.f32.gmra.mrb[6].mxu0 %v3752_v55  ;;  %6488 = vmatprep.subr.bf16.mxu1 %v7118_v9  ;;  %v3763_v55 = vld [vmem:[#allocation2 + $0xc2] sm:$0xff] }
 0x158   : > { %6072 = vmatprep.mubr.f32.mxu0 %v3753_v46  ;;  %6471 = vmatpush3.bf16.msra.mxu0 %v6468_v32  ;;  %v9292_v32 = vld [vmem:[#allocation2 + $0xd7] sm:$0xff]  ;;  %v9298_v46 = vld [vmem:[#allocation2 + $0xe7] sm:$0xff] }
 0x159   : > { %5655 = vmatmul.mubr.f32.gmra.mrb[16].mxu1 %v9249_v62  ;;  %6473 = vmatprep.subr.bf16.mxu0 %v6472_v54 }
 0x15a   : > { %5657 = vmatprep.mubr.f32.mxu1 %v9257_v17 }
 0x15b   : > { %6073 = vmatmul.mubr.f32.gmra.mrb[8].mxu0 %v3754_v21  ;;  %v9304_v21 = vld [vmem:[#allocation2 + $0xf7] sm:$0xff] }
 0x15c   : > { %6075 = vmatprep.mubr.f32.mxu0 %v3755_v49  ;;  %6475 = vmatpush3.bf16.msra.mxu0 %v6472_v54  ;;  %v9300_v54 = vld [vmem:[#allocation2 + $0xef] sm:$0xff]  ;;  %v9306_v49 = vld [vmem:[#allocation2 + $0xff] sm:$0xff] }
 0x15d   : > { %5658 = vmatmul.mubr.f32.gmra.mrb[18].mxu1 %v9262_v53  ;;  %6477 = vmatprep.subr.bf16.mxu0 %v6476_v52 }
 0x15e   : > { %5660 = vmatprep.mubr.f32.mxu1 %v9270_v58 }
 0x15f   : > { %6076 = vmatmul.mubr.f32.gmra.mrb[10].mxu0 %v3756_v16  ;;  %v9312_v16 = vld [vmem:[#allocation2 + $0x10f] sm:$0xff] }
 0x160   : > { %6078 = vmatprep.mubr.f32.mxu0 %v3757_v26  ;;  %6479 = vmatpush3.bf16.msra.mxu0 %v6476_v52  ;;  %v3766_v52 = vld [vmem:[#allocation2 + $0xda] sm:$0xff]  ;;  %v3768_v26 = vld [vmem:[#allocation2 + $0xea] sm:$0xff] }
 0x161   : > { %5661 = vmatmul.mubr.f32.gmra.mrb[20].mxu1 %v9274_v60  ;;  %6481 = vmatprep.subr.bf16.mxu0 %v6480_v33 }
 0x162   : > { %5663 = vmatprep.mubr.f32.mxu1 %v9282_v24 }
 0x163   : > { %6079 = vmatmul.mubr.f32.gmra.mrb[12].mxu0 %v3758_v18  ;;  %v3770_v18 = vld [vmem:[#allocation2 + $0xfa] sm:$0xff] }
 0x164   : > { %6081 = vmatprep.mubr.f32.mxu0 %v3759_v34  ;;  %6483 = vmatpush3.bf16.msra.mxu0 %v6480_v33  ;;  %v3769_v33 = vld [vmem:[#allocation2 + $0xf2] sm:$0xff]  ;;  %v3771_v34 = vld [vmem:[#allocation2 + $0x102] sm:$0xff] }
 0x165   : > { %5664 = vmatmul.mubr.f32.gmra.mrb[22].mxu1 %v9286_v0  ;;  %6485 = vmatprep.subr.bf16.mxu0 %v6484_v61 }
 0x166   : > { %5666 = vmatprep.mubr.f32.mxu1 %v9288_v14 }
 0x167   : > { %6082 = vmatmul.mubr.f32.gmra.mrb[14].mxu0 %v3760_v39  ;;  %v3772_v39 = vld [vmem:[#allocation2 + $0x10a] sm:$0xff] }
 0x168   : > { %6084 = vmatprep.mubr.f32.mxu0 %v3761_v6  ;;  %6487 = vmatpush3.bf16.msra.mxu0 %v6484_v61  ;;  %v9322_v61 = vld [vmem:[#allocation2 + $0x127] sm:$0xff]  ;;  %v3773_v6 = vld [vmem:[#allocation2 + $0x112] sm:$0xff] }
 0x169   : > { %5667 = vmatmul.mubr.f32.gmra.mrb[24].mxu1 %v9292_v32 }
 0x16a   : > { %5669 = vmatprep.mubr.f32.mxu1 %v9294_v40 }
 0x16b   : > { %6085 = vmatmul.mubr.f32.gmra.mrb[16].mxu0 %v3762_v57  ;;  %v3774_v57 = vld [vmem:[#allocation2 + $0x11a] sm:$0xff] }
 0x16c   : > { %6087 = vmatprep.mubr.f32.mxu0 %v3763_v55  ;;  %v3775_v55 = vld [vmem:[#allocation2 + $0x122] sm:$0xff] }
 0x16d   : > { %5670 = vmatmul.mubr.f32.gmra.mrb[26].mxu1 %v9298_v46 }
 0x16e   : > { %5672 = vmatprep.mubr.f32.mxu1 %v9300_v54 }
 0x16f   : > { %6088 = vmatmul.mubr.f32.gmra.mrb[18].mxu0 %v3764_v30  ;;  %v3776_v30 = vld [vmem:[#allocation2 + $0x12a] sm:$0xff] }
 0x170   : > { %6090 = vmatprep.mubr.f32.mxu0 %v3765_v37  ;;  %v3777_v37 = vld [vmem:[#allocation2 + $0x132] sm:$0xff] }
 0x171   : > { %5673 = vmatmul.mubr.f32.gmra.mrb[28].mxu1 %v9304_v21 }
 0x172   : > { %5675 = vmatprep.mubr.f32.mxu1 %v9306_v49 }
 0x173   : > { %6091 = vmatmul.mubr.f32.gmra.mrb[20].mxu0 %v3766_v52  ;;  %v4108_v52 = vld [vmem:[#allocation2 + $0x11b] sm:$0xff] }
 0x174   : > { %6093 = vmatprep.mubr.f32.mxu0 %v3767_v22  ;;  %v4109_v22 = vld [vmem:[#allocation2 + $0x123] sm:$0xff] }
 0x175   : > { %5676 = vmatmul.mubr.f32.gmra.mrb[30].mxu1 %v9310_v50 }
 0x176   : > { %5678 = vmatprep.mubr.f32.mxu1 %v9312_v16 }
 0x177   : > { %6094 = vmatmul.mubr.f32.gmra.mrb[22].mxu0 %v3768_v26  ;;  %v4110_v26 = vld [vmem:[#allocation2 + $0x12b] sm:$0xff] }
 0x178   : > { %6096 = vmatprep.mubr.f32.mxu0 %v3769_v33  ;;  %v4111_v33 = vld [vmem:[#allocation2 + $0x133] sm:$0xff] }
 0x179   : > { %5679 = vmatmul.mubr.f32.gmra.mrb[32].mxu1 %v9316_v28 }
 0x17a   : > { %5681 = vmatprep.mubr.f32.mxu1 %v9318_v44 }
 0x17b   : > { %6097 = vmatmul.mubr.f32.gmra.mrb[24].mxu0 %v3770_v18  ;;  %v4112_v18 = vld [vmem:[#allocation2 + $0x13b] sm:$0xff] }
 0x17c   : > { %6099 = vmatprep.mubr.f32.mxu0 %v3771_v34  ;;  %v4113_v34 = vld [vmem:[#allocation2 + $0x143] sm:$0xff] }
 0x17d   : > { %5682 = vmatmul.mubr.f32.gmra.mrb[34].mxu1 %v9322_v61 }
 0x17e   : > { %5716 = vmatprep.mubr.f32.mxu1 %v9135_v13  ;;  %v3778_v13 = vld [vmem:[#allocation2 + $0x13a] sm:$0xff] }
 0x17f   : > { %6100 = vmatmul.mubr.f32.gmra.mrb[26].mxu0 %v3772_v39  ;;  %v2769_v39 = vld [vmem:[#allocation2 + $0xf0] sm:$0xff] }
 0x180   : > { %6102 = vmatprep.mubr.f32.mxu0 %v3773_v6  ;;  %v4114_v6 = vld [vmem:[#allocation2 + $0x14b] sm:$0xff] }
 0x181   : > { %5717 = vmatmul.mubr.f32.vlgmr.msra.gmra.mrb[0].mxu1 %v9146_v47  ;;  %v3780_v47 = vld [vmem:[#allocation2 + $0x14a] sm:$0xff] }
 0x182   : > { %5719 = vmatprep.mubr.f32.mxu1 %v9149_v5  ;;  %6496 = vmatpush3.bf16.msra.mxu1 %v7118_v9  ;;  %v3779_v9 = vld [vmem:[#allocation2 + $0x142] sm:$0xff] }
 0x183   : > { %6489 = vmatprep.subr.bf16.mxu1 %v7135_v15  ;;  %6103 = vmatmul.mubr.f32.gmra.mrb[28].mxu0 %v3774_v57  ;;  %v4080_v5 = vld [vmem:[#allocation2 + $0x3b] sm:$0xff] }
 0x184   : > { %6105 = vmatprep.mubr.f32.mxu0 %v3775_v55  ;;  %v2770_v57 = vld [vmem:[#allocation2 + $0xf8] sm:$0xff]  ;;  %v2771_v55 = vld [vmem:[#allocation2 + $0x100] sm:$0xff] }
 0x185   : > { %5720 = vmatmul.mubr.f32.gmra.mrb[2].mxu1 %v9161_v45  ;;  %v4082_v45 = vld [vmem:[#allocation2 + $0x4b] sm:$0xff] }
 0x186   : > { %5722 = vmatprep.mubr.f32.mxu1 %v9163_v3  ;;  %6497 = vmatpush3.bf16.msra.mxu1 %v7135_v15  ;;  %v4079_v15 = vld [vmem:[#allocation2 + $0x33] sm:$0xff]  ;;  %v4084_v3 = vld [vmem:[#allocation2 + $0x5b] sm:$0xff] }
 0x187   : > { %6490 = vmatprep.subr.bf16.mxu1 %v7169_v27  ;;  %6106 = vmatmul.mubr.f32.gmra.mrb[30].mxu0 %v3776_v30  ;;  %v2772_v30 = vld [vmem:[#allocation2 + $0x108] sm:$0xff] }
 0x188   : > { %6108 = vmatprep.mubr.f32.mxu0 %v3777_v37  ;;  %v2773_v37 = vld [vmem:[#allocation2 + $0x110] sm:$0xff] }
 0x189   : > { %5723 = vmatmul.mubr.f32.gmra.mrb[4].mxu1 %v9175_v4  ;;  %v4086_v4 = vld [vmem:[#allocation2 + $0x6b] sm:$0xff] }
 0x18a   : > { %5725 = vmatprep.mubr.f32.mxu1 %v9177_v29  ;;  %6498 = vmatpush3.bf16.msra.mxu1 %v7169_v27  ;;  %v4081_v27 = vld [vmem:[#allocation2 + $0x43] sm:$0xff]  ;;  %v4088_v29 = vld [vmem:[#allocation2 + $0x7b] sm:$0xff] }
 0x18b   : > { %6491 = vmatprep.subr.bf16.mxu1 %v7214_v42  ;;  %6109 = vmatmul.mubr.f32.gmra.mrb[32].mxu0 %v3778_v13  ;;  %v2774_v13 = vld [vmem:[#allocation2 + $0x118] sm:$0xff] }
 0x18c   : > { %6111 = vmatprep.mubr.f32.mxu0 %v3779_v9  ;;  %v2775_v9 = vld [vmem:[#allocation2 + $0x120] sm:$0xff] }
 0x18d   : > { %5726 = vmatmul.mubr.f32.gmra.mrb[6].mxu1 %v9188_v43  ;;  %v4089_v43 = vld [vmem:[#allocation2 + $0x83] sm:$0xff] }
 0x18e   : > { %5728 = vmatprep.mubr.f32.mxu1 %v9196_v35  ;;  %6499 = vmatpush3.bf16.msra.mxu1 %v7214_v42  ;;  %v4083_v42 = vld [vmem:[#allocation2 + $0x53] sm:$0xff] }
 0x18f   : > { %6112 = vmatmul.mubr.f32.gmra.mrb[34].mxu0 %v3780_v47  ;;  %6492 = vmatprep.subr.bf16.mxu1 %v7247_v56  ;;  %v4091_v35 = vld [vmem:[#allocation2 + $0x93] sm:$0xff]  ;;  %v2776_v47 = vld [vmem:[#allocation2 + $0x128] sm:$0xff] }
 0x190   : > { %6146 = vmatprep.mubr.f32.mxu0 %v4079_v15  ;;  %v2777_v15 = vld [vmem:[#allocation2 + $0x130] sm:$0xff] }
 0x191   : > { %5729 = vmatmul.mubr.f32.gmra.mrb[8].mxu1 %v9206_v7  ;;  %v4092_v7 = vld [vmem:[#allocation2 + $0x9b] sm:$0xff] }
 0x192   : > { %5731 = vmatprep.mubr.f32.mxu1 %v9214_v51  ;;  %6500 = vmatpush3.bf16.msra.mxu1 %v7247_v56  ;;  %v4085_v56 = vld [vmem:[#allocation2 + $0x63] sm:$0xff]  ;;  %v4094_v51 = vld [vmem:[#allocation2 + $0xab] sm:$0xff] }
 0x193   : > { %6147 = vmatmul.mubr.f32.vlgmr.msra.gmra.mrb[0].mxu0 %v4080_v5  ;;  %6493 = vmatprep.subr.bf16.mxu1 %v7264_v63  ;;  %v2778_v5 = vld [vmem:[#allocation2 + $0x138] sm:$0xff] }
 0x194   : > { %6149 = vmatprep.mubr.f32.mxu0 %v4081_v27 }
 0x195   : > { %5732 = vmatmul.mubr.f32.gmra.mrb[10].mxu1 %v9225_v38  ;;  %v4095_v38 = vld [vmem:[#allocation2 + $0xb3] sm:$0xff] }
 0x196   : > { %5734 = vmatprep.mubr.f32.mxu1 %v9233_v25  ;;  %6501 = vmatpush3.bf16.msra.mxu1 %v7264_v63  ;;  %v4087_v63 = vld [vmem:[#allocation2 + $0x73] sm:$0xff]  ;;  %v4096_v25 = vld [vmem:[#allocation2 + $0xbb] sm:$0xff] }
 0x197   : > { %6150 = vmatmul.mubr.f32.gmra.mrb[2].mxu0 %v4082_v45  ;;  %6494 = vmatprep.subr.bf16.mxu1 %v7291_v12 }
 0x198   : > { %6152 = vmatprep.mubr.f32.mxu0 %v4083_v42 }
 0x199   : > { %5735 = vmatmul.mubr.f32.gmra.mrb[12].mxu1 %v9237_v8  ;;  %v4097_v8 = vld [vmem:[#allocation2 + $0xc3] sm:$0xff] }
 0x19a   : > { %5737 = vmatprep.mubr.f32.mxu1 %v9245_v59  ;;  %6502 = vmatpush3.bf16.msra.mxu1 %v7291_v12  ;;  %v4090_v12 = vld [vmem:[#allocation2 + $0x8b] sm:$0xff] }
 0x19b   : > { %6153 = vmatmul.mubr.f32.gmra.mrb[4].mxu0 %v4084_v3  ;;  %6495 = vmatprep.subr.bf16.mxu1 %v7303_v20  ;;  %v4098_v59 = vld [vmem:[#allocation2 + $0xcb] sm:$0xff] }
 0x19c   : > { %6155 = vmatprep.mubr.f32.mxu0 %v4085_v56 }
 0x19d   : > { %5738 = vmatmul.mubr.f32.gmra.mrb[14].mxu1 %v9249_v62  ;;  %v4099_v62 = vld [vmem:[#allocation2 + $0xd3] sm:$0xff] }
 0x19e   : > { %5740 = vmatprep.mubr.f32.mxu1 %v9257_v17  ;;  %6503 = vmatpush3.bf16.msra.mxu1 %v7303_v20  ;;  %v4093_v20 = vld [vmem:[#allocation2 + $0xa3] sm:$0xff]  ;;  %v4100_v17 = vld [vmem:[#allocation2 + $0xdb] sm:$0xff] }
 0x19f   : > { %6156 = vmatmul.mubr.f32.gmra.mrb[6].mxu0 %v4086_v4 }
 0x1a0   : > { %6158 = vmatprep.mubr.f32.mxu0 %v4087_v63 }
 0x1a1   : > { %5741 = vmatmul.mubr.f32.gmra.mrb[16].mxu1 %v9262_v53  ;;  %v4101_v53 = vld [vmem:[#allocation2 + $0xe3] sm:$0xff] }
 0x1a2   : > { %5743 = vmatprep.mubr.f32.mxu1 %v9270_v58  ;;  %v4102_v58 = vld [vmem:[#allocation2 + $0xeb] sm:$0xff] }
 0x1a3   : > { %6159 = vmatmul.mubr.f32.gmra.mrb[8].mxu0 %v4088_v29 }
 0x1a4   : > { %6161 = vmatprep.mubr.f32.mxu0 %v4089_v43 }
 0x1a5   : > { %5744 = vmatmul.mubr.f32.gmra.mrb[18].mxu1 %v9274_v60  ;;  %v4103_v60 = vld [vmem:[#allocation2 + $0xf3] sm:$0xff] }
 0x1a6   : > { %5746 = vmatprep.mubr.f32.mxu1 %v9282_v24  ;;  %v2443_v24 = vld [vmem:[#allocation2 + $0x12f] sm:$0xff] }
 0x1a7   : > { %6162 = vmatmul.mubr.f32.gmra.mrb[10].mxu0 %v4090_v12 }
 0x1a8   : > { %6164 = vmatprep.mubr.f32.mxu0 %v4091_v35 }
 0x1a9   : > { %5747 = vmatmul.mubr.f32.gmra.mrb[20].mxu1 %v9286_v0  ;;  %v4104_v0 = vld [vmem:[#allocation2 + $0xfb] sm:$0xff] }
 0x1aa   : > { %5749 = vmatprep.mubr.f32.mxu1 %v9288_v14  ;;  %v4105_v14 = vld [vmem:[#allocation2 + $0x103] sm:$0xff] }
 0x1ab   : > { %6165 = vmatmul.mubr.f32.gmra.mrb[12].mxu0 %v4092_v7 }
 0x1ac   : > { %6167 = vmatprep.mubr.f32.mxu0 %v4093_v20 }
 0x1ad   : > { %5750 = vmatmul.mubr.f32.gmra.mrb[22].mxu1 %v9292_v32  ;;  %v2444_v32 = vld [vmem:[#allocation2 + $0x137] sm:$0xff] }
 0x1ae   : > { %5752 = vmatprep.mubr.f32.mxu1 %v9294_v40  ;;  %v2761_v40 = vld [vmem:[#allocation2 + $0xb0] sm:$0xff] }
 0x1af   : > { %6168 = vmatmul.mubr.f32.gmra.mrb[14].mxu0 %v4094_v51 }
 0x1b0   : > { %6170 = vmatprep.mubr.f32.mxu0 %v4095_v38 }
 0x1b1   : > { %5753 = vmatmul.mubr.f32.gmra.mrb[24].mxu1 %v9298_v46  ;;  %v4106_v46 = vld [vmem:[#allocation2 + $0x10b] sm:$0xff] }
 0x1b2   : > { %5755 = vmatprep.mubr.f32.mxu1 %v9300_v54  ;;  %v4107_v54 = vld [vmem:[#allocation2 + $0x113] sm:$0xff] }
 0x1b3   : > { %6171 = vmatmul.mubr.f32.gmra.mrb[16].mxu0 %v4096_v25 }
 0x1b4   : > { %6173 = vmatprep.mubr.f32.mxu0 %v4097_v8 }
 0x1b5   : > { %5756 = vmatmul.mubr.f32.gmra.mrb[26].mxu1 %v9304_v21  ;;  %v2762_v21 = vld [vmem:[#allocation2 + $0xb8] sm:$0xff] }
 0x1b6   : > { %5758 = vmatprep.mubr.f32.mxu1 %v9306_v49  ;;  %v2763_v49 = vld [vmem:[#allocation2 + $0xc0] sm:$0xff] }
 0x1b7   : > { %6174 = vmatmul.mubr.f32.gmra.mrb[18].mxu0 %v4098_v59 }
 0x1b8   : > { %6176 = vmatprep.mubr.f32.mxu0 %v4099_v62 }
 0x1b9   : > { %5759 = vmatmul.mubr.f32.gmra.mrb[28].mxu1 %v9310_v50  ;;  %v2764_v50 = vld [vmem:[#allocation2 + $0xc8] sm:$0xff] }
 0x1ba   : > { %5761 = vmatprep.mubr.f32.mxu1 %v9312_v16  ;;  %v2765_v16 = vld [vmem:[#allocation2 + $0xd0] sm:$0xff] }
 0x1bb   : > { %6177 = vmatmul.mubr.f32.gmra.mrb[20].mxu0 %v4100_v17 }
 0x1bc   : > { %6179 = vmatprep.mubr.f32.mxu0 %v4101_v53 }
 0x1bd   : > { %5762 = vmatmul.mubr.f32.gmra.mrb[30].mxu1 %v9316_v28  ;;  %v2766_v28 = vld [vmem:[#allocation2 + $0xd8] sm:$0xff] }
 0x1be   : > { %5764 = vmatprep.mubr.f32.mxu1 %v9318_v44  ;;  %v2767_v44 = vld [vmem:[#allocation2 + $0xe0] sm:$0xff] }
 0x1bf   : > { %6180 = vmatmul.mubr.f32.gmra.mrb[22].mxu0 %v4102_v58 }
 0x1c0   : > { %6182 = vmatprep.mubr.f32.mxu0 %v4103_v60 }
 0x1c1   : > { %5765 = vmatmul.mubr.f32.gmra.mrb[32].mxu1 %v9322_v61  ;;  %v2768_v61 = vld [vmem:[#allocation2 + $0xe8] sm:$0xff] }
 0x1c2   : > { %5767 = vmatprep.mubr.f32.mxu1 %v2443_v24 }
 0x1c3   : > { %6183 = vmatmul.mubr.f32.gmra.mrb[24].mxu0 %v4104_v0 }
 0x1c4   : > { %6185 = vmatprep.mubr.f32.mxu0 %v4105_v14 }
 0x1c5   : > { %5768 = vmatmul.mubr.f32.gmra.mrb[34].mxu1 %v2444_v32 }
 0x1c6   : > { %5829 = vmatprep.mubr.f32.mxu1 %v2761_v40 }
 0x1c7   : > { %6186 = vmatmul.mubr.f32.gmra.mrb[26].mxu0 %v4106_v46 }
 0x1c8   : > { %6188 = vmatprep.mubr.f32.mxu0 %v4107_v54 }
 0x1c9   : > { %5830 = vmatmul.mubr.f32.vlgmr.msra.gmra.mrb[18].mxu1 %v2762_v21 }
 0x1ca   : > { %5832 = vmatprep.mubr.f32.mxu1 %v2763_v49 }
 0x1cb   : > { %6189 = vmatmul.mubr.f32.gmra.mrb[28].mxu0 %v4108_v52 }
 0x1cc   : > { %6191 = vmatprep.mubr.f32.mxu0 %v4109_v22 }
 0x1cd   : > { %5833 = vmatmul.mubr.f32.gmra.mrb[20].mxu1 %v2764_v50 }
 0x1ce   : > { %5835 = vmatprep.mubr.f32.mxu1 %v2765_v16 }
 0x1cf   : > { %6192 = vmatmul.mubr.f32.gmra.mrb[30].mxu0 %v4110_v26 }
 0x1d0   : > { %6194 = vmatprep.mubr.f32.mxu0 %v4111_v33 }
 0x1d1   : > { %5836 = vmatmul.mubr.f32.gmra.mrb[22].mxu1 %v2766_v28 }
 0x1d2   : > { %5838 = vmatprep.mubr.f32.mxu1 %v2767_v44 }
 0x1d3   : > { %6195 = vmatmul.mubr.f32.gmra.mrb[32].mxu0 %v4112_v18 }
 0x1d4   : > { %6197 = vmatprep.mubr.f32.mxu0 %v4113_v34 }
 0x1d5   : > { %5839 = vmatmul.mubr.f32.gmra.mrb[24].mxu1 %v2768_v61 }
 0x1d6   : > { %5841 = vmatprep.mubr.f32.mxu1 %v2769_v39 }
 0x1d7   : > { %6198 = vmatmul.mubr.f32.gmra.mrb[34].mxu0 %v4114_v6 }
 0x1d9   : > { %5842 = vmatmul.mubr.f32.gmra.mrb[26].mxu1 %v2770_v57 }
 0x1da   : > { %5844 = vmatprep.mubr.f32.mxu1 %v2771_v55 }
 0x1dd   : > { %5845 = vmatmul.mubr.f32.gmra.mrb[28].mxu1 %v2772_v30 }
 0x1de   : > { %5847 = vmatprep.mubr.f32.mxu1 %v2773_v37 }
 0x1e1   : > { %5848 = vmatmul.mubr.f32.gmra.mrb[30].mxu1 %v2774_v13 }
 0x1e2   : > { %5850 = vmatprep.mubr.f32.mxu1 %v2775_v9 }
 0x1e5   : > { %5851 = vmatmul.mubr.f32.gmra.mrb[32].mxu1 %v2776_v47 }
 0x1e6   : > { %5853 = vmatprep.mubr.f32.mxu1 %v2777_v15 }
 0x1e9   : > { %5854 = vmatmul.mubr.f32.gmra.mrb[34].mxu1 %v2778_v5 }
 0x254   : > { %v5718_v27 = vpop.f32.mrb[0].mxu1 }
 0x255   : > { %v2528_v45 = vpop.f32.mrb[1].mxu1 }
 0x258   : > { %v5721_v42 = vpop.f32.mrb[2].mxu1 }
 0x259   : > { %v2538_v3 = vpop.f32.mrb[3].mxu1 }
 0x25c   : > { %v5724_v56 = vpop.f32.mrb[4].mxu1 }
 0x25d   : > { %v2548_v4 = vpop.f32.mrb[5].mxu1 }
 0x260   : > { %v5727_v63 = vpop.f32.mrb[6].mxu1 }
 0x261   : > { %v2558_v29 = vpop.f32.mrb[7].mxu1 }
 0x264   : > { %v5730_v43 = vpop.f32.mrb[8].mxu1 }
 0x265   : > { %v2568_v12 = vpop.f32.mrb[9].mxu1 }
 0x266   : > { %v6148_v35 = vpop.f32.mrb[0].mxu0 }
 0x267   : > { %v9381_v7 = vadd.f32 %v6148_v35, %v5718_v27  ;;  %v4198_v20 = vpop.f32.mrb[1].mxu0 }
 0x268   : > { %v5733_v51 = vpop.f32.mrb[10].mxu1  ;;  %v9383_v38 = vadd.f32 %v4198_v20, %v2528_v45 }
 0x269   : > { %v2578_v25 = vpop.f32.mrb[11].mxu1  ;;  %4414 = vst [vmem:[%s9379_s16 + $0x8] sm:$0xff] %v9381_v7  ;;  %v4450_v8 = vsel %vm7552_vm2, %v9381_v7, 0.0 }
 0x26a   : > { %4413 = vst [vmem:[%s9379_s16] sm:$0xff] %v9383_v38  ;;  %v4449_v59 = vsel %vm7515_vm14, %v9383_v38, 0.0  ;;  %v6151_v62 = vpop.f32.mrb[2].mxu0 }
 0x26b   : > { %v9395_v17 = vadd.f32 %v6151_v62, %v5721_v42  ;;  %v4208_v53 = vpop.f32.mrb[3].mxu0  ;;  %v4485_v0 = vadd.f32 %v4450_v8, %v4449_v59 }
 0x26c   : > { %v5736_v58 = vpop.f32.mrb[12].mxu1  ;;  %v9397_v60 = vadd.f32 %v4208_v53, %v2538_v3 }
 0x26d   : > { %v2588_v24 = vpop.f32.mrb[13].mxu1  ;;  %4416 = vst [vmem:[%s9379_s16 + $0x18] sm:$0xff] %v9395_v17  ;;  %v4452_v22 = vsel %vm7593_vm5, %v9395_v17, 0.0 }
 0x26e   : > { %4415 = vst [vmem:[%s9379_s16 + $0x10] sm:$0xff] %v9397_v60  ;;  %v4451_v32 = vsel %vm7572_vm4, %v9397_v60, 0.0  ;;  %v6154_v40 = vpop.f32.mrb[4].mxu0 }
 0x26f   : > { %v4486_v46 = vadd.f32 %v4485_v0, %v4451_v32  ;;  %v9406_v54 = vadd.f32 %v6154_v40, %v5724_v56  ;;  %v4218_v21 = vpop.f32.mrb[5].mxu0 }
 0x270   : > { %v5739_v49 = vpop.f32.mrb[14].mxu1  ;;  %v9411_v50 = vadd.f32 %v4218_v21, %v2548_v4  ;;  %v10176_v4 = vld [vmem:[#allocation9_spill] sm:$0xff] }
 0x271   : > { %v2598_v16 = vpop.f32.mrb[15].mxu1  ;;  %4418 = vst [vmem:[%s9379_s16 + $0x28] sm:$0xff] %v9406_v54  ;;  %v4487_v26 = vadd.f32 %v4486_v46, %v4452_v22  ;;  %v4454_v57 = vsel %vm7658_vm12, %v9406_v54, 0.0  ;;  %vm10177_vm7 = vnez %v10176_v4 }
 0x272   : > { %4417 = vst [vmem:[%s9379_s16 + $0x20] sm:$0xff] %v9411_v50  ;;  %v4453_v28 = vsel %vm7629_vm8, %v9411_v50, 0.0  ;;  %v6157_v44 = vpop.f32.mrb[6].mxu0 }
 0x273   : > { %v4488_v18 = vadd.f32 %v4487_v26, %v4453_v28  ;;  %v9420_v34 = vadd.f32 %v6157_v44, %v5727_v63  ;;  %v4228_v61 = vpop.f32.mrb[7].mxu0  ;;  %v10184_v28 = vld [vmem:[#allocation12_spill] sm:$0xff] }
 0x274   : > { %v5742_v39 = vpop.f32.mrb[16].mxu1  ;;  %v9425_v55 = vadd.f32 %v4228_v61, %v2558_v29  ;;  %vm10185_vm9 = vnez %v10184_v28 }
 0x275   : > { %v2608_v30 = vpop.f32.mrb[17].mxu1  ;;  %4420 = vst [vmem:[%s9379_s16 + $0x38] sm:$0xff] %v9420_v34  ;;  %v4489_v37 = vadd.f32 %v4488_v18, %v4454_v57  ;;  %v4456_v42 = vsel %vm7732_vm6, %v9420_v34, 0.0 }
 0x276   : > { %4419 = vst [vmem:[%s9379_s16 + $0x30] sm:$0xff] %v9425_v55  ;;  %v4455_v9 = vsel %vm7713_vm3, %v9425_v55, 0.0  ;;  %v6160_v47 = vpop.f32.mrb[8].mxu0 }
 0x277   : > { %v4490_v15 = vadd.f32 %v4489_v37, %v4455_v9  ;;  %v9434_v5 = vadd.f32 %v6160_v47, %v5730_v43  ;;  %v4238_v27 = vpop.f32.mrb[9].mxu0  ;;  %v10187_v37 = vld [vmem:[#allocation13_spill] sm:$0xff] }
 0x278   : > { %v9439_v3 = vadd.f32 %v4238_v27, %v2568_v12  ;;  %v10178_v12 = vld [vmem:[#allocation10_spill] sm:$0xff] }
 0x279   : > { %4422 = vst [vmem:[%s9379_s16 + $0x48] sm:$0xff] %v9434_v5  ;;  %v4491_v56 = vadd.f32 %v4490_v15, %v4456_v42  ;;  %vm10179_vm1 = vnez %v10178_v12  ;;  %v10190_v27 = vld [vmem:[#allocation14_spill] sm:$0xff] }
 0x27a   : > { %4421 = vst [vmem:[%s9379_s16 + $0x40] sm:$0xff] %v9439_v3  ;;  %v4457_v63 = vsel %vm10177_vm7, %v9439_v3, 0.0  ;;  %v6163_v29 = vpop.f32.mrb[10].mxu0  ;;  %v4458_v59 = vsel %vm10179_vm1, %v9434_v5, 0.0 }
 0x27b   : > { %v4492_v43 = vadd.f32 %v4491_v56, %v4457_v63  ;;  %v9448_v35 = vadd.f32 %v6163_v29, %v5733_v51  ;;  %v4248_v20 = vpop.f32.mrb[11].mxu0  ;;  %v10180_v51 = vld [vmem:[#allocation11_spill] sm:$0xff] }
 0x27c   : > { %v9450_v8 = vadd.f32 %v4248_v20, %v2578_v25  ;;  %vm10181_vm13 = vnez %v10180_v51  ;;  %v10192_v29 = vld [vmem:[#allocation15_spill] sm:$0xff] }
 0x27d   : > { %4424 = vst [vmem:[%s9379_s16 + $0x58] sm:$0xff] %v9448_v35  ;;  %v4493_v53 = vadd.f32 %v4492_v43, %v4458_v59  ;;  %vm10193_vm1 = vnez %v10192_v29 }
 0x27e   : > { %4423 = vst [vmem:[%s9379_s16 + $0x50] sm:$0xff] %v9450_v8  ;;  %v6166_v62 = vpop.f32.mrb[12].mxu0  ;;  %v4459_v25 = vsel %vm10181_vm13, %v9450_v8, 0.0  ;;  %vm10188_vm13 = vnez %v10187_v37 }
 0x27f   : > { %v9459_v0 = vadd.f32 %v6166_v62, %v5736_v58  ;;  %v4258_v32 = vpop.f32.mrb[13].mxu0  ;;  %v4494_v21 = vadd.f32 %v4493_v53, %v4459_v25  ;;  %v10194_v62 = vld [vmem:[#allocation16_spill] sm:$0xff] }
 0x280   : > { %v9464_v40 = vadd.f32 %v4258_v32, %v2588_v24  ;;  %v4460_v24 = vsel %vm10185_vm9, %v9448_v35, 0.0  ;;  %vm10191_vm9 = vnez %v10190_v27 }
 0x281   : > { %4426 = vst [vmem:[%s9379_s16 + $0x68] sm:$0xff] %v9459_v0  ;;  %v4495_v18 = vadd.f32 %v4494_v21, %v4460_v24  ;;  %v4462_v42 = vsel %vm10191_vm9, %v9459_v0, 0.0  ;;  %v10196_v21 = vld [vmem:[#allocation17_spill] sm:$0xff] }
 0x282   : > { %4425 = vst [vmem:[%s9379_s16 + $0x60] sm:$0xff] %v9464_v40  ;;  %v6169_v46 = vpop.f32.mrb[14].mxu0  ;;  %vm10197_vm9 = vnez %v10196_v21 }
 0x283   : > { %v9470_v22 = vadd.f32 %v6169_v46, %v5739_v49  ;;  %v4268_v26 = vpop.f32.mrb[15].mxu0  ;;  %v4461_v49 = vsel %vm10188_vm13, %v9464_v40, 0.0  ;;  %vm10195_vm13 = vnez %v10194_v62 }
 0x284   : > { %v9472_v58 = vadd.f32 %v4268_v26, %v2598_v16  ;;  %v4496_v47 = vadd.f32 %v4495_v18, %v4461_v49 }
 0x285   : > { %10182 = vst [vmem:[#allocation3_spill] sm:$0xff] %v9470_v22  ;;  %4428 = vst [vmem:[%s9379_s16 + $0x78] sm:$0xff] %v9470_v22  ;;  %v4464_v53 = vsel %vm10195_vm13, %v9470_v22, 0.0 }
 0x286   : > { %10183 = vst [vmem:[#allocation4_spill] sm:$0xff] %v9472_v58  ;;  %4427 = vst [vmem:[%s9379_s16 + $0x70] sm:$0xff] %v9472_v58  ;;  %v6172_v44 = vpop.f32.mrb[16].mxu0  ;;  %v4497_v56 = vadd.f32 %v4496_v47, %v4462_v42  ;;  %v4463_v43 = vsel %vm10193_vm1, %v9472_v58, 0.0  ;;  %v10198_v42 = vld [vmem:[#allocation18_spill] sm:$0xff] }
 0x287   : > { %v9481_v61 = vadd.f32 %v6172_v44, %v5742_v39  ;;  %v4278_v57 = vpop.f32.mrb[17].mxu0  ;;  %vm10199_vm1 = vnez %v10198_v42 }
 0x288   : > { %v9486_v9 = vadd.f32 %v4278_v57, %v2608_v30  ;;  %v4498_v20 = vadd.f32 %v4497_v56, %v4463_v43 }
 0x289   : > { %10186 = vst [vmem:[#allocation5_spill] sm:$0xff] %v9481_v61  ;;  %4430 = vst [vmem:[%s9379_s16 + $0x88] sm:$0xff] %v9481_v61  ;;  %v4466_v56 = vsel %vm10199_vm1, %v9481_v61, 0.0 }
 0x28a   : > { %10189 = vst [vmem:[#allocation6_spill] sm:$0xff] %v9486_v9  ;;  %4429 = vst [vmem:[%s9379_s16 + $0x80] sm:$0xff] %v9486_v9  ;;  %v6175_v16 = vpop.f32.mrb[18].mxu0  ;;  %v4499_v25 = vadd.f32 %v4498_v20, %v4464_v53  ;;  %v4465_v26 = vsel %vm10197_vm9, %v9486_v9, 0.0 }
 0x28b   : > { %v4288_v15 = vpop.f32.mrb[19].mxu0 }
 0x28c   : > { %v4500_v44 = vadd.f32 %v4499_v25, %v4465_v26  ;;  %v10200_v25 = vld [vmem:[#allocation19_spill] sm:$0xff] }
 0x28d   : > { %vm10201_vm9 = vnez %v10200_v25 }
 0x28e   : > { %v6178_v39 = vpop.f32.mrb[20].mxu0  ;;  %v4501_v53 = vadd.f32 %v4500_v44, %v4466_v56 }
 0x28f   : > { %v4298_v63 = vpop.f32.mrb[21].mxu0 }
 0x292   : > { %v6181_v30 = vpop.f32.mrb[22].mxu0 }
 0x293   : > { %v4308_v59 = vpop.f32.mrb[23].mxu0 }
 0x296   : > { %v6184_v32 = vpop.f32.mrb[24].mxu0 }
 0x297   : > { %v4318_v46 = vpop.f32.mrb[25].mxu0 }
 0x29a   : > { %v6187_v24 = vpop.f32.mrb[26].mxu0 }
 0x29b   : > { %v4328_v18 = vpop.f32.mrb[27].mxu0 }
 0x29c   : > { %v5831_v57 = vpop.f32.mrb[18].mxu1 }
 0x29d   : > { %v2952_v49 = vpop.f32.mrb[19].mxu1  ;;  %v9504_v47 = vadd.f32 %v6175_v16, %v5831_v57 }
 0x29e   : > { %v9509_v43 = vadd.f32 %v4288_v15, %v2952_v49  ;;  %v6190_v20 = vpop.f32.mrb[28].mxu0  ;;  %v10202_v15 = vld [vmem:[#allocation20_spill] sm:$0xff] }
 0x29f   : > { %4432 = vst [vmem:[%s9379_s16 + $0x98] sm:$0xff] %v9504_v47  ;;  %v4338_v21 = vpop.f32.mrb[29].mxu0  ;;  %vm10203_vm1 = vnez %v10202_v15 }
 0x2a0   : > { %v5834_v62 = vpop.f32.mrb[20].mxu1  ;;  %4431 = vst [vmem:[%s9379_s16 + $0x90] sm:$0xff] %v9509_v43  ;;  %v4467_v16 = vsel %vm10201_vm9, %v9509_v43, 0.0  ;;  %v4468_v49 = vsel %vm10203_vm1, %v9504_v47, 0.0 }
 0x2a1   : > { %v2962_v26 = vpop.f32.mrb[21].mxu1  ;;  %v4502_v57 = vadd.f32 %v4501_v53, %v4467_v16  ;;  %v9518_v42 = vadd.f32 %v6178_v39, %v5834_v62  ;;  %v10204_v53 = vld [vmem:[#allocation21_spill] sm:$0xff] }
 0x2a2   : > { %v9523_v61 = vadd.f32 %v4298_v63, %v2962_v26  ;;  %v6193_v44 = vpop.f32.mrb[30].mxu0  ;;  %vm10205_vm9 = vnez %v10204_v53 }
 0x2a3   : > { %4434 = vst [vmem:[%s9379_s16 + $0xa8] sm:$0xff] %v9518_v42  ;;  %v4503_v56 = vadd.f32 %v4502_v57, %v4468_v49  ;;  %v4348_v29 = vpop.f32.mrb[31].mxu0  ;;  %v4470_v26 = vsel %vm8370_vm11, %v9518_v42, 0.0 }
 0x2a4   : > { %v5837_v9 = vpop.f32.mrb[22].mxu1  ;;  %4433 = vst [vmem:[%s9379_s16 + $0xa0] sm:$0xff] %v9523_v61  ;;  %v4469_v39 = vsel %vm10205_vm9, %v9523_v61, 0.0 }
 0x2a5   : > { %v2972_v62 = vpop.f32.mrb[23].mxu1  ;;  %v4504_v16 = vadd.f32 %v4503_v56, %v4469_v39  ;;  %v9532_v15 = vadd.f32 %v6181_v30, %v5837_v9  ;;  %v10207_v56 = vld [vmem:[#allocation23_spill] sm:$0xff] }
 0x2a6   : > { %v9537_v25 = vadd.f32 %v4308_v59, %v2972_v62  ;;  %v6196_v57 = vpop.f32.mrb[32].mxu0  ;;  %vm10208_vm9 = vnez %v10207_v56  ;;  %v10209_v59 = vld [vmem:[#allocation24_spill] sm:$0xff] }
 0x2a7   : > { %4436 = vst [vmem:[%s9379_s16 + $0xb8] sm:$0xff] %v9532_v15  ;;  %v4505_v49 = vadd.f32 %v4504_v16, %v4470_v26  ;;  %v4358_v27 = vpop.f32.mrb[33].mxu0  ;;  %vm10210_vm11 = vnez %v10209_v59 }
 0x2a8   : > { %v5840_v22 = vpop.f32.mrb[24].mxu1  ;;  %4435 = vst [vmem:[%s9379_s16 + $0xb0] sm:$0xff] %v9537_v25  ;;  %v4471_v9 = vsel %vm10208_vm9, %v9537_v25, 0.0  ;;  %v4472_v62 = vsel %vm10210_vm11, %v9532_v15, 0.0 }
 0x2a9   : > { %v2982_v30 = vpop.f32.mrb[25].mxu1  ;;  %v4506_v39 = vadd.f32 %v4505_v49, %v4471_v9  ;;  %v9546_v63 = vadd.f32 %v6184_v32, %v5840_v22  ;;  %v10211_v49 = vld [vmem:[#allocation25_spill] sm:$0xff] }
 0x2aa   : > { %v9551_v53 = vadd.f32 %v4318_v46, %v2982_v30  ;;  %v6199_v16 = vpop.f32.mrb[34].mxu0  ;;  %vm10212_vm9 = vnez %v10211_v49  ;;  %v10213_v46 = vld [vmem:[#allocation26_spill] sm:$0xff]  ;;  %v10215_v49 = vld [vmem:[#allocation27_spill] sm:$0xff] }
 0x2ab   : > { %4438 = vst [vmem:[%s9379_s16 + $0xc8] sm:$0xff] %v9546_v63  ;;  %v4507_v26 = vadd.f32 %v4506_v39, %v4472_v62  ;;  %v4368_v37 = vpop.f32.mrb[35].mxu0  ;;  %vm10214_vm11 = vnez %v10213_v46 }
 0x2ac   : > { %v5843_v58 = vpop.f32.mrb[26].mxu1  ;;  %4437 = vst [vmem:[%s9379_s16 + $0xc0] sm:$0xff] %v9551_v53  ;;  %v4473_v22 = vsel %vm10212_vm9, %v9551_v53, 0.0  ;;  %v4474_v30 = vsel %vm10214_vm11, %v9546_v63, 0.0  ;;  %vm10216_vm9 = vnez %v10215_v49 }
 0x2ad   : > { %v2992_v32 = vpop.f32.mrb[27].mxu1  ;;  %v4508_v9 = vadd.f32 %v4507_v26, %v4473_v22  ;;  %v9560_v59 = vadd.f32 %v6187_v24, %v5843_v58  ;;  %v10217_v22 = vld [vmem:[#allocation28_spill] sm:$0xff] }
 0x2ae   : > { %v9565_v56 = vadd.f32 %v4328_v18, %v2992_v32  ;;  %vm10218_vm11 = vnez %v10217_v22 }
 0x2af   : > { %4440 = vst [vmem:[%s9379_s16 + $0xd8] sm:$0xff] %v9560_v59  ;;  %v4509_v39 = vadd.f32 %v4508_v9, %v4474_v30  ;;  %v4476_v18 = vsel %vm10218_vm11, %v9560_v59, 0.0  ;;  %vm10220_vm11 = vnez %v10142_v1 }
 0x2b0   : > { %v5846_v62 = vpop.f32.mrb[28].mxu1  ;;  %4439 = vst [vmem:[%s9379_s16 + $0xd0] sm:$0xff] %v9565_v56  ;;  %v4475_v28 = vsel %vm10216_vm9, %v9565_v56, 0.0  ;;  %vm10219_vm9 = vnez %v10136_v48 }
 0x2b1   : > { %v3002_v58 = vpop.f32.mrb[29].mxu1  ;;  %v4510_v24 = vadd.f32 %v4509_v39, %v4475_v28  ;;  %v9574_v26 = vadd.f32 %v6190_v20, %v5846_v62 }
 0x2b2   : > { %v9579_v32 = vadd.f32 %v4338_v21, %v3002_v58 }
 0x2b3   : > { %4442 = vst [vmem:[%s9379_s16 + $0xe8] sm:$0xff] %v9574_v26  ;;  %v4511_v9 = vadd.f32 %v4510_v24, %v4476_v18  ;;  %v4478_v21 = vsel %vm10220_vm11, %v9574_v26, 0.0  ;;  %vm10222_vm11 = vnez %v10151_v36 }
 0x2b4   : > { %v5849_v30 = vpop.f32.mrb[30].mxu1  ;;  %4441 = vst [vmem:[%s9379_s16 + $0xe0] sm:$0xff] %v9579_v32  ;;  %v4477_v49 = vsel %vm10219_vm9, %v9579_v32, 0.0  ;;  %vm10221_vm9 = vnez %v10148_v10 }
 0x2b5   : > { %v3012_v28 = vpop.f32.mrb[31].mxu1  ;;  %v4512_v20 = vadd.f32 %v4511_v9, %v4477_v49  ;;  %v9588_v39 = vadd.f32 %v6193_v44, %v5849_v30 }
 0x2b6   : > { %v9593_v62 = vadd.f32 %v4348_v29, %v3012_v28 }
 0x2b7   : > { %4444 = vst [vmem:[%s9379_s16 + $0xf8] sm:$0xff] %v9588_v39  ;;  %v4513_v58 = vadd.f32 %v4512_v20, %v4478_v21  ;;  %v4480_v29 = vsel %vm10222_vm11, %v9588_v39, 0.0 }
 0x2b8   : > { %v5852_v24 = vpop.f32.mrb[32].mxu1  ;;  %4443 = vst [vmem:[%s9379_s16 + $0xf0] sm:$0xff] %v9593_v62  ;;  %v4479_v18 = vsel %vm10221_vm9, %v9593_v62, 0.0  ;;  %vm10223_vm9 = vnez %v10156_v11 }
 0x2b9   : > { %v3022_v44 = vpop.f32.mrb[33].mxu1  ;;  %v4514_v49 = vadd.f32 %v4513_v58, %v4479_v18  ;;  %v9602_v9 = vadd.f32 %v6196_v57, %v5852_v24 }
 0x2ba   : > { %v9607_v30 = vadd.f32 %v4358_v27, %v3022_v44 }
 0x2bb   : > { %4446 = vst [vmem:[%s9379_s16 + $0x108] sm:$0xff] %v9602_v9  ;;  %v4515_v28 = vadd.f32 %v4514_v49, %v4480_v29  ;;  %v4482_v27 = vsel %vm8947_vm15, %v9602_v9, 0.0 }
 0x2bc   : > { %v5855_v20 = vpop.f32.mrb[34].mxu1  ;;  %4445 = vst [vmem:[%s9379_s16 + $0x100] sm:$0xff] %v9607_v30  ;;  %v4481_v21 = vsel %vm10223_vm9, %v9607_v30, 0.0 }
 0x2bd   : > { %v3032_v58 = vpop.f32.mrb[35].mxu1  ;;  %v4516_v18 = vadd.f32 %v4515_v28, %v4481_v21  ;;  %v9616_v57 = vadd.f32 %v6199_v16, %v5855_v20 }
 0x2be   : > { %v9621_v24 = vadd.f32 %v4368_v37, %v3032_v58 }
 0x2bf   : > { %4448 = vst [vmem:[%s9379_s16 + $0x118] sm:$0xff] %v9616_v57  ;;  %v4517_v44 = vadd.f32 %v4516_v18, %v4482_v27  ;;  %v4484_v16 = vsel %vm8998_vm10, %v9616_v57, 0.0 }
 0x2c0   : > { %4447 = vst [vmem:[%s9379_s16 + $0x110] sm:$0xff] %v9621_v24  ;;  %v4483_v49 = vsel %vm8986_vm0, %v9621_v24, 0.0 }
 0x2c1   : > { %v4518_v29 = vadd.f32 %v4517_v44, %v4483_v49 }
 0x2c3   : > { %v4519_v28 = vadd.f32 %v4518_v29, %v4484_v16 }
 0x2c5   : > { %v4520_v20 = vrot.slane %v4519_v28, 4 }
 0x2c7   : > { %v4521_v21 = vadd.f32 %v4520_v20, %v4519_v28 }
 0x2c9   : > { %v4522_v41 = vrot.slane %v4521_v21, 2 }
 0x2cb   : > { %v4523_v37 = vadd.f32 %v4522_v41, %v4521_v21 }
 0x2cd   : > { %v4524_v58 = vrot.slane %v4523_v37, 1 }
 0x2cf   : > { %v4525_v18 = vadd.f32 %v4524_v58, %v4523_v37 }
 0x2d1   : > { %4599 = vst [vmem:[%s265_s18] sm:$0x1] %v4525_v18  ;;  %v9637_v27 = vmul.f32 0.00390625, %v4525_v18 }
 0x2d3   : > { %v4545_v44 = vsub.f32 %v9509_v43, %v9637_v27  ;;  %v4546_v49 = vsub.f32 %v9504_v47, %v9637_v27  ;;  %v4547_v29 = vsub.f32 %v9523_v61, %v9637_v27  ;;  %v4527_v16 = vsub.f32 %v9383_v38, %v9637_v27 }
 0x2d4   : > { %v4528_v28 = vsub.f32 %v9381_v7, %v9637_v27  ;;  %v4529_v20 = vsub.f32 %v9397_v60, %v9637_v27  ;;  %v4530_v58 = vsub.f32 %v9395_v17, %v9637_v27  ;;  %v4531_v38 = vsub.f32 %v9411_v50, %v9637_v27 }
 0x2d5   : > { %v4563_v21 = vsel %vm7515_vm14, %v4527_v16, 0.0  ;;  %v4532_v60 = vsub.f32 %v9406_v54, %v9637_v27  ;;  %v4534_v14 = vsub.f32 %v9420_v34, %v9637_v27  ;;  %v4535_v52 = vsub.f32 %v9439_v3, %v9637_v27 }
 0x2d6   : > { %v4564_v37 = vsel %vm7552_vm2, %v4528_v28, 0.0  ;;  %v4600_v41 = vmul.f32 %v4563_v21, %v4563_v21  ;;  %v4565_v7 = vsel %vm7572_vm4, %v4529_v20, 0.0  ;;  %v4566_v2 = vsel %vm7593_vm5, %v4530_v58, 0.0 }
 0x2d7   : > { %v4601_v18 = vmul.f32 %v4564_v37, %v4564_v37  ;;  %v4602_v16 = vmul.f32 %v4565_v7, %v4565_v7  ;;  %v4533_v28 = vsub.f32 %v9425_v55, %v9637_v27  ;;  %v4567_v17 = vsel %vm7629_vm8, %v4531_v38, 0.0 }
 0x2d8   : > { %v4603_v21 = vmul.f32 %v4566_v2, %v4566_v2  ;;  %v4568_v50 = vsel %vm7658_vm12, %v4532_v60, 0.0  ;;  %v4604_v54 = vmul.f32 %v4567_v17, %v4567_v17  ;;  %v4536_v33 = vsub.f32 %v9434_v5, %v9637_v27  ;;  %v10226_v17 = vld [vmem:[#allocation12_spill] sm:$0xff] }
 0x2d9   : > { %v4636_v23 = vadd.f32 %v4601_v18, %v4600_v41  ;;  %v4569_v41 = vsel %vm7713_vm3, %v4533_v28, 0.0  ;;  %v4605_v55 = vmul.f32 %v4568_v50, %v4568_v50  ;;  %v4570_v18 = vsel %vm7732_vm6, %v4534_v14, 0.0  ;;  %v10229_v50 = vld [vmem:[#allocation13_spill] sm:$0xff] }
 0x2da   : > { %v4606_v34 = vmul.f32 %v4569_v41, %v4569_v41  ;;  %v4537_v6 = vsub.f32 %v9450_v8, %v9637_v27  ;;  %v4571_v7 = vsel %vm10177_vm7, %v4535_v52, 0.0  ;;  %v4607_v3 = vmul.f32 %v4570_v18, %v4570_v18  ;;  %v10232_v41 = vld [vmem:[#allocation14_spill] sm:$0xff] }
 0x2db   : > { %v4637_v37 = vadd.f32 %v4636_v23, %v4602_v16  ;;  %v4538_v13 = vsub.f32 %v9448_v35, %v9637_v27  ;;  %vm10224_vm14 = vnez %v10178_v12  ;;  %v4608_v5 = vmul.f32 %v4571_v7, %v4571_v7  ;;  %v10228_v12 = vld [vmem:[#allocation4_spill] sm:$0xff] }
 0x2dc   : > { %v4572_v2 = vsel %vm10224_vm14, %v4536_v33, 0.0  ;;  %v4539_v45 = vsub.f32 %v9464_v40, %v9637_v27  ;;  %vm10225_vm2 = vnez %v10180_v51  ;;  %v4540_v4 = vsub.f32 %v9459_v0, %v9637_v27  ;;  %v10231_v51 = vld [vmem:[#allocation3_spill] sm:$0xff]  ;;  %v10234_v33 = vld [vmem:[#allocation6_spill] sm:$0xff] }
 0x2dd   : > { %v4638_v20 = vadd.f32 %v4637_v37, %v4603_v21  ;;  %v4573_v23 = vsel %vm10225_vm2, %v4537_v6, 0.0  ;;  %v4609_v8 = vmul.f32 %v4572_v2, %v4572_v2  ;;  %vm10227_vm4 = vnez %v10226_v17 }
 0x2de   : > { %v4574_v21 = vsel %vm10227_vm4, %v4538_v13, 0.0  ;;  %v4610_v35 = vmul.f32 %v4573_v23, %v4573_v23  ;;  %v4541_v14 = vsub.f32 %v10228_v12, %v9637_v27  ;;  %vm10230_vm5 = vnez %v10229_v50  ;;  %v10258_v13 = vld [vmem:[#allocation25_spill] sm:$0xff] }
 0x2df   : > { %v4639_v58 = vadd.f32 %v4638_v20, %v4604_v54  ;;  %v4575_v54 = vsel %vm10230_vm5, %v4539_v45, 0.0  ;;  %v4611_v40 = vmul.f32 %v4574_v21, %v4574_v21  ;;  %v4542_v52 = vsub.f32 %v10231_v51, %v9637_v27  ;;  %v10239_v45 = vld [vmem:[#allocation17_spill] sm:$0xff] }
 0x2e0   : > { %vm10233_vm8 = vnez %v10232_v41  ;;  %v4612_v0 = vmul.f32 %v4575_v54, %v4575_v54  ;;  %v4543_v18 = vsub.f32 %v10234_v33, %v9637_v27  ;;  %vm10240_vm3 = vnez %v10239_v45 }
 0x2e1   : > { %v4640_v38 = vadd.f32 %v4639_v58, %v4605_v55  ;;  %v4576_v55 = vsel %vm10233_vm8, %v4540_v4, 0.0  ;;  %v4578_v2 = vsel %vm10195_vm13, %v4542_v52, 0.0  ;;  %v10241_v4 = vld [vmem:[#allocation18_spill] sm:$0xff]  ;;  %v10246_v52 = vld [vmem:[#allocation21_spill] sm:$0xff]  ;;  %vm10259_vm4 = vnez %v10258_v13 }
 0x2e2   : > { %v4613_v6 = vmul.f32 %v4576_v55, %v4576_v55  ;;  %v4579_v23 = vsel %vm10240_vm3, %v4543_v18, 0.0  ;;  %vm10242_vm6 = vnez %v10241_v4  ;;  %vm10247_vm13 = vnez %v10246_v52  ;;  %v10252_v18 = vld [vmem:[#allocation23_spill] sm:$0xff] }
 0x2e3   : > { %v4641_v60 = vadd.f32 %v4640_v38, %v4606_v34  ;;  %v10235_v34 = vld [vmem:[#allocation15_spill] sm:$0xff]  ;;  %v4616_v21 = vmul.f32 %v4579_v23, %v4579_v23  ;;  %v4583_v41 = vsel %vm10247_vm13, %v4547_v29, 0.0  ;;  %v10254_v29 = vsub.f32 %v9532_v15, %v9637_v27 }
 0x2e4   : > { %vm10236_vm12 = vnez %v10235_v34  ;;  %v4620_v47 = vmul.f32 %v4583_v41, %v4583_v41  ;;  %vm10261_vm5 = vnez %v10213_v46  ;;  %v10267_v46 = vsub.f32 %v9579_v32, %v9637_v27 }
 0x2e5   : > { %v4642_v16 = vadd.f32 %v4641_v60, %v4607_v3  ;;  %v4577_v38 = vsel %vm10236_vm12, %v4541_v14, 0.0  ;;  %v10237_v3 = vld [vmem:[#allocation5_spill] sm:$0xff]  ;;  %vm10266_vm12 = vnez %v10217_v22  ;;  %vm10268_vm3 = vnez %v10136_v48 }
 0x2e6   : > { %v4544_v60 = vsub.f32 %v10237_v3, %v9637_v27  ;;  %v10271_v22 = vsub.f32 %v9593_v62, %v9637_v27  ;;  %v10273_v48 = vsub.f32 %v9588_v39, %v9637_v27 }
 0x2e7   : > { %v4643_v28 = vadd.f32 %v4642_v16, %v4608_v5  ;;  %v4614_v5 = vmul.f32 %v4577_v38, %v4577_v38 }
 0x2e8   : > { %v4580_v17 = vsel %vm10242_vm6, %v4544_v60, 0.0  ;;  %v10257_v60 = vsub.f32 %v9551_v53, %v9637_v27  ;;  %vm10270_vm6 = vnez %v10142_v1  ;;  %v4594_v52 = vsel %vm10222_vm11, %v10273_v48, 0.0 }
 0x2e9   : > { %v4644_v37 = vadd.f32 %v4643_v28, %v4609_v8  ;;  %v4615_v8 = vmul.f32 %v4578_v2, %v4578_v2  ;;  %v4617_v14 = vmul.f32 %v4580_v17, %v4580_v17  ;;  %v10274_v1 = vsub.f32 %v9607_v30, %v9637_v27 }
 0x2ea   : > { %v4587_v2 = vsel %vm10259_vm4, %v10257_v60, 0.0  ;;  %v4631_v62 = vmul.f32 %v4594_v52, %v4594_v52 }
 0x2eb   : > { %v4645_v20 = vadd.f32 %v4644_v37, %v4610_v35  ;;  %v10243_v37 = vld [vmem:[#allocation19_spill] sm:$0xff]  ;;  %v4624_v15 = vmul.f32 %v4587_v2, %v4587_v2 }
 0x2ec   : > { %vm10244_vm7 = vnez %v10243_v37 }
 0x2ed   : > { %v4646_v58 = vadd.f32 %v4645_v20, %v4611_v40  ;;  %v4581_v12 = vsel %vm10244_vm7, %v4545_v44, 0.0  ;;  %v4582_v40 = vsel %vm10203_vm1, %v4546_v49, 0.0  ;;  %v10248_v44 = vsub.f32 %v9518_v42, %v9637_v27 }
 0x2ee   : > { %v4618_v20 = vmul.f32 %v4581_v12, %v4581_v12  ;;  %v4619_v43 = vmul.f32 %v4582_v40, %v4582_v40  ;;  %v10251_v49 = vsub.f32 %v9537_v25, %v9637_v27  ;;  %vm10253_vm1 = vnez %v10252_v18 }
 0x2ef   : > { %v4647_v7 = vadd.f32 %v4646_v58, %v4612_v0  ;;  %v10249_v0 = vld [vmem:[#allocation22_spill] sm:$0xff]  ;;  %v4591_v12 = vsel %vm10268_vm3, %v10267_v46, 0.0  ;;  %vm10272_vm7 = vnez %v10148_v10  ;;  %v10275_v10 = vsub.f32 %v9602_v9, %v9637_v27 }
 0x2f0   : > { %vm10250_vm14 = vnez %v10249_v0  ;;  %v4585_v34 = vsel %vm10253_vm1, %v10251_v49, 0.0 }
 0x2f1   : > { %v4648_v16 = vadd.f32 %v4647_v7, %v4613_v6  ;;  %v4584_v58 = vsel %vm10250_vm14, %v10248_v44, 0.0  ;;  %v10255_v6 = vld [vmem:[#allocation24_spill] sm:$0xff]  ;;  %v4622_v42 = vmul.f32 %v4585_v34, %v4585_v34  ;;  %v4596_v0 = vsel %vm8947_vm15, %v10275_v10, 0.0 }
 0x2f2   : > { %v4621_v61 = vmul.f32 %v4584_v58, %v4584_v58  ;;  %vm10256_vm2 = vnez %v10255_v6  ;;  %v10277_v58 = vsub.f32 %v9621_v24, %v9637_v27 }
 0x2f3   : > { %v4649_v28 = vadd.f32 %v4648_v16, %v4614_v5  ;;  %v4586_v7 = vsel %vm10256_vm2, %v10254_v29, 0.0  ;;  %v10260_v16 = vsub.f32 %v9546_v63, %v9637_v27 }
 0x2f4   : > { %v4623_v25 = vmul.f32 %v4586_v7, %v4586_v7  ;;  %v4597_v30 = vsel %vm8986_vm0, %v10277_v58, 0.0 }
 0x2f5   : > { %v4650_v35 = vadd.f32 %v4649_v28, %v4615_v8  ;;  %v4588_v45 = vsel %vm10261_vm5, %v10260_v16, 0.0  ;;  %v10262_v8 = vsub.f32 %v9565_v56, %v9637_v27  ;;  %v10263_v28 = vld [vmem:[#allocation27_spill] sm:$0xff]  ;;  %v4634_v49 = vmul.f32 %v4597_v30, %v4597_v30 }
 0x2f6   : > { %vm10264_vm8 = vnez %v10263_v28  ;;  %v4625_v53 = vmul.f32 %v4588_v45, %v4588_v45 }
 0x2f7   : > { %v4651_v50 = vadd.f32 %v4650_v35, %v4616_v21  ;;  %v4589_v4 = vsel %vm10264_vm8, %v10262_v8, 0.0  ;;  %v10265_v21 = vsub.f32 %v9560_v59, %v9637_v27  ;;  %v4628_v59 = vmul.f32 %v4591_v12, %v4591_v12 }
 0x2f8   : > { %v4626_v63 = vmul.f32 %v4589_v4, %v4589_v4 }
 0x2f9   : > { %v4652_v51 = vadd.f32 %v4651_v50, %v4617_v14  ;;  %v4590_v35 = vsel %vm10266_vm12, %v10265_v21, 0.0  ;;  %v10269_v50 = vsub.f32 %v9574_v26, %v9637_v27 }
 0x2fa   : > { %v4627_v56 = vmul.f32 %v4590_v35, %v4590_v35 }
 0x2fb   : > { %v4653_v55 = vadd.f32 %v4652_v51, %v4618_v20  ;;  %v4592_v54 = vsel %vm10270_vm6, %v10269_v50, 0.0  ;;  %v4593_v20 = vsel %vm10272_vm7, %v10271_v22, 0.0 }
 0x2fc   : > { %v4629_v32 = vmul.f32 %v4592_v54, %v4592_v54  ;;  %v4630_v26 = vmul.f32 %v4593_v20, %v4593_v20 }
 0x2fd   : > { %v4654_v33 = vadd.f32 %v4653_v55, %v4619_v43  ;;  %v4595_v43 = vsel %vm10223_vm9, %v10274_v1, 0.0 }
 0x2fe   : > { %v4632_v39 = vmul.f32 %v4595_v43, %v4595_v43 }
 0x2ff   : > { %v4655_v38 = vadd.f32 %v4654_v33, %v4620_v47  ;;  %v4633_v47 = vmul.f32 %v4596_v0, %v4596_v0  ;;  %v10278_v33 = vsub.f32 %v9616_v57, %v9637_v27 }
 0x301   : > { %v4656_v3 = vadd.f32 %v4655_v38, %v4621_v61  ;;  %v4598_v9 = vsel %vm8998_vm10, %v10278_v33, 0.0 }
 0x302   : > { %v4635_v34 = vmul.f32 %v4598_v9, %v4598_v9 }
 0x303   : > { %v4657_v5 = vadd.f32 %v4656_v3, %v4622_v42 }
 0x305   : > { %v4658_v23 = vadd.f32 %v4657_v5, %v4623_v25 }
 0x307   : > { %v4659_v17 = vadd.f32 %v4658_v23, %v4624_v15 }
 0x309   : > { %v4660_v37 = vadd.f32 %v4659_v17, %v4625_v53 }
 0x30b   : > { %v4661_v14 = vadd.f32 %v4660_v37, %v4626_v63 }
 0x30d   : > { %v4662_v40 = vadd.f32 %v4661_v14, %v4627_v56 }
 0x30f   : > { %v4663_v51 = vadd.f32 %v4662_v40, %v4628_v59 }
 0x311   : > { %v4664_v41 = vadd.f32 %v4663_v51, %v4629_v32 }
 0x313   : > { %v4665_v55 = vadd.f32 %v4664_v41, %v4630_v26 }
 0x315   : > { %v4666_v36 = vadd.f32 %v4665_v55, %v4631_v62 }
 0x317   : > { %v4667_v11 = vadd.f32 %v4666_v36, %v4632_v39 }
 0x319   : > { %v4668_v18 = vadd.f32 %v4667_v11, %v4633_v47 }
 0x31b   : > { %v4669_v61 = vadd.f32 %v4668_v18, %v4634_v49 }
 0x31d   : > { %v4670_v38 = vadd.f32 %v4669_v61, %v4635_v34 }
 0x31f   : > { %v4671_v29 = vrot.slane %v4670_v38, 4 }
 0x321   : > { %v4672_v6 = vadd.f32 %v4671_v29, %v4670_v38 }
 0x323   : > { %v4673_v7 = vrot.slane %v4672_v6, 2 }
 0x325   : > { %v4674_v24 = vadd.f32 %v4673_v7, %v4672_v6 }
 0x327   : > { %v4675_v42 = vrot.slane %v4674_v24, 1 }
 0x329   : > { %v4676_v19 = vadd.f32 %v4675_v42, %v4674_v24 }
 0x32b   : > { %4677 = vst [vmem:[%s268_s23] sm:$0x1] %v4676_v19 }
 0x32c PF: > { %s17_s21 = sadd.s32 1, %s7050_s21  }
 0x32d   : > { %p14_p4 = scmp.ge.s32.totalorder %s17_s21, 4  }
 0x32f   :  { %16 = sbr.rel (!%p14_p4) target bundleno = 1 (0x1), region = 98 }

</bundles_post_ra>
